<compile_context>
chip_gen: v5e
topology: v5e:2x2
jax: 0.10.0
libtpu: 0.0.40
codegen_flags: <defaults>
</compile_context>

<pallas_src>
import functools

import jax
import jax.numpy as jnp
from jax.experimental import pallas as pl
from jax.experimental.pallas import tpu as pltpu


# ---------------------------------------------------------------------------
# Kernel
# ---------------------------------------------------------------------------
def _synth_dense_kernel(x_ref, w1_ref, b1_ref, w2_ref, b2_ref, wv_ref, bv_ref,
                        *rest, L, D, tq, block_b, return_attention):
    if return_attention:
        out_ref, attn_ref, val_ref = rest
    else:
        out_ref, val_ref = rest
        attn_ref = None

    qi = pl.program_id(1)

    # value = x @ wv + bv for the whole batch block, computed once per batch
    # block (first q-tile) into a bf16 VMEM scratch, reused by every q-tile.
    @pl.when(qi == 0)
    def _():
        xf = x_ref[...].astype(jnp.bfloat16).reshape(block_b * L, D)
        v = jnp.dot(xf, wv_ref[...], preferred_element_type=jnp.float32)
        v = v + bv_ref[...]
        val_ref[...] = v.reshape(block_b, L, D).astype(val_ref.dtype)

    # This q-tile's rows of x.  x is streamed from HBM as f32 (no wrapper-side
    # cast pass) and converted to bf16 here for the MXU.
    q0 = pl.multiple_of(qi * tq, tq)
    xq = x_ref[:, pl.ds(q0, tq), :].astype(jnp.bfloat16)
    xq = xq.reshape(block_b * tq, D)

    # energy = Linear2(ReLU(Linear1(x)))  (bf16 MXU operands, f32 accumulation)
    hid = jnp.dot(xq, w1_ref[...], preferred_element_type=jnp.float32)
    hid = jnp.maximum(hid + b1_ref[...], 0.0)
    energy = jnp.dot(hid.astype(jnp.bfloat16), w2_ref[...],
                     preferred_element_type=jnp.float32) + b2_ref[...]

    # Row-wise softmax in f32 (max-subtracted); one reciprocal of the row sum
    # followed by a multiply instead of a per-element divide.
    m = jnp.max(energy, axis=-1, keepdims=True)
    e = jnp.exp(energy - m)
    s = jnp.sum(e, axis=-1, keepdims=True)
    attn = e * pl.reciprocal(s, approx=False)

    # out = attention @ value, batched over the block's batch elements.
    attn_b = attn.reshape(block_b, tq, L)
    out = jnp.einsum('bql,bld->bqd',
                     attn_b.astype(jnp.bfloat16), val_ref[...],
                     preferred_element_type=jnp.float32)

    out_ref[...] = out.astype(out_ref.dtype)
    if attn_ref is not None:
        attn_ref[...] = attn_b.astype(attn_ref.dtype)


# ---------------------------------------------------------------------------
# Generation-aware sizing helpers
# ---------------------------------------------------------------------------
def _tpu_budget():
    """Return (physical VMEM bytes, multiple TensorCores per chip?). Best-effort."""
    vmem_bytes = 64 * 1024 * 1024      # conservative default (v7x-sized)
    multi_core = True                  # conservative: keep >= 2 parallel steps
    try:
        info = pltpu.get_tpu_info()
        vmem_bytes = int(getattr(info, "vmem_capacity_bytes", vmem_bytes))
        cores = None
        for attr in ("num_tensorcores", "tensorcores_per_chip", "num_cores"):
            cores = getattr(info, attr, None)
            if cores is not None:
                break
        if cores is not None:
            multi_core = int(cores) > 1
        else:
            # 128 MiB-VMEM generations (v5e/v6e) are single-TensorCore chips.
            multi_core = vmem_bytes < 100 * 1024 * 1024
    except Exception:
        pass
    return vmem_bytes, multi_core


def _pick_tq(L):
    """Query-row tile: a multiple of 8 that divides L (prefer 256/128), else L."""
    for tq in (256, 128, 64, 32, 16, 8):
        if L % tq == 0:
            return tq
    return L


def _vmem_bytes_per_step(block_b, L, D, tq, attn_bytes):
    """Honest per-grid-step VMEM estimate (pipelined blocks double-buffered)."""
    dbuf = 2
    x_blk = dbuf * block_b * L * D * 4                 # x streamed as f32
    out_blk = dbuf * block_b * tq * D * 4              # f32 out block
    att_blk = dbuf * block_b * tq * L * attn_bytes     # attention block
    val_scr = block_b * L * D * 2                      # bf16 value scratch
    weights = dbuf * 2 * (D * L + L * L + D * D)       # bf16 weights (+ tiny biases)
    # live intermediates: per-q-tile softmax path vs. the qi==0 value path.
    inter_q = 4 * block_b * tq * L * 4 + 2 * block_b * tq * D * 4
    inter_v = block_b * L * D * (2 + 4)
    return x_blk + out_blk + att_blk + val_scr + weights + max(inter_q, inter_v)


def _pick_block_b(bsz, L, D, tq, attn_bytes, budget, multi_core):
    fits = [b for b in range(1, bsz + 1)
            if _vmem_bytes_per_step(b, L, D, tq, attn_bytes) <= budget]
    if not fits:
        return 1
    if multi_core:
        # Leave >= 2 parallel batch steps so both v7x TensorCores get work.
        par = [b for b in fits if (bsz + b - 1) // b >= 2]
        if par:
            return max(par)
    return max(fits)


# ---------------------------------------------------------------------------
# Wrapper
# ---------------------------------------------------------------------------
def prepare_synthesizer_params(w1, b1, w2, b2, wv, bv):
    """Cast/reshape the weights once; cache the result across forward calls."""
    bf16, f32 = jnp.bfloat16, jnp.float32
    return (w1.astype(bf16), b1.reshape(1, -1).astype(f32),
            w2.astype(bf16), b2.reshape(1, -1).astype(f32),
            wv.astype(bf16), bv.reshape(1, -1).astype(f32))


def synthesizer_dense_apply(x, params, *, block_b=None, tq=None,
                            attn_dtype=jnp.bfloat16, return_attention=True,
                            single_buffer_weights=False):
    """x: (B, L, D) float32; params from prepare_synthesizer_params (weights
    stored (in, out), i.e. torch Linear weight transposed).

    Returns (out (B, L, D) in x.dtype, attention (B, L, L) in attn_dtype).
    attention is stored bf16 by default (the kernel is writeback-bound); use
    attn_dtype=jnp.float32 for the module's exact output dtype, or
    return_attention=False to skip the attention writeback and return out only.
    """
    w1, b1, w2, b2, wv, bv = params
    bsz, L, D = x.shape
    assert w1.shape == (D, L) and w2.shape == (L, L) and wv.shape == (D, D)

    if tq is None:
        tq = _pick_tq(L)
    assert L % tq == 0, "query tile tq must divide sentence_length"
    n_q = L // tq

    vmem_hw, multi_core = _tpu_budget()
    # 128 MiB chips (v5e/v6e) -> 96 MiB scoped limit; 64 MiB chips (v7x) -> 48 MiB.
    vmem_limit = (96 if vmem_hw >= 100 * 1024 * 1024 else 48) * 1024 * 1024
    attn_bytes = jnp.dtype(attn_dtype).itemsize if return_attention else 0
    if block_b is None:
        block_b = _pick_block_b(bsz, L, D, tq, attn_bytes,
                                int(vmem_limit * 0.85), multi_core)
    block_b = max(1, min(int(block_b), bsz))
    n_b = pl.cdiv(bsz, block_b)   # masked tail block; no divisibility requirement

    # Grid-invariant weights; optionally single-buffered (VMEM reclaim on v7x).
    weight_kw = {"pipeline_mode": pl.Buffered(1)} if single_buffer_weights else {}
    in_specs = [
        pl.BlockSpec((block_b, L, D), lambda b, q: (b, 0, 0)),    # x (f32)
        pl.BlockSpec((D, L), lambda b, q: (0, 0), **weight_kw),   # w1
        pl.BlockSpec((1, L), lambda b, q: (0, 0), **weight_kw),   # b1
        pl.BlockSpec((L, L), lambda b, q: (0, 0), **weight_kw),   # w2
        pl.BlockSpec((1, L), lambda b, q: (0, 0), **weight_kw),   # b2
        pl.BlockSpec((D, D), lambda b, q: (0, 0), **weight_kw),   # wv
        pl.BlockSpec((1, D), lambda b, q: (0, 0), **weight_kw),   # bv
    ]
    out_spec_out = pl.BlockSpec((block_b, tq, D), lambda b, q: (b, q, 0))
    out_sh_out = jax.ShapeDtypeStruct((bsz, L, D), x.dtype)
    if return_attention:
        out_specs = [out_spec_out,
                     pl.BlockSpec((block_b, tq, L), lambda b, q: (b, q, 0))]
        out_shape = (out_sh_out, jax.ShapeDtypeStruct((bsz, L, L), attn_dtype))
    else:
        out_specs = out_spec_out
        out_shape = out_sh_out

    kernel = functools.partial(_synth_dense_kernel, L=L, D=D, tq=tq,
                               block_b=block_b,
                               return_attention=return_attention)

    grid_spec = pltpu.PrefetchScalarGridSpec(
        num_scalar_prefetch=0,
        grid=(n_b, n_q),
        in_specs=in_specs,
        out_specs=out_specs,
        scratch_shapes=[pltpu.VMEM((block_b, L, D), jnp.bfloat16)],  # value
    )

    return pl.pallas_call(
        kernel,
        out_shape=out_shape,
        grid_spec=grid_spec,
        compiler_params=pltpu.CompilerParams(
            # batch blocks are independent (megacore-shardable); q-tiles reuse
            # the per-batch-block value scratch, so that axis is sequential.
            dimension_semantics=("parallel", "arbitrary"),
            vmem_limit_bytes=vmem_limit,
        ),
    )(x, w1, b1, w2, b2, wv, bv)


def synthesizer_dense(x, w1, b1, w2, b2, wv, bv, **kwargs):
    """Convenience wrapper: prep params and apply (prefer caching the prep)."""
    params = prepare_synthesizer_params(w1, b1, w2, b2, wv, bv)
    return synthesizer_dense_apply(x, params, **kwargs)


# ---------------------------------------------------------------------------
# Reference + demo
# ---------------------------------------------------------------------------
def _reference(x, w1, b1, w2, b2, wv, bv):
    """Pure-JAX forward matching the PyTorch module, mirroring the kernel's
    bf16 MXU operand casts (f32 accumulation, f32 softmax).
    NOTE: this validates kernel-vs-bf16-reference; a strict f32 PyTorch
    comparison would need a looser tolerance at larger L/D."""
    bf16 = jnp.bfloat16
    xb = x.astype(bf16)
    hid = jnp.maximum(
        jnp.einsum('bld,dk->blk', xb, w1.astype(bf16),
                   preferred_element_type=jnp.float32) + b1, 0.0)
    energy = jnp.einsum('blk,kj->blj', hid.astype(bf16), w2.astype(bf16),
                        preferred_element_type=jnp.float32) + b2
    attn = jax.nn.softmax(energy, axis=-1)
    val = jnp.einsum('bld,de->ble', xb, wv.astype(bf16),
                     preferred_element_type=jnp.float32) + bv
    out = jnp.einsum('bij,bjd->bid', attn.astype(bf16), val.astype(bf16),
                     preferred_element_type=jnp.float32)
    return out, attn


if __name__ == "__main__":
    key = jax.random.PRNGKey(0)
    # Small but lane-dense demo shapes: sentence_length = in_dims = 128.
    batch, seq_len, in_dims = 4, 128, 128

    ks = jax.random.split(key, 7)
    x = jax.random.normal(ks[0], (batch, seq_len, in_dims), dtype=jnp.float32)
    w1 = 0.1 * jax.random.normal(ks[1], (in_dims, seq_len), dtype=jnp.float32)
    b1 = 0.1 * jax.random.normal(ks[2], (seq_len,), dtype=jnp.float32)
    w2 = 0.1 * jax.random.normal(ks[3], (seq_len, seq_len), dtype=jnp.float32)
    b2 = 0.1 * jax.random.normal(ks[4], (seq_len,), dtype=jnp.float32)
    wv = 0.1 * jax.random.normal(ks[5], (in_dims, in_dims), dtype=jnp.float32)
    bv = 0.1 * jax.random.normal(ks[6], (in_dims,), dtype=jnp.float32)

    # Pack/cast weights once (cache this across forward calls in real use).
    params = prepare_synthesizer_params(w1, b1, w2, b2, wv, bv)

    out, attn = synthesizer_dense_apply(x, params)
    jax.block_until_ready((out, attn))

    ref_out, ref_attn = _reference(x, w1, b1, w2, b2, wv, bv)
    assert out.shape == (batch, seq_len, in_dims) and out.dtype == x.dtype
    assert attn.shape == (batch, seq_len, seq_len)
    # attention is stored bf16 (writeback-bound kernel) -> compare at bf16 tol.
    attn_f32 = attn.astype(jnp.float32)
    assert jnp.allclose(attn_f32, ref_attn, atol=5e-3, rtol=2e-2), \
        float(jnp.max(jnp.abs(attn_f32 - ref_attn)))
    assert jnp.allclose(out, ref_out, atol=1e-3, rtol=1e-2), \
        float(jnp.max(jnp.abs(out - ref_out)))

    # Attention-free variant skips the (B, L, L) writeback entirely.
    out_only = synthesizer_dense_apply(x, params, return_attention=False)
    jax.block_until_ready(out_only)
    assert jnp.allclose(out_only, out, atol=1e-5, rtol=1e-4)

    print("KERNEL_OK")
</pallas_src>

<mosaic_0001>
module attributes {stable_mosaic.version = 11 : i64} {
  func.func @_synth_dense_kernel(%arg0: i32, %arg1: i32, %arg2: memref<3x128x128xf32, #tpu.memory_space<vmem>>, %arg3: memref<128x128xbf16, #tpu.memory_space<vmem>>, %arg4: memref<1x128xf32, #tpu.memory_space<vmem>>, %arg5: memref<128x128xbf16, #tpu.memory_space<vmem>>, %arg6: memref<1x128xf32, #tpu.memory_space<vmem>>, %arg7: memref<128x128xbf16, #tpu.memory_space<vmem>>, %arg8: memref<1x128xf32, #tpu.memory_space<vmem>>, %arg9: memref<3x128x128xf32, #tpu.memory_space<vmem>>, %arg10: memref<3x128x128xbf16, #tpu.memory_space<vmem>>, %arg11: memref<3x128x128xbf16, #tpu.memory_space<vmem>>) attributes {dimension_semantics = [#tpu.dimension_semantics<parallel>, #tpu.dimension_semantics<arbitrary>], iteration_bounds = array<i64: 2, 1>, scalar_prefetch = 0 : i64, scratch_operands = 1 : i64, tpu.core_type = #tpu.core_type<tc>, window_params = [{transform_indices = @transform_0, window_bounds = array<i64: 3, 128, 128>}, {pipeline_mode = #tpu.pipeline_mode<synchronous>, transform_indices = @transform_1, window_bounds = array<i64: 128, 128>}, {pipeline_mode = #tpu.pipeline_mode<synchronous>, transform_indices = @transform_2, window_bounds = array<i64: 1, 128>}, {pipeline_mode = #tpu.pipeline_mode<synchronous>, transform_indices = @transform_3, window_bounds = array<i64: 128, 128>}, {pipeline_mode = #tpu.pipeline_mode<synchronous>, transform_indices = @transform_4, window_bounds = array<i64: 1, 128>}, {pipeline_mode = #tpu.pipeline_mode<synchronous>, transform_indices = @transform_5, window_bounds = array<i64: 128, 128>}, {pipeline_mode = #tpu.pipeline_mode<synchronous>, transform_indices = @transform_6, window_bounds = array<i64: 1, 128>}, {transform_indices = @transform_7, window_bounds = array<i64: 3, 128, 128>}, {transform_indices = @transform_8, window_bounds = array<i64: 3, 128, 128>}]} {
    %c0_i32 = arith.constant 0 : i32
    %0 = arith.cmpi eq, %arg1, %c0_i32 : i32
    %1 = arith.extui %0 : i1 to i32
    %c0_i32_0 = arith.constant 0 : i32
    %2 = arith.cmpi ne, %1, %c0_i32_0 : i32
    scf.if %2 {
      %c0_24 = arith.constant 0 : index
      %c0_25 = arith.constant 0 : index
      %c0_26 = arith.constant 0 : index
      %39 = vector.load %arg2[%c0_24, %c0_25, %c0_26] : memref<3x128x128xf32, #tpu.memory_space<vmem>>, vector<3x128x128xf32>
      %40 = arith.truncf %39 : vector<3x128x128xf32> to vector<3x128x128xbf16>
      %41 = vector.shape_cast %40 : vector<3x128x128xbf16> to vector<384x128xbf16>
      %c0_27 = arith.constant 0 : index
      %c0_28 = arith.constant 0 : index
      %42 = vector.load %arg7[%c0_27, %c0_28] : memref<128x128xbf16, #tpu.memory_space<vmem>>, vector<128x128xbf16>
      %cst_29 = arith.constant dense<0.000000e+00> : vector<384x128xf32>
      %43 = tpu.matmul %41, %42, %cst_29 {dimension_numbers = #tpu.dot_dimension_numbers<[1], [0], [0], [1], [0, 0, 1, 1], [], []>} : vector<384x128xbf16>, vector<128x128xbf16>, vector<384x128xf32> -> vector<384x128xf32>
      %c0_30 = arith.constant 0 : index
      %c0_31 = arith.constant 0 : index
      %44 = vector.load %arg8[%c0_30, %c0_31] : memref<1x128xf32, #tpu.memory_space<vmem>>, vector<1x128xf32>
      %45 = vector.broadcast %44 : vector<1x128xf32> to vector<384x128xf32>
      %46 = arith.addf %43, %45 : vector<384x128xf32>
      %47 = vector.shape_cast %46 : vector<384x128xf32> to vector<3x128x128xf32>
      %48 = arith.truncf %47 : vector<3x128x128xf32> to vector<3x128x128xbf16>
      %c0_32 = arith.constant 0 : index
      %c0_33 = arith.constant 0 : index
      %c0_34 = arith.constant 0 : index
      %49 = vector.load %arg11[%c0_32, %c0_33, %c0_34] : memref<3x128x128xbf16, #tpu.memory_space<vmem>>, vector<3x128x128xbf16>
      tpu.vector_store %arg11[%c0_32, %c0_33, %c0_34], %48 {strides = array<i32>} : memref<3x128x128xbf16, #tpu.memory_space<vmem>>, vector<3x128x128xbf16>,
    } else {
    }
    %c128_i32 = arith.constant 128 : i32
    %3 = arith.muli %arg1, %c128_i32 : i32
    %4 = tpu.assume_multiple %3, 128 : i32
    %c0 = arith.constant 0 : index
    %5 = arith.index_cast %4 : i32 to index
    %c0_1 = arith.constant 0 : index
    %6 = vector.load %arg2[%c0, %5, %c0_1] : memref<3x128x128xf32, #tpu.memory_space<vmem>>, vector<3x128x128xf32>
    %7 = arith.truncf %6 : vector<3x128x128xf32> to vector<3x128x128xbf16>
    %8 = vector.shape_cast %7 : vector<3x128x128xbf16> to vector<384x128xbf16>
    %c0_2 = arith.constant 0 : index
    %c0_3 = arith.constant 0 : index
    %9 = vector.load %arg3[%c0_2, %c0_3] : memref<128x128xbf16, #tpu.memory_space<vmem>>, vector<128x128xbf16>
    %cst = arith.constant dense<0.000000e+00> : vector<384x128xf32>
    %10 = tpu.matmul %8, %9, %cst {dimension_numbers = #tpu.dot_dimension_numbers<[1], [0], [0], [1], [0, 0, 1, 1], [], []>} : vector<384x128xbf16>, vector<128x128xbf16>, vector<384x128xf32> -> vector<384x128xf32>
    %c0_4 = arith.constant 0 : index
    %c0_5 = arith.constant 0 : index
    %11 = vector.load %arg4[%c0_4, %c0_5] : memref<1x128xf32, #tpu.memory_space<vmem>>, vector<1x128xf32>
    %12 = vector.broadcast %11 : vector<1x128xf32> to vector<384x128xf32>
    %13 = arith.addf %10, %12 : vector<384x128xf32>
    %cst_6 = arith.constant 0.000000e+00 : f32
    %14 = vector.broadcast %cst_6 : f32 to vector<384x128xf32>
    %15 = arith.maximumf %13, %14 : vector<384x128xf32>
    %16 = arith.truncf %15 : vector<384x128xf32> to vector<384x128xbf16>
    %c0_7 = arith.constant 0 : index
    %c0_8 = arith.constant 0 : index
    %17 = vector.load %arg5[%c0_7, %c0_8] : memref<128x128xbf16, #tpu.memory_space<vmem>>, vector<128x128xbf16>
    %cst_9 = arith.constant dense<0.000000e+00> : vector<384x128xf32>
    %18 = tpu.matmul %16, %17, %cst_9 {dimension_numbers = #tpu.dot_dimension_numbers<[1], [0], [0], [1], [0, 0, 1, 1], [], []>} : vector<384x128xbf16>, vector<128x128xbf16>, vector<384x128xf32> -> vector<384x128xf32>
    %c0_10 = arith.constant 0 : index
    %c0_11 = arith.constant 0 : index
    %19 = vector.load %arg6[%c0_10, %c0_11] : memref<1x128xf32, #tpu.memory_space<vmem>>, vector<1x128xf32>
    %20 = vector.broadcast %19 : vector<1x128xf32> to vector<384x128xf32>
    %21 = arith.addf %18, %20 : vector<384x128xf32>
    %cst_12 = arith.constant dense<0xFF800000> : vector<384xf32>
    %22 = vector.multi_reduction <maximumf>, %21, %cst_12 [1] : vector<384x128xf32> to vector<384xf32>
    %23 = vector.shape_cast %22 : vector<384xf32> to vector<384x1xf32>
    %24 = vector.broadcast %23 : vector<384x1xf32> to vector<384x128xf32>
    %25 = arith.subf %21, %24 : vector<384x128xf32>
    %26 = math.exp %25 : vector<384x128xf32>
    %cst_13 = arith.constant dense<0.000000e+00> : vector<384xf32>
    %27 = vector.multi_reduction <add>, %26, %cst_13 [1] : vector<384x128xf32> to vector<384xf32>
    %28 = vector.shape_cast %27 : vector<384xf32> to vector<384x1xf32>
    %29 = tpu.reciprocal %28 : vector<384x1xf32> -> vector<384x1xf32>
    %30 = vector.broadcast %29 : vector<384x1xf32> to vector<384x128xf32>
    %31 = arith.mulf %26, %30 : vector<384x128xf32>
    %32 = vector.shape_cast %31 : vector<384x128xf32> to vector<3x128x128xf32>
    %33 = arith.truncf %32 : vector<3x128x128xf32> to vector<3x128x128xbf16>
    %c0_14 = arith.constant 0 : index
    %c0_15 = arith.constant 0 : index
    %c0_16 = arith.constant 0 : index
    %34 = vector.load %arg11[%c0_14, %c0_15, %c0_16] : memref<3x128x128xbf16, #tpu.memory_space<vmem>>, vector<3x128x128xbf16>
    "tpu.trace_start"() <{level = 10 : i32, message = "bql,bld->bqd"}> : () -> ()
    %cst_17 = arith.constant dense<0.000000e+00> : vector<3x128x128xf32>
    %35 = tpu.matmul %33, %34, %cst_17 {dimension_numbers = #tpu.dot_dimension_numbers<[2], [1], [1], [2], [0, 0, 0, 1, 1, 2], [0], [0]>} : vector<3x128x128xbf16>, vector<3x128x128xbf16>, vector<3x128x128xf32> -> vector<3x128x128xf32>
    "tpu.trace_stop"() : () -> ()
    %c0_18 = arith.constant 0 : index
    %c0_19 = arith.constant 0 : index
    %c0_20 = arith.constant 0 : index
    %36 = vector.load %arg9[%c0_18, %c0_19, %c0_20] : memref<3x128x128xf32, #tpu.memory_space<vmem>>, vector<3x128x128xf32>
    tpu.vector_store %arg9[%c0_18, %c0_19, %c0_20], %35 {strides = array<i32>} : memref<3x128x128xf32, #tpu.memory_space<vmem>>, vector<3x128x128xf32>,
    %37 = arith.truncf %32 : vector<3x128x128xf32> to vector<3x128x128xbf16>
    %c0_21 = arith.constant 0 : index
    %c0_22 = arith.constant 0 : index
    %c0_23 = arith.constant 0 : index
    %38 = vector.load %arg10[%c0_21, %c0_22, %c0_23] : memref<3x128x128xbf16, #tpu.memory_space<vmem>>, vector<3x128x128xbf16>
    tpu.vector_store %arg10[%c0_21, %c0_22, %c0_23], %37 {strides = array<i32>} : memref<3x128x128xbf16, #tpu.memory_space<vmem>>, vector<3x128x128xbf16>,
    return
  }
  func.func @transform_0(%arg0: i32, %arg1: i32) -> (i32, i32, i32) {
    %c0_i32 = arith.constant 0 : i32
    %c0_i32_0 = arith.constant 0 : i32
    %c0_i32_1 = arith.constant 0 : i32
    return %arg0, %c0_i32, %c0_i32_0 : i32, i32, i32
  }
  func.func @transform_1(%arg0: i32, %arg1: i32) -> (i32, i32) {
    %c0_i32 = arith.constant 0 : i32
    %c0_i32_0 = arith.constant 0 : i32
    %c0_i32_1 = arith.constant 0 : i32
    return %c0_i32, %c0_i32_0 : i32, i32
  }
  func.func @transform_2(%arg0: i32, %arg1: i32) -> (i32, i32) {
    %c0_i32 = arith.constant 0 : i32
    %c0_i32_0 = arith.constant 0 : i32
    %c0_i32_1 = arith.constant 0 : i32
    return %c0_i32, %c0_i32_0 : i32, i32
  }
  func.func @transform_3(%arg0: i32, %arg1: i32) -> (i32, i32) {
    %c0_i32 = arith.constant 0 : i32
    %c0_i32_0 = arith.constant 0 : i32
    %c0_i32_1 = arith.constant 0 : i32
    return %c0_i32, %c0_i32_0 : i32, i32
  }
  func.func @transform_4(%arg0: i32, %arg1: i32) -> (i32, i32) {
    %c0_i32 = arith.constant 0 : i32
    %c0_i32_0 = arith.constant 0 : i32
    %c0_i32_1 = arith.constant 0 : i32
    return %c0_i32, %c0_i32_0 : i32, i32
  }
  func.func @transform_5(%arg0: i32, %arg1: i32) -> (i32, i32) {
    %c0_i32 = arith.constant 0 : i32
    %c0_i32_0 = arith.constant 0 : i32
    %c0_i32_1 = arith.constant 0 : i32
    return %c0_i32, %c0_i32_0 : i32, i32
  }
  func.func @transform_6(%arg0: i32, %arg1: i32) -> (i32, i32) {
    %c0_i32 = arith.constant 0 : i32
    %c0_i32_0 = arith.constant 0 : i32
    %c0_i32_1 = arith.constant 0 : i32
    return %c0_i32, %c0_i32_0 : i32, i32
  }
  func.func @transform_7(%arg0: i32, %arg1: i32) -> (i32, i32, i32) {
    %c0_i32 = arith.constant 0 : i32
    %c0_i32_0 = arith.constant 0 : i32
    return %arg0, %arg1, %c0_i32 : i32, i32, i32
  }
  func.func @transform_8(%arg0: i32, %arg1: i32) -> (i32, i32, i32) {
    %c0_i32 = arith.constant 0 : i32
    %c0_i32_0 = arith.constant 0 : i32
    return %arg0, %arg1, %c0_i32 : i32, i32, i32
  }
}

</mosaic_0001>

<bundles_post_ra>
// kernel: tpu_custom_call.1
= control target key start
LH: loop header
LB: loop body
LE: loop exit
PB: predicated region body
PF: predicated region fallthrough
CT: control target
= control target key end

     0   :  { %s6242_s0 = inlined_call_operand.hbm [shape: f32[4,128,128], index: 0, kind: input, shape index: {}]   ;;  %s6243_s1 = inlined_call_operand.hbm [shape: bf16[128,128], index: 1, kind: input, shape index: {}]   ;;  %s6244_s2 = inlined_call_operand.vmem [shape: f32[1,128], index: 2, kind: input, shape index: {}]   ;;  %s6245_s3 = inlined_call_operand.hbm [shape: bf16[128,128], index: 3, kind: input, shape index: {}]   ;;  %s6246_s4 = inlined_call_operand.vmem [shape: f32[1,128], index: 4, kind: input, shape index: {}]   ;;  %s6247_s5 = inlined_call_operand.hbm [shape: bf16[128,128], index: 5, kind: input, shape index: {}]   ;;  %s6248_s6 = inlined_call_operand.vmem [shape: f32[1,128], index: 6, kind: input, shape index: {}]   ;;  %s6249_s7 = inlined_call_operand.hbm [shape: f32[4,128,128], index: 7, kind: output, shape index: {0}]   ;;  %s6250_s8 = inlined_call_operand.hbm [shape: bf16[4,128,128], index: 8, kind: output, shape index: {1}]  }
   0x1   :  { %6255 = sst [smem:[#allocation23_spill]] %s6243_s1 }
   0x2   :  { %6256 = sst [smem:[#allocation24_spill]] %s6245_s3 }
   0x3   :  { %6257 = sst [smem:[#allocation25_spill]] %s6247_s5 }
   0x4   :  { %14 = vsyncpa [#allocation4], 0 }
   0x5   :  { %16 = vsyncpa [#allocation4 + $0x1], 0 }
   0x6   :  { %17 = vsyncpa [#allocation7], 0 }
   0x7   :  { %18 = vsyncpa [#allocation10], 0 }
   0x8   :  { %19 = vsyncpa [#allocation5], 0 }
   0x9   :  { %21 = vsyncpa [#allocation5 + $0x1], 0 }
   0xa   :  { %22 = vsyncpa [#allocation13], 0 }
   0xb   :  { %24 = vsyncpa [#allocation13 + $0x1], 0  ;;  %s4790_s27 = smov 0   ;;  %s4792_s28 = smov 0  }
   0xc   :  { %s4794_s29 = smov 0   ;;  %s4796_s30 = smov 0  }
   0xd   :  { %s4798_s9 = smov 0   ;;  %s4800_s10 = smov 0  }
   0xe LB: > { %6258 = sst [smem:[#allocation19_spill]] %s4709_s27  ;;  %s3574_s11 = sadd.s32 4294967295, %s4729_s10   ;;  %s4729_s10 = sphi %s4800_s10, %s30_s10   ;;  %s4725_s9 = sphi %s4798_s9, %s6326_s9   ;;  %s4721_s30 = sphi %s4796_s30, %s6325_s30   ;;  %s4717_s29 = sphi %s4794_s29, %s6324_s29   ;;  %s4713_s28 = sphi %s4792_s28, %s6323_s28   ;;  %s4709_s27 = sphi %s4790_s27, %s6322_s27  }
   0xf   : > { %s3575_s12 = sadd.s32 4294967294, %s4729_s10   ;;  %s42_s13 = sadd.s32 1, %s4725_s9 }
  0x10   : > { %s49_s14 = sadd.s32 1, %s4717_s29  ;;  %p44_p0 = scmp.ge.s32.totalorder %s42_s13, 2 }
  0x11   : > { %p56_p1 = scmp.ne.s32.totalorder %s4717_s29, %s4713_s28  ;;  %p57_p2 = scmp.eq.s32.totalorder %s4729_s10, 0 }
  0x12   : > { %p62_p3 = scmp.ne.s32.totalorder %s4713_s28, %s4709_s27  ;;  %s6328_s13 = smov (%p44_p0, %s42_s13), 0 }
  0x13   : > { %6259 = sst [smem:[#allocation20_spill]] %s6328_s13  ;;  %p4831_p4 = por %p57_p2, %p56_p1 }
  0x14   : > { %p4835_p5 = scmp.eq.s32.totalorder %s3574_s11, 0  ;;  %s46_s17 = ssub.s32 %s4725_s9, %s6328_s13 }
  0x15   : > { %p214_p6 = scmp.eq.s32.totalorder %s3574_s11, 1  ;;  %p47_p7 = scmp.eq.s32.totalorder %s46_s17, 0 }
  0x16   : > { %p4843_p8 = por %p4835_p5, %p62_p3  ;;  %p220_p10 = scmp.eq.s32.totalorder %s3575_s12, 1 }
  0x17   : > { %p4847_p9 = por %p214_p6, %p56_p1  ;;  %p3576_p12 = scmp.ge.s32.totalorder %s4729_s10, 1 }
  0x18   : > { %s4852_s20 = scalar_select %p47_p7, %s4717_s29, %s49_s14  }
  0x19   : > { %p4854_p11 = por %p220_p10, %p62_p3  ;;  %p255_p13 = scmp.lt.s32.totalorder %s4729_s10, 3 }
  0x1a   : > { %6264 = sst [smem:[#allocation21_spill]] %s4852_s20  ;;  %s4731_s26 = smov [#allocation6]  }
  0x1b   : > { %s6265_s21 = scalar_select %p4854_p11, 1, 0 }
  0x1c   : > { %s6267_s1 = sld [smem:[#allocation23_spill]]  ;;  %p4863_p0 = pnand %p3576_p12, %p255_p13 }
  0x1d   : > { %6266 = sst [smem:[#allocation22_spill]] %s6265_s21  ;;  %s268_s11 = sshll.u32 %s4731_s26, 4  ;;  %s269_s11 = int_to_ptr.vmem [resolvable:$true] %s268_s11 }
  0x1e   : > { %p4173_p1 = pneg %p4863_p0  ;;  %s6269_s3 = sld [smem:[#allocation24_spill]] }
  0x1f   : > { %s6271_s5 = sld [smem:[#allocation25_spill]]  ;;  %s4733_s21 = smov 64  }
  0x20   : > { %p4874_p2 = pnand %p4173_p1, %p4835_p5  ;;  %s4734_s27 = smov 4  }
  0x21   : > { %s4735_s12 = smov [#allocation9]   ;;  %p6254_p3 = scmp.ge.s32.totalorder %s4729_s10, 2 }
  0x22   : > { %s266_s24 = sshll.u32 %s6267_s1, 4  ;;  %s4732_s1 = smov [#allocation8]   ;;  %s267_s24 = int_to_ptr.hbm [resolvable:$true] %s266_s24 }
  0x23   : > { %s285_s20 = sshll.u32 %s4732_s1, 4  ;;  %s302_s14 = sshll.u32 %s4735_s12, 4  ;;  %s286_s20 = int_to_ptr.vmem [resolvable:$true] %s285_s20  ;;  %s303_s14 = int_to_ptr.vmem [resolvable:$true] %s302_s14 }
  0x24   : > { %s283_s17 = sshll.u32 %s6269_s3, 4  ;;  %315 = sbr.rel (%p6254_p3) target bundleno = 79 (0x4f), region = 40  ;;  %s284_s17 = int_to_ptr.hbm [resolvable:$true] %s283_s17 }
  0x25   : > { %s300_s26 = sshll.u32 %s6271_s5, 4  ;;  %s301_s26 = int_to_ptr.hbm [resolvable:$true] %s300_s26 }
  0x26   : > { %4176 = dma.hbm_to_vmem [thread:$0]  (!%p4874_p2), %s267_s24, 1024, %s269_s11, [#allocation7], %s4733_s21, %s4733_s21, %s4734_s27  }
  0x27   : > { %4179 = dma.hbm_to_vmem [thread:$0]  (!%p4874_p2), %s284_s17, 1024, %s286_s20, [#allocation7], %s4733_s21, %s4733_s21, %s4734_s27  }
  0x28   : > { %4182 = dma.hbm_to_vmem [thread:$0]  (!%p4874_p2), %s301_s26, 1024, %s303_s14, [#allocation10], %s4733_s21, %s4733_s21, %s4734_s27  }
  0x29   : > { %318 = sbr.rel (!%p4831_p4) target bundleno = 79 (0x4f), region = 44  ;;  %s319_s1 = sand.u32 (%p4831_p4), 1, %s4717_s29  }
  0x2a   : > { %s324_s24 = smul.u32 (%p4831_p4), 3, %s4725_s9  ;;  %s4897_s17 = scalar_lea.sflag (%p4831_p4), [#allocation4], %s319_s1 }
  0x2b   : > { %s4155_s11 = smul.u32 (%p4831_p4), 384, %s319_s1 }
  0x2c   : > { %s325_s20 = ssub.s32 (%p4831_p4), 4, %s324_s24 }
  0x2d   : > { %p326_p6 = scmp.lt.s32.totalorder (%p4831_p4), %s325_s20, 3  ;;  %s323_s22 = scalar_lea.vmem (%p4831_p4), [#allocation3], %s4155_s11 }
  0x2f   : > { %s6330_s20 = smov (!%p326_p6, %s325_s20), 3 }
  0x30   : > { %s3803_s13 = sshll.u32 %s6330_s20, 7 }
  0x31   : > { %s330_s27 = ssub.s32 384, %s3803_s13 }
  0x32   : > { %s331_s21 = sshll.u32 %s330_s27, 4 }
  0x33   : > { %332 = vsyncadd %s4897_s17, %s331_s21  ;;  %p4900_p4 = scmp.ne.s32.totalorder %s3803_s13, 0  ;;  %s4106_s23 = smul.u32 384, %s4725_s9 }
  0x34   : > { %s4905_s26 = sshll.u32 %s323_s22, 4  ;;  %s3807_s12 = sshll.u32 %s6330_s20, 11  ;;  %s342_s26 = int_to_ptr.vmem [resolvable:$true] %s4905_s26 }
  0x35   : > { %s336_s1 = scalar_lea.hbm %s6242_s0, %s4106_s23  ;;  %s4548_s13 = sshrl.u32 %s3807_s12, 4 }
  0x36   : > { %s339_s11 = sshll.u32 %s336_s1, 4  ;;  %s4557_s5 = scalar_lea.hbm %s6242_s0, 512  ;;  %s4912_s11 = int_to_ptr.hbm [resolvable:$true] %s339_s11 }
  0x37   : > { %s4546_s27 = sshra.s32 %s4912_s11, 4  ;;  %s4547_s27 = int_to_ptr.hbm [resolvable:$true] %s4546_s27 }
  0x38   : > { %s4553_s21 = scalar_lea.hbm %s4547_s27, %s4548_s13 }
  0x39   : > { %p4554_p7 = scmp.ne.s32.totalorder %s4547_s27, %s4553_s21  ;;  %p4559_p13 = scmp.lt.s32.totalorder %s4557_s5, %s4553_s21 }
  0x3b   : > { %p4555_p10 = pnand %p4554_p7, %p4900_p4 }
  0x3d   : > { %p4556_p12 = pneg %p4555_p10 }
  0x3f   : > { %p4561_p1 = pnand %p4559_p13, %p4556_p12 }
  0x41   : > { %4564 = shalt.err (!%p4561_p1)
}
  0x42   : > { %s4565_s23 = sshra.s32 %s342_s26, 4  ;;  %s4736_s24 = smov [#allocation3]   ;;  %s4566_s23 = int_to_ptr.vmem [resolvable:$true] %s4565_s23 }
  0x43   : > { %s4572_s14 = scalar_lea.vmem %s4566_s23, %s4548_s13  ;;  %s4576_s1 = scalar_lea.vmem %s4736_s24, 768 }
  0x44   : > { %p4573_p2 = scmp.ne.s32.totalorder %s4566_s23, %s4572_s14  ;;  %p4578_p7 = scmp.lt.s32.totalorder %s4576_s1, %s4572_s14 }
  0x46   : > { %p4574_p6 = pnand %p4573_p2, %p4900_p4 }
  0x48   : > { %p4575_p3 = pneg %p4574_p6 }
  0x4a   : > { %p4580_p10 = pnand %p4578_p7, %p4575_p3 }
  0x4c   : > { %4583 = shalt.err (!%p4580_p10)
}
  0x4d   : > { %s4737_s3 = smov 128   ;;  %s4738_s5 = smov 8  }
  0x4e   : > { %347 = dma.hbm_to_vmem [thread:$0]  (%p4900_p4), %s4912_s11, %s3807_s12, %s342_s26, %s4897_s17, %s4737_s3, %s4737_s3, %s4738_s5  }
  0x4f PF: > { %353 = sbr.rel (%p4863_p0) target bundleno = 1501 (0x5dd), region = 48  ;;  %s4937_s27 = sand.u32 (!%p4863_p0), 1, %s4713_s28  }
  0x50   : > { %s4156_s13 = smul.u32 (!%p4863_p0), 384, %s4937_s27  ;;  %s356_s21 = scalar_lea.sflag (!%p4863_p0), [#allocation4], %s4937_s27 }
  0x52   : > { %s4943_s22 = scalar_lea.vmem (!%p4863_p0), [#allocation3], %s4156_s13 }
  0x54   : > { %4688 = dma.done.wait (%p4843_p8), %s356_s21, 6144  }
  0x55   : > { %4690 = vsyncadd (%p4843_p8), %s356_s21, 4294961152 }
  0x56   : > { %4692 = dma.done.wait (%p4835_p5), [#allocation7], 2048  }
  0x57   : > { %4694 = vsyncadd (%p4835_p5), [#allocation7], 4294965248 }
  0x58   : > { %4696 = dma.done.wait (%p4835_p5), [#allocation10], 1024  }
  0x59   : > { %4698 = vsyncadd (%p4835_p5), [#allocation10], 4294966272  ;;  %v3823_v0 = vld [vmem:[#allocation6 + $0x38] sm:$0xff]  ;;  %v3822_v1 = vld [vmem:[#allocation6 + $0x30] sm:$0xff]  ;;  %s4157_s26 = smul.u32 192, %s4937_s27  ;;  %s5623_s5 = scalar_lea.vmem [#allocation11], %s4156_s13 }
  0x5a   : > { %1280 = vmatpush.bf16.msra.mxu1 %v3823_v0  ;;  %v3821_v2 = vld [vmem:[#allocation6 + $0x28] sm:$0xff]  ;;  %v3820_v3 = vld [vmem:[#allocation6 + $0x20] sm:$0xff]  ;;  %v3819_v4 = vld [vmem:[#allocation6 + $0x18] sm:$0xff]  ;;  %s3362_s18 = scalar_lea.sflag [#allocation5], %s4937_s27  ;;  %s3374_s20 = smul.u32 (%p4847_p9), 3, %s4721_s30 }
  0x5b   : > { %v3818_v5 = vld [vmem:[#allocation6 + $0x10] sm:$0xff]  ;;  %v972_v6 = vld [vmem:[%s4943_s22] sm:$0xff]  ;;  %v973_v7 = vld [vmem:[%s4943_s22 + $0x8] sm:$0xff]  ;;  %s5324_s12 = scalar_lea.vmem [#allocation12], %s4157_s26 }
  0x5c   : > { %v1020_v8 = vpack.c.bf16 %v972_v6, %v972_v6  ;;  %v1021_v9 = vpack.c.bf16 %v973_v7, %v973_v7  ;;  %v3817_v10 = vld [vmem:[#allocation6 + $0x8] sm:$0xff]  ;;  %v3816_v13 = vld [vmem:[#allocation6] sm:$0xff]  ;;  %v974_v15 = vld [vmem:[%s4943_s22 + $0x10] sm:$0xff]  ;;  %s3376_s17 = ssub.s32 (%p4847_p9), 4, %s3374_s20 }
  0x5d   : > { %v975_v16 = vld [vmem:[%s4943_s22 + $0x18] sm:$0xff]  ;;  %v1022_v17 = vpack.c.bf16 %v974_v15, %v974_v15  ;;  %v976_v22 = vld [vmem:[%s4943_s22 + $0x20] sm:$0xff]  ;;  %v977_v23 = vld [vmem:[%s4943_s22 + $0x28] sm:$0xff]  ;;  %p3377_p5 = scmp.lt.s32.totalorder (%p4847_p9), %s3376_s17, 3 }
  0x5e   : > { %1281 = vmatpush.bf16.msra.mxu1 %v3822_v1  ;;  %v1136_v11 = vunpack.c.l.b16 %v1020_v8  ;;  %v1137_v12 = vunpack.c.l.b16 %v1021_v9  ;;  %v1023_v18 = vpack.c.bf16 %v975_v16, %v975_v16  ;;  %v1024_v24 = vpack.c.bf16 %v976_v22, %v976_v22  ;;  %v3831_v29 = vld [vmem:[#allocation8 + $0x38] sm:$0xff]  ;;  %v978_v30 = vld [vmem:[%s4943_s22 + $0x30] sm:$0xff]  ;;  %v3829_v35 = vld [vmem:[#allocation8 + $0x28] sm:$0xff] }
  0x5f   : > { %v1138_v19 = vunpack.c.l.b16 %v1022_v17  ;;  %v1025_v25 = vpack.c.bf16 %v977_v23, %v977_v23  ;;  %v979_v31 = vld [vmem:[%s4943_s22 + $0x38] sm:$0xff]  ;;  %1549 = vmatpush.bf16.msra.mxu2 %v3831_v29  ;;  %v3830_v32 = vld [vmem:[#allocation8 + $0x30] sm:$0xff]  ;;  %v1026_v33 = vpack.c.bf16 %v978_v30, %v978_v30  ;;  %v3828_v38 = vld [vmem:[#allocation8 + $0x20] sm:$0xff] }
  0x60   : > { %v4959_v14 = vpack.c.b16 %v1137_v12, %v1136_v11  ;;  %v1139_v20 = vunpack.c.l.b16 %v1023_v18  ;;  %v1140_v26 = vunpack.c.l.b16 %v1024_v24  ;;  %v1027_v34 = vpack.c.bf16 %v979_v31, %v979_v31  ;;  %v980_v40 = vld [vmem:[%s4943_s22 + $0x40] sm:$0xff]  ;;  %v981_v41 = vld [vmem:[%s4943_s22 + $0x48] sm:$0xff]  ;;  %v982_v47 = vld [vmem:[%s4943_s22 + $0x50] sm:$0xff] }
  0x61   : > { %v1141_v27 = vunpack.c.l.b16 %v1025_v25  ;;  %v1142_v36 = vunpack.c.l.b16 %v1026_v33  ;;  %v1028_v42 = vpack.c.bf16 %v980_v40, %v980_v40  ;;  %v1029_v43 = vpack.c.bf16 %v981_v41, %v981_v41  ;;  %v983_v48 = vld [vmem:[%s4943_s22 + $0x58] sm:$0xff]  ;;  %v3826_v55 = vld [vmem:[#allocation8 + $0x10] sm:$0xff]  ;;  %v3825_v56 = vld [vmem:[#allocation8 + $0x8] sm:$0xff] }
  0x62   : > { %1282 = vmatpush.bf16.msra.mxu1 %v3821_v2  ;;  %v4964_v21 = vpack.c.b16 %v1139_v20, %v1138_v19  ;;  %v1143_v37 = vunpack.c.l.b16 %v1027_v34  ;;  %v1030_v49 = vpack.c.bf16 %v982_v47, %v982_v47  ;;  %v1031_v50 = vpack.c.bf16 %v983_v48, %v983_v48  ;;  %v3827_v51 = vld [vmem:[#allocation8 + $0x18] sm:$0xff]  ;;  %v3824_v57 = vld [vmem:[#allocation8] sm:$0xff]  ;;  %v985_v59 = vld [vmem:[%s4943_s22 + $0x68] sm:$0xff] }
  0x63   : > { %v4969_v28 = vpack.c.b16 %v1141_v27, %v1140_v26  ;;  %1550 = vmatpush.bf16.msra.mxu2 %v3830_v32  ;;  %v1144_v44 = vunpack.c.l.b16 %v1028_v42  ;;  %v1145_v45 = vunpack.c.l.b16 %v1029_v43  ;;  %v984_v58 = vld [vmem:[%s4943_s22 + $0x60] sm:$0xff]  ;;  %v1033_v61 = vpack.c.bf16 %v985_v59, %v985_v59  ;;  %v986_v1 = vld [vmem:[%s4943_s22 + $0x70] sm:$0xff]  ;;  %v987_v2 = vld [vmem:[%s4943_s22 + $0x78] sm:$0xff] }
  0x64   : > { %v4974_v39 = vpack.c.b16 %v1143_v37, %v1142_v36  ;;  %v1146_v52 = vunpack.c.l.b16 %v1030_v49  ;;  %v1147_v53 = vunpack.c.l.b16 %v1031_v50  ;;  %v1032_v60 = vpack.c.bf16 %v984_v58, %v984_v58  ;;  %v5000_v9 = vld [vmem:[%s6244_s2] ss:$0 sm:$0xff]  ;;  %v989_v17 = vld [vmem:[%s4943_s22 + $0x88] sm:$0xff]  ;;  %v990_v32 = vld [vmem:[%s4943_s22 + $0x90] sm:$0xff] }
  0x65   : > { %v4979_v46 = vpack.c.b16 %v1145_v45, %v1144_v44  ;;  %v1149_v63 = vunpack.c.l.b16 %v1033_v61  ;;  %v988_v16 = vld [vmem:[%s4943_s22 + $0x80] sm:$0xff]  ;;  %v1037_v19 = vpack.c.bf16 %v989_v17, %v989_v17  ;;  %v991_v33 = vld [vmem:[%s4943_s22 + $0x98] sm:$0xff]  ;;  %v1038_v34 = vpack.c.bf16 %v990_v32, %v990_v32 }
  0x66   : > { %1283 = vmatpush.bf16.msra.mxu1 %v3820_v3  ;;  %v4984_v54 = vpack.c.b16 %v1147_v53, %v1146_v52  ;;  %v1148_v62 = vunpack.c.l.b16 %v1032_v60  ;;  %v1034_v3 = vpack.c.bf16 %v986_v1, %v986_v1  ;;  %v1036_v18 = vpack.c.bf16 %v988_v16, %v988_v16  ;;  %v3815_v49 = vld [vmem:[#allocation9 + $0x38] sm:$0xff]  ;;  %v3813_v52 = vld [vmem:[#allocation9 + $0x28] sm:$0xff] }
  0x67   : > { %1551 = vmatpush.bf16.msra.mxu2 %v3829_v35  ;;  %v1153_v23 = vunpack.c.l.b16 %v1037_v19  ;;  %v1039_v35 = vpack.c.bf16 %v991_v33, %v991_v33  ;;  %v1154_v37 = vunpack.c.l.b16 %v1038_v34  ;;  %745 = vmatpush.bf16.msra.mxu0 %v3815_v49  ;;  %v3811_v61 = vld [vmem:[#allocation9 + $0x18] sm:$0xff]  ;;  %v3809_v1 = vld [vmem:[#allocation9 + $0x8] sm:$0xff]  ;;  %v994_v33 = vld [vmem:[%s4943_s22 + $0xb0] sm:$0xff] }
  0x68   : > { %v4989_v0 = vpack.c.b16 %v1149_v63, %v1148_v62  ;;  %v1152_v22 = vunpack.c.l.b16 %v1036_v18  ;;  %v3810_v63 = vld [vmem:[#allocation9 + $0x10] sm:$0xff]  ;;  %v995_v34 = vld [vmem:[%s4943_s22 + $0xb8] sm:$0xff]  ;;  %v996_v49 = vld [vmem:[%s4943_s22 + $0xc0] sm:$0xff] }
  0x6a   : > { %1284 = vmatpush.bf16.msra.mxu1 %v3819_v4  ;;  %v1035_v4 = vpack.c.bf16 %v987_v2, %v987_v2  ;;  %v5006_v25 = vpack.c.b16 %v1153_v23, %v1152_v22 }
  0x6b   : > { %1552 = vmatpush.bf16.msra.mxu2 %v3828_v38  ;;  %v1155_v38 = vunpack.c.l.b16 %v1039_v35  ;;  %v1042_v35 = vpack.c.bf16 %v994_v33, %v994_v33 }
  0x6c   : > { %v1151_v6 = vunpack.c.l.b16 %v1035_v4 }
  0x6d   : > { %v5013_v41 = vpack.c.b16 %v1155_v38, %v1154_v37  ;;  %v1158_v38 = vunpack.c.l.b16 %v1042_v35 }
  0x6e   : > { %1285 = vmatpush.bf16.msra.mxu1 %v3818_v5  ;;  %v1150_v5 = vunpack.c.l.b16 %v1034_v3 }
  0x6f   : > { %1553 = vmatpush.bf16.msra.mxu2 %v3827_v51  ;;  %v3814_v51 = vld [vmem:[#allocation9 + $0x30] sm:$0xff] }
  0x70   : > { %v4994_v8 = vpack.c.b16 %v1151_v6, %v1150_v5  ;;  %746 = vmatpush.bf16.msra.mxu0 %v3814_v51  ;;  %v3808_v5 = vld [vmem:[#allocation9] sm:$0xff]  ;;  %v1044_v51 = vpack.c.bf16 %v996_v49, %v996_v49 }
  0x72   : > { %1286 = vmatpush.bf16.msra.mxu1 %v3817_v10 }
  0x73   : > { %1554 = vmatpush.bf16.msra.mxu2 %v3826_v55 }
  0x74   : > { %747 = vmatpush.bf16.msra.mxu0 %v3813_v52 }
  0x76   : > { %1287 = vmatpush.bf16.msra.mxu1 %v3816_v13 }
  0x77   : > { %1555 = vmatpush.bf16.msra.mxu2 %v3825_v56 }
  0x79   : > { %1288 = vmatmul.bf16.vlgmr.msra.gmra.mxu1 %v4959_v14 }
  0x7b   : > { %1556 = vmatpush.bf16.msra.mxu2 %v3824_v57  ;;  %v3812_v57 = vld [vmem:[#allocation9 + $0x20] sm:$0xff] }
  0x7c   : > { %748 = vmatpush.bf16.msra.mxu0 %v3812_v57 }
  0x80   : > { %749 = vmatpush.bf16.msra.mxu0 %v3811_v61 }
  0x84   : > { %750 = vmatpush.bf16.msra.mxu0 %v3810_v63 }
  0x88   : > { %751 = vmatpush.bf16.msra.mxu0 %v3809_v1 }
  0x89   : > { %1293 = vmatmul.bf16.gmra.mxu1 %v4964_v21 }
  0x8c   : > { %752 = vmatpush.bf16.msra.mxu0 %v3808_v5  ;;  %v999_v5 = vld [vmem:[%s4943_s22 + $0xd8] sm:$0xff] }
  0x8f   : > { %753 = vmatmul.bf16.vlgmr.msra.gmra.mxu0 %v4959_v14 }
  0x99   : > { %1298 = vmatmul.bf16.gmra.mxu1 %v4969_v28 }
  0x9f   : > { %758 = vmatmul.bf16.gmra.mxu0 %v4964_v21 }
  0xa9   : > { %1303 = vmatmul.bf16.gmra.mxu1 %v4974_v39 }
  0xaf   : > { %763 = vmatmul.bf16.gmra.mxu0 %v4969_v28 }
  0xb9   : > { %1308 = vmatmul.bf16.gmra.mxu1 %v4979_v46 }
  0xbf   : > { %768 = vmatmul.bf16.gmra.mxu0 %v4974_v39  ;;  %v5047_v39 = vld [vmem:[%s6246_s4] ss:$0 sm:$0xff] }
  0xc9   : > { %1313 = vmatmul.bf16.gmra.mxu1 %v4984_v54 }
  0xcf   : > { %773 = vmatmul.bf16.gmra.mxu0 %v4979_v46 }
  0xd9   : > { %1318 = vmatmul.bf16.gmra.mxu1 %v4989_v0 }
  0xdf   : > { %778 = vmatmul.bf16.gmra.mxu0 %v4984_v54 }
  0xe9   : > { %1323 = vmatmul.bf16.gmra.mxu1 %v4994_v8 }
  0xef   : > { %783 = vmatmul.bf16.gmra.mxu0 %v4989_v0 }
  0xf6   : > { %v1289_v7 = vpop.f32.mrf.mxu1 }
  0xf7   : > { %v1290_v10 = vadd.f32 %v5000_v9, %v1289_v7 }
  0xf9   : > { %v1409_v13 = vmax.f32 %v1290_v10, 0.0  ;;  %1328 = vmatmul.bf16.gmra.mxu1 %v5006_v25 }
  0xfe   : > { %v1291_v11 = vpop.f32.mrf.mxu1 }
  0xff   : > { %v1292_v12 = vadd.f32 %v5000_v9, %v1291_v11  ;;  %v992_v11 = vld [vmem:[%s4943_s22 + $0xa0] sm:$0xff]  ;;  %788 = vmatmul.bf16.gmra.mxu0 %v4994_v8 }
 0x101   : > { %v1410_v15 = vmax.f32 %v1292_v12, 0.0  ;;  %v993_v12 = vld [vmem:[%s4943_s22 + $0xa8] sm:$0xff] }
 0x103   : > { %v1457_v20 = vpack.c.bf16 %v1410_v15, %v1409_v13  ;;  %v1040_v13 = vpack.c.bf16 %v992_v11, %v992_v11  ;;  %v1041_v15 = vpack.c.bf16 %v993_v12, %v993_v12 }
 0x105   : > { %1557 = vmatmul.bf16.vlgmr.msra.gmra.mxu2 %v1457_v20  ;;  %v1156_v16 = vunpack.c.l.b16 %v1040_v13  ;;  %v1157_v17 = vunpack.c.l.b16 %v1041_v15 }
 0x106   : > { %v1294_v24 = vpop.f32.mrf.mxu1 }
 0x107   : > { %v1295_v26 = vadd.f32 %v5000_v9, %v1294_v24  ;;  %v5025_v18 = vpack.c.b16 %v1157_v17, %v1156_v16 }
 0x109   : > { %v1411_v30 = vmax.f32 %v1295_v26, 0.0  ;;  %1333 = vmatmul.bf16.gmra.mxu1 %v5013_v41 }
 0x10c   : > { %v754_v8 = vpop.f32.mrf.mxu0 }
 0x10e   : > { %v1296_v27 = vpop.f32.mrf.mxu1 }
 0x10f   : > { %v1297_v29 = vadd.f32 %v5000_v9, %v1296_v27  ;;  %793 = vmatmul.bf16.gmra.mxu0 %v5006_v25 }
 0x111   : > { %v1412_v31 = vmax.f32 %v1297_v29, 0.0 }
 0x113   : > { %v1458_v36 = vpack.c.bf16 %v1412_v31, %v1411_v30 }
 0x115   : > { %1562 = vmatmul.bf16.gmra.mxu2 %v1458_v36  ;;  %v1043_v36 = vpack.c.bf16 %v995_v34, %v995_v34 }
 0x116   : > { %v1299_v40 = vpop.f32.mrf.mxu1 }
 0x117   : > { %v1300_v42 = vadd.f32 %v5000_v9, %v1299_v40  ;;  %v1159_v40 = vunpack.c.l.b16 %v1043_v36 }
 0x119   : > { %v1413_v45 = vmax.f32 %v1300_v42, 0.0  ;;  %1338 = vmatmul.bf16.gmra.mxu1 %v5025_v18 }
 0x11e   : > { %v1301_v43 = vpop.f32.mrf.mxu1 }
 0x11f   : > { %v1302_v44 = vadd.f32 %v5000_v9, %v1301_v43  ;;  %v5036_v43 = vpack.c.b16 %v1159_v40, %v1158_v38  ;;  %798 = vmatmul.bf16.gmra.mxu0 %v5013_v41 }
 0x121   : > { %v1414_v47 = vmax.f32 %v1302_v44, 0.0 }
 0x123   : > { %v1459_v48 = vpack.c.bf16 %v1414_v47, %v1413_v45 }
 0x125   : > { %1567 = vmatmul.bf16.gmra.mxu2 %v1459_v48 }
 0x126   : > { %v1304_v50 = vpop.f32.mrf.mxu1 }
 0x127   : > { %v1305_v53 = vadd.f32 %v5000_v9, %v1304_v50  ;;  %v997_v50 = vld [vmem:[%s4943_s22 + $0xc8] sm:$0xff] }
 0x128   : > { %v1045_v52 = vpack.c.bf16 %v997_v50, %v997_v50 }
 0x129   : > { %v1415_v58 = vmax.f32 %v1305_v53, 0.0  ;;  %1343 = vmatmul.bf16.gmra.mxu1 %v5036_v43 }
 0x12e   : > { %v1306_v55 = vpop.f32.mrf.mxu1 }
 0x12f   : > { %v1307_v56 = vadd.f32 %v5000_v9, %v1306_v55  ;;  %v1160_v55 = vunpack.c.l.b16 %v1044_v51  ;;  %803 = vmatmul.bf16.gmra.mxu0 %v5025_v18 }
 0x131   : > { %v1416_v59 = vmax.f32 %v1307_v56, 0.0  ;;  %v1161_v56 = vunpack.c.l.b16 %v1045_v52 }
 0x133   : > { %v1460_v60 = vpack.c.bf16 %v1416_v59, %v1415_v58  ;;  %v5049_v58 = vpack.c.b16 %v1161_v56, %v1160_v55 }
 0x135   : > { %1572 = vmatmul.bf16.gmra.mxu2 %v1460_v60 }
 0x136   : > { %v1309_v62 = vpop.f32.mrf.mxu1 }
 0x137   : > { %v1310_v2 = vadd.f32 %v5000_v9, %v1309_v62 }
 0x139   : > { %v1417_v6 = vmax.f32 %v1310_v2, 0.0  ;;  %1348 = vmatmul.bf16.gmra.mxu1 %v5049_v58 }
 0x13e   : > { %v1311_v3 = vpop.f32.mrf.mxu1 }
 0x13f   : > { %v1312_v4 = vadd.f32 %v5000_v9, %v1311_v3  ;;  %808 = vmatmul.bf16.gmra.mxu0 %v5036_v43 }
 0x141   : > { %v1418_v7 = vmax.f32 %v1312_v4, 0.0  ;;  %v998_v4 = vld [vmem:[%s4943_s22 + $0xd0] sm:$0xff] }
 0x143   : > { %v1461_v10 = vpack.c.bf16 %v1418_v7, %v1417_v6  ;;  %v1046_v6 = vpack.c.bf16 %v998_v4, %v998_v4  ;;  %v1047_v7 = vpack.c.bf16 %v999_v5, %v999_v5 }
 0x145   : > { %1577 = vmatmul.bf16.gmra.mxu2 %v1461_v10  ;;  %v1162_v11 = vunpack.c.l.b16 %v1046_v6  ;;  %v1163_v12 = vunpack.c.l.b16 %v1047_v7 }
 0x146   : > { %v1314_v19 = vpop.f32.mrf.mxu1 }
 0x147   : > { %v1315_v20 = vadd.f32 %v5000_v9, %v1314_v19  ;;  %v5065_v15 = vpack.c.b16 %v1163_v12, %v1162_v11 }
 0x149   : > { %v1419_v23 = vmax.f32 %v1315_v20, 0.0  ;;  %1353 = vmatmul.bf16.gmra.mxu1 %v5065_v15 }
 0x14e   : > { %v1316_v22 = vpop.f32.mrf.mxu1 }
 0x14f   : > { %v1317_v14 = vadd.f32 %v5000_v9, %v1316_v22 }
 0x151   : > { %v1420_v24 = vmax.f32 %v1317_v14, 0.0 }
 0x153   : > { %v1462_v26 = vpack.c.bf16 %v1420_v24, %v1419_v23 }
 0x155   : > { %1582 = vmatmul.bf16.gmra.mxu2 %v1462_v26  ;;  %v1000_v26 = vld [vmem:[%s4943_s22 + $0xe0] sm:$0xff] }
 0x156   : > { %v1319_v27 = vpop.f32.mrf.mxu1 }
 0x157   : > { %v1320_v29 = vadd.f32 %v5000_v9, %v1319_v27  ;;  %v1001_v27 = vld [vmem:[%s4943_s22 + $0xe8] sm:$0xff] }
 0x159   : > { %v1421_v31 = vmax.f32 %v1320_v29, 0.0  ;;  %v1048_v29 = vpack.c.bf16 %v1000_v26, %v1000_v26 }
 0x15e   : > { %v1321_v30 = vpop.f32.mrf.mxu1 }
 0x15f   : > { %v1322_v32 = vadd.f32 %v5000_v9, %v1321_v30  ;;  %v1049_v30 = vpack.c.bf16 %v1001_v27, %v1001_v27 }
 0x161   : > { %v1422_v21 = vmax.f32 %v1322_v32, 0.0  ;;  %v1164_v32 = vunpack.c.l.b16 %v1048_v29 }
 0x163   : > { %v1463_v37 = vpack.c.bf16 %v1422_v21, %v1421_v31  ;;  %v1165_v21 = vunpack.c.l.b16 %v1049_v30 }
 0x165   : > { %1587 = vmatmul.bf16.gmra.mxu2 %v1463_v37  ;;  %v5081_v33 = vpack.c.b16 %v1165_v21, %v1164_v32 }
 0x166   : > { %v1324_v42 = vpop.f32.mrf.mxu1 }
 0x167   : > { %v1325_v28 = vadd.f32 %v5000_v9, %v1324_v42  ;;  %1358 = vmatmul.bf16.gmra.mxu1 %v5081_v33 }
 0x169   : > { %v1423_v45 = vmax.f32 %v1325_v28, 0.0 }
 0x16e   : > { %v1326_v44 = vpop.f32.mrf.mxu1 }
 0x16f   : > { %v1327_v47 = vadd.f32 %v5000_v9, %v1326_v44 }
 0x171   : > { %v1424_v48 = vmax.f32 %v1327_v47, 0.0 }
 0x173   : > { %v1464_v53 = vpack.c.bf16 %v1424_v48, %v1423_v45  ;;  %v5111_v45 = vld [vmem:[%s6248_s6] ss:$0 sm:$0xff]  ;;  %v756_v48 = vpop.f32.mrf.mxu0  ;;  %813 = vmatmul.bf16.gmra.mxu0 %v5049_v58 }
 0x174   : > { %v755_v47 = vadd.f32 %v5111_v45, %v754_v8  ;;  %v757_v25 = vadd.f32 %v5111_v45, %v756_v48 }
 0x175   : > { %1592 = vmatmul.bf16.gmra.mxu2 %v1464_v53 }
 0x176   : > { %v1329_v57 = vpop.f32.mrf.mxu1  ;;  %v3869_v50 = vpack.c.bf16 %v757_v25, %v755_v47 }
 0x177   : > { %v1330_v61 = vadd.f32 %v5000_v9, %v1329_v57  ;;  %v1002_v57 = vld [vmem:[%s4943_s22 + $0xf0] sm:$0xff] }
 0x178   : > { %3870 = vst [vmem:[#allocation2 + $0xb0] sm:$0xff] %v3869_v50  }
 0x179   : > { %v1425_v63 = vmax.f32 %v1330_v61, 0.0  ;;  %v1050_v61 = vpack.c.bf16 %v1002_v57, %v1002_v57 }
 0x17b   : > { %v759_v51 = vpop.f32.mrf.mxu0 }
 0x17e   : > { %v1331_v62 = vpop.f32.mrf.mxu1 }
 0x17f   : > { %v1332_v1 = vadd.f32 %v5000_v9, %v1331_v62 }
 0x181   : > { %v1426_v3 = vmax.f32 %v1332_v1, 0.0 }
 0x183   : > { %v1465_v10 = vpack.c.bf16 %v1426_v3, %v1425_v63  ;;  %v760_v63 = vadd.f32 %v5111_v45, %v759_v51  ;;  %v1166_v3 = vunpack.c.l.b16 %v1050_v61 }
 0x185   : > { %1597 = vmatmul.bf16.gmra.mxu2 %v1465_v10 }
 0x186   : > { %v1334_v13 = vpop.f32.mrf.mxu1 }
 0x187   : > { %v1335_v19 = vadd.f32 %v5000_v9, %v1334_v13 }
 0x188   : > { %v1558_v59 = vpop.f32.mrf.mxu2 }
 0x189   : > { %v5054_v60 = vadd.f32 %v5047_v39, %v1558_v59  ;;  %v1427_v22 = vmax.f32 %v1335_v19, 0.0  ;;  %v1003_v59 = vld [vmem:[%s4943_s22 + $0xf8] sm:$0xff] }
 0x18a   : > { %v1051_v62 = vpack.c.bf16 %v1003_v59, %v1003_v59 }
 0x18b   : > { %1678 = vmax.xlane.f32.xlu0 %v5054_v60 }
 0x18c   : > { %v1167_v4 = vunpack.c.l.b16 %v1051_v62 }
 0x18e   : > { %v1336_v20 = vpop.f32.mrf.mxu1  ;;  %v5122_v6 = vpack.c.b16 %v1167_v4, %v1166_v3 }
 0x18f   : > { %v1337_v23 = vadd.f32 %v5000_v9, %v1336_v20 }
 0x190   : > { %v1560_v2 = vpop.f32.mrf.mxu2  ;;  %1363 = vmatmul.bf16.gmra.mxu1 %v5122_v6 }
 0x191   : > { %v5062_v46 = vadd.f32 %v5047_v39, %v1560_v2  ;;  %v1428_v24 = vmax.f32 %v1337_v23, 0.0  ;;  %v761_v2 = vpop.f32.mrf.mxu0  ;;  %818 = vmatmul.bf16.gmra.mxu0 %v5065_v15 }
 0x192   : > { %v762_v18 = vadd.f32 %v5111_v45, %v761_v2 }
 0x193   : > { %1680 = vmax.xlane.f32.xlu0 %v5062_v46  ;;  %v1466_v31 = vpack.c.bf16 %v1428_v24, %v1427_v22  ;;  %v1005_v24 = vld [vmem:[%s4943_s22 + $0x108] sm:$0xff] }
 0x194   : > { %v3874_v7 = vpack.c.bf16 %v762_v18, %v760_v63  ;;  %v1053_v27 = vpack.c.bf16 %v1005_v24, %v1005_v24 }
 0x195   : > { %1602 = vmatmul.bf16.gmra.mxu2 %v1466_v31 }
 0x196   : > { %v1339_v49 = vpop.f32.mrf.mxu1  ;;  %4107 = vst [vmem:[#allocation2] sm:$0xff] %v3874_v7   ;;  %v1169_v21 = vunpack.c.l.b16 %v1053_v27 }
 0x197   : > { %v1340_v41 = vadd.f32 %v5000_v9, %v1339_v49 }
 0x198   : > { %v1563_v16 = vpop.f32.mrf.mxu2 }
 0x199   : > { %v5070_v17 = vadd.f32 %v5047_v39, %v1563_v16  ;;  %v1429_v55 = vmax.f32 %v1340_v41, 0.0  ;;  %v764_v11 = vpop.f32.mrf.mxu0 }
 0x19a   : > { %v765_v43 = vadd.f32 %v5111_v45, %v764_v11 }
 0x19b   : > { %1682 = vmax.xlane.f32.xlu1 %v5070_v17 }
 0x19e   : > { %v1341_v52 = vpop.f32.mrf.mxu1 }
 0x19f   : > { %v1342_v53 = vadd.f32 %v5000_v9, %v1341_v52 }
 0x1a0   : > { %v1565_v14 = vpop.f32.mrf.mxu2 }
 0x1a1   : > { %v5078_v54 = vadd.f32 %v5047_v39, %v1565_v14  ;;  %v1430_v56 = vmax.f32 %v1342_v53, 0.0  ;;  %v1004_v14 = vld [vmem:[%s4943_s22 + $0x100] sm:$0xff]  ;;  %v766_v31 = vpop.f32.mrf.mxu0  ;;  %v1006_v53 = vld [vmem:[%s4943_s22 + $0x110] sm:$0xff]  ;;  %823 = vmatmul.bf16.gmra.mxu0 %v5081_v33 }
 0x1a2   : > { %v1052_v26 = vpack.c.bf16 %v1004_v14, %v1004_v14  ;;  %v1054_v57 = vpack.c.bf16 %v1006_v53, %v1006_v53 }
 0x1a3   : > { %1684 = vmax.xlane.f32.xlu1 %v5078_v54  ;;  %v1467_v1 = vpack.c.bf16 %v1430_v56, %v1429_v55  ;;  %v1007_v55 = vld [vmem:[%s4943_s22 + $0x118] sm:$0xff] }
 0x1a4   : > { %v1168_v32 = vunpack.c.l.b16 %v1052_v26  ;;  %v1055_v59 = vpack.c.bf16 %v1007_v55, %v1007_v55  ;;  %v1170_v3 = vunpack.c.l.b16 %v1054_v57 }
 0x1a5   : > { %1607 = vmatmul.bf16.gmra.mxu2 %v1467_v1 }
 0x1a6   : > { %v1344_v5 = vpop.f32.mrf.mxu1  ;;  %v1171_v4 = vunpack.c.l.b16 %v1055_v59 }
 0x1a7   : > { %v1345_v10 = vadd.f32 %v5000_v9, %v1344_v5 }
 0x1a8   : > { %v1568_v34 = vpop.f32.mrf.mxu2  ;;  %v5155_v7 = vpack.c.b16 %v1171_v4, %v1170_v3 }
 0x1a9   : > { %v5086_v35 = vadd.f32 %v5047_v39, %v1568_v34  ;;  %v1431_v13 = vmax.f32 %v1345_v10, 0.0  ;;  %v767_v34 = vadd.f32 %v5111_v45, %v766_v31  ;;  %v769_v49 = vpop.f32.mrf.mxu0 }
 0x1aa   : > { %v770_v1 = vadd.f32 %v5111_v45, %v769_v49 }
 0x1ab   : > { %1686 = vmax.xlane.f32.xlu2 %v5086_v35 }
 0x1ae   : > { %v1346_v12 = vpop.f32.mrf.mxu1 }
 0x1af   : > { %v1347_v16 = vadd.f32 %v5000_v9, %v1346_v12 }
 0x1b0   : > { %v1570_v36 = vpop.f32.mrf.mxu2 }
 0x1b1   : > { %v5090_v37 = vadd.f32 %v5047_v39, %v1570_v36  ;;  %v1432_v23 = vmax.f32 %v1347_v16, 0.0 }
 0x1b3   : > { %1688 = vmax.xlane.f32.xlu2 %v5090_v37  ;;  %v1468_v30 = vpack.c.bf16 %v1432_v23, %v1431_v13 }
 0x1b5   : > { %1612 = vmatmul.bf16.gmra.mxu2 %v1468_v30 }
 0x1b6   : > { %v1349_v36 = vpop.f32.mrf.mxu1 }
 0x1b7   : > { %v1350_v25 = vadd.f32 %v5000_v9, %v1349_v36 }
 0x1b8   : > { %v1573_v38 = vpop.f32.mrf.mxu2 }
 0x1b9   : > { %v5095_v40 = vadd.f32 %v5047_v39, %v1573_v38  ;;  %v5133_v38 = vpack.c.b16 %v1169_v21, %v1168_v32  ;;  %v1433_v41 = vmax.f32 %v1350_v25, 0.0 }
 0x1bb   : > { %1690 = vmax.xlane.f32.xlu0 %v5095_v40  ;;  %1368 = vmatmul.bf16.gmra.mxu1 %v5133_v38 }
 0x1be   : > { %v1351_v50 = vpop.f32.mrf.mxu1 }
 0x1bf   : > { %v1352_v51 = vadd.f32 %v5000_v9, %v1351_v50 }
 0x1c0   : > { %v1575_v0 = vpop.f32.mrf.mxu2 }
 0x1c1   : > { %v5099_v42 = vadd.f32 %v5047_v39, %v1575_v0 }
 0x1c3   : > { %1692 = vmax.xlane.f32.xlu1 %v5099_v42 }
 0x1c6   : > { %v1354_v5 = vpop.f32.mrf.mxu1 }
 0x1c8   : > { %v1578_v28 = vpop.f32.mrf.mxu2 }
 0x1c9   : > { %v5104_v44 = vadd.f32 %v5047_v39, %v1578_v28 }
 0x1cb   : > { %1694 = vmax.xlane.f32.xlu1 %v5104_v44  ;;  %1373 = vmatmul.bf16.gmra.mxu1 %v5155_v7 }
 0x1ce   : > { %v1356_v23 = vpop.f32.mrf.mxu1 }
 0x1cf   : > { %v1357_v14 = vadd.f32 %v5000_v9, %v1356_v23 }
 0x1d0   : > { %v1580_v20 = vpop.f32.mrf.mxu2 }
 0x1d1   : > { %v5147_v56 = vadd.f32 %v5047_v39, %v1580_v20  ;;  %v1355_v20 = vadd.f32 %v5000_v9, %v1354_v5  ;;  %v1436_v27 = vmax.f32 %v1357_v14, 0.0 }
 0x1d8   : > { %v1583_v8 = vpop.f32.mrf.mxu2 }
 0x1d9   : > { %v5161_v13 = vadd.f32 %v5047_v39, %v1583_v8 }
 0x1e0   : > { %v1585_v63 = vpop.f32.mrf.mxu2 }
 0x1e1   : > { %v5173_v30 = vadd.f32 %v5047_v39, %v1585_v63 }
 0x1e8   : > { %v1588_v15 = vpop.f32.mrf.mxu2 }
 0x1f0   : > { %v1590_v49 = vpop.f32.mrf.mxu2 }
 0x1f1   : > { %v5199_v3 = vadd.f32 %v5047_v39, %v1590_v49 }
 0x1fe   : > { %v1679_v19 = vpop.xlane.xlu0 %1678 }
 0x1ff   : > { %v1774_v22 = vsub.f32 %v5054_v60, %v1679_v19  ;;  %v3879_v60 = vpack.c.bf16 %v767_v34, %v765_v43  ;;  %v1009_v43 = vld [vmem:[%s4943_s22 + $0x128] sm:$0xff] }
 0x200   : > { %v1057_v32 = vpack.c.bf16 %v1009_v43, %v1009_v43 }
 0x201   : > { %v1822_v29 = vmul.f32 1.442695, %v1774_v22  ;;  %4108 = vst [vmem:[#allocation2 + $0x10] sm:$0xff] %v3879_v60  }
 0x203   : > { %4259 = vpow2.f32 %v1822_v29  ;;  %v1008_v29 = vld [vmem:[%s4943_s22 + $0x120] sm:$0xff] }
 0x204   : > { %v1056_v31 = vpack.c.bf16 %v1008_v29, %v1008_v29 }
 0x206   : > { %v1681_v0 = vpop.xlane.xlu0 %1680 }
 0x207   : > { %v1775_v28 = vsub.f32 %v5062_v46, %v1681_v0  ;;  %v1434_v46 = vmax.f32 %v1352_v51, 0.0 }
 0x209   : > { %v5138_v47 = vpop.eup %4259  ;;  %v1824_v48 = vmul.f32 1.442695, %v1775_v28  ;;  %v1469_v2 = vpack.c.bf16 %v1434_v46, %v1433_v41  ;;  %v1173_v28 = vunpack.c.l.b16 %v1057_v32 }
 0x20a   : > { %1918 = vadd.xlane.f32.xlu2 %v5138_v47 }
 0x20b   : > { %4261 = vpow2.f32 %v1824_v48  ;;  %1617 = vmatmul.bf16.gmra.mxu2 %v1469_v2  ;;  %v1359_v48 = vpop.f32.mrf.mxu1  ;;  %v1010_v2 = vld [vmem:[%s4943_s22 + $0x130] sm:$0xff] }
 0x20c   : > { %v1360_v53 = vadd.f32 %v5000_v9, %v1359_v48  ;;  %v1058_v4 = vpack.c.bf16 %v1010_v2, %v1010_v2  ;;  %v3834_v2 = vld [vmem:[#allocation2 + $0x10] sm:$0xff] }
 0x20e   : > { %v1683_v58 = vpop.xlane.xlu1 %1682  ;;  %v1437_v57 = vmax.f32 %v1360_v53, 0.0 }
 0x20f   : > { %v1776_v52 = vsub.f32 %v5070_v17, %v1683_v58  ;;  %v771_v17 = vpop.f32.mrf.mxu0  ;;  %v5187_v58 = vadd.f32 %v5047_v39, %v1588_v15  ;;  %828 = vmatmul.bf16.gmra.mxu0 %v5122_v6 }
 0x210   : > { %v772_v18 = vadd.f32 %v5111_v45, %v771_v17  ;;  %v1011_v17 = vld [vmem:[%s4943_s22 + $0x138] sm:$0xff] }
 0x211   : > { %v5149_v61 = vpop.eup %4261  ;;  %v1826_v62 = vmul.f32 1.442695, %v1776_v52 }
 0x212   : > { %1696 = vmax.xlane.f32.xlu2 %v5147_v56  ;;  %1920 = vadd.xlane.f32.xlu0 %v5149_v61  ;;  %v3884_v10 = vpack.c.bf16 %v772_v18, %v770_v1  ;;  %v1059_v18 = vpack.c.bf16 %v1011_v17, %v1011_v17 }
 0x213   : > { %4263 = vpow2.f32 %v1826_v62  ;;  %v1361_v33 = vpop.f32.mrf.mxu1  ;;  %v1593_v62 = vpop.f32.mrf.mxu2 }
 0x214   : > { %4109 = vst [vmem:[#allocation2 + $0x48] sm:$0xff] %v3884_v10  }
 0x216   : > { %v1685_v11 = vpop.xlane.xlu1 %1684 }
 0x217   : > { %v1777_v12 = vsub.f32 %v5078_v54, %v1685_v11  ;;  %v774_v22 = vpop.f32.mrf.mxu0  ;;  %v1435_v54 = vmax.f32 %v1355_v20, 0.0  ;;  %v1175_v20 = vunpack.c.l.b16 %v1059_v18 }
 0x218   : > { %v775_v36 = vadd.f32 %v5111_v45, %v774_v22 }
 0x219   : > { %v5163_v16 = vpop.eup %4263  ;;  %v1828_v19 = vmul.f32 1.442695, %v1777_v12  ;;  %v1470_v60 = vpack.c.bf16 %v1436_v27, %v1435_v54 }
 0x21a   : > { %1698 = vmax.xlane.f32.xlu2 %v5161_v13  ;;  %1922 = vadd.xlane.f32.xlu0 %v5163_v16 }
 0x21b   : > { %4265 = vpow2.f32 %v1828_v19  ;;  %1622 = vmatmul.bf16.gmra.mxu2 %v1470_v60  ;;  %v1595_v27 = vpop.f32.mrf.mxu2 }
 0x21c   : > { %v5221_v6 = vadd.f32 %v5047_v39, %v1595_v27 }
 0x21e   : > { %v1687_v24 = vpop.xlane.xlu2 %1686 }
 0x21f   : > { %v1778_v26 = vsub.f32 %v5086_v35, %v1687_v24  ;;  %v776_v0 = vpop.f32.mrf.mxu0  ;;  %v1172_v35 = vunpack.c.l.b16 %v1056_v31  ;;  %v5213_v24 = vadd.f32 %v5047_v39, %v1593_v62  ;;  %833 = vmatmul.bf16.gmra.mxu0 %v5133_v38 }
 0x220   : > { %v777_v8 = vadd.f32 %v5111_v45, %v776_v0 }
 0x221   : > { %v5175_v21 = vpop.eup %4265  ;;  %v1830_v34 = vmul.f32 1.442695, %v1778_v26  ;;  %v5181_v25 = vpack.c.b16 %v1173_v28, %v1172_v35 }
 0x222   : > { %1924 = vadd.xlane.f32.xlu1 %v5175_v21  ;;  %1700 = vmax.xlane.f32.xlu0 %v5173_v30  ;;  %v3889_v50 = vpack.c.bf16 %v777_v8, %v775_v36 }
 0x223   : > { %4267 = vpow2.f32 %v1830_v34  ;;  %1378 = vmatmul.bf16.gmra.mxu1 %v5181_v25  ;;  %v1598_v0 = vpop.f32.mrf.mxu2 }
 0x224   : > { %4110 = vst [vmem:[#allocation2 + $0x60] sm:$0xff] %v3889_v50  }
 0x226   : > { %v1689_v41 = vpop.xlane.xlu2 %1688 }
 0x227   : > { %v1779_v51 = vsub.f32 %v5090_v37, %v1689_v41  ;;  %v779_v55 = vpop.f32.mrf.mxu0  ;;  %v1362_v37 = vadd.f32 %v5000_v9, %v1361_v33 }
 0x228   : > { %v780_v11 = vadd.f32 %v5111_v45, %v779_v55 }
 0x229   : > { %v5189_v52 = vpop.eup %4267  ;;  %v1832_v46 = vmul.f32 1.442695, %v1779_v51  ;;  %v1438_v1 = vmax.f32 %v1362_v37, 0.0 }
 0x22a   : > { %1926 = vadd.xlane.f32.xlu1 %v5189_v52  ;;  %1702 = vmax.xlane.f32.xlu0 %v5187_v58 }
 0x22b   : > { %4269 = vpow2.f32 %v1832_v46  ;;  %v1471_v12 = vpack.c.bf16 %v1438_v1, %v1437_v57  ;;  %v1600_v49 = vpop.f32.mrf.mxu2  ;;  %v3836_v62 = vld [vmem:[#allocation2 + $0x60] sm:$0xff] }
 0x22c   : > { %v5238_v50 = vadd.f32 %v5047_v39, %v1600_v49 }
 0x22d   : > { %1627 = vmatmul.bf16.gmra.mxu2 %v1471_v12  ;;  %v3832_v12 = vld [vmem:[#allocation2 + $0xb0] sm:$0xff] }
 0x22e   : > { %v1691_v59 = vpop.xlane.xlu0 %1690 }
 0x22f   : > { %v1780_v63 = vsub.f32 %v5095_v40, %v1691_v59  ;;  %v781_v19 = vpop.f32.mrf.mxu0  ;;  %v1174_v40 = vunpack.c.l.b16 %v1058_v4  ;;  %838 = vmatmul.bf16.gmra.mxu0 %v5155_v7  ;;  %v1364_v4 = vpop.f32.mrf.mxu1 }
 0x230   : > { %v782_v22 = vadd.f32 %v5111_v45, %v781_v19 }
 0x231   : > { %v5201_v5 = vpop.eup %4269  ;;  %v1834_v10 = vmul.f32 1.442695, %v1780_v63  ;;  %v5207_v15 = vpack.c.b16 %v1175_v20, %v1174_v40  ;;  %v3835_v63 = vld [vmem:[#allocation2 + $0x48] sm:$0xff] }
 0x232   : > { %1704 = vmax.xlane.f32.xlu1 %v5199_v3  ;;  %1928 = vadd.xlane.f32.xlu2 %v5201_v5  ;;  %v3894_v23 = vpack.c.bf16 %v782_v22, %v780_v11  ;;  %v1365_v11 = vadd.f32 %v5000_v9, %v1364_v4 }
 0x233   : > { %4271 = vpow2.f32 %v1834_v10  ;;  %1383 = vmatmul.bf16.gmra.mxu1 %v5207_v15  ;;  %v1603_v53 = vpop.f32.mrf.mxu2 }
 0x234   : > { %4111 = vst [vmem:[#allocation2 + $0x28] sm:$0xff] %v3894_v23   ;;  %v5245_v55 = vadd.f32 %v5047_v39, %v1603_v53  ;;  %v1439_v20 = vmax.f32 %v1365_v11, 0.0 }
 0x236   : > { %v1693_v54 = vpop.xlane.xlu1 %1692 }
 0x237   : > { %v1781_v14 = vsub.f32 %v5099_v42, %v1693_v54  ;;  %v784_v43 = vpop.f32.mrf.mxu0  ;;  %v1366_v19 = vpop.f32.mrf.mxu1  ;;  %v1012_v54 = vld [vmem:[%s4943_s22 + $0x140] sm:$0xff] }
 0x238   : > { %v785_v36 = vadd.f32 %v5111_v45, %v784_v43  ;;  %v1367_v22 = vadd.f32 %v5000_v9, %v1366_v19 }
 0x239   : > { %v5215_v26 = vpop.eup %4271  ;;  %v1836_v29 = vmul.f32 1.442695, %v1781_v14  ;;  %v1013_v14 = vld [vmem:[%s4943_s22 + $0x148] sm:$0xff] }
 0x23a   : > { %1706 = vmax.xlane.f32.xlu1 %v5213_v24  ;;  %1930 = vadd.xlane.f32.xlu2 %v5215_v26  ;;  %v1440_v23 = vmax.f32 %v1367_v22, 0.0 }
 0x23b   : > { %4273 = vpow2.f32 %v1836_v29  ;;  %v3837_v37 = vld [vmem:[#allocation2 + $0x28] sm:$0xff]  ;;  %v1060_v29 = vpack.c.bf16 %v1012_v54, %v1012_v54  ;;  %v1014_v54 = vld [vmem:[%s4943_s22 + $0x150] sm:$0xff] }
 0x23c   : > { %v1472_v27 = vpack.c.bf16 %v1440_v23, %v1439_v20 }
 0x23e   : > { %v1695_v31 = vpop.xlane.xlu1 %1694  ;;  %1632 = vmatmul.bf16.gmra.mxu2 %v1472_v27 }
 0x23f   : > { %v1782_v32 = vsub.f32 %v5104_v44, %v1695_v31  ;;  %v786_v60 = vpop.f32.mrf.mxu0  ;;  %v5231_v44 = vadd.f32 %v5047_v39, %v1598_v0  ;;  %843 = vmatmul.bf16.gmra.mxu0 %v5181_v25  ;;  %v3833_v25 = vld [vmem:[#allocation2] sm:$0xff] }
 0x240   : > { %v787_v35 = vadd.f32 %v5111_v45, %v786_v60 }
 0x241   : > { %v5223_v42 = vpop.eup %4273  ;;  %v1838_v34 = vmul.f32 1.442695, %v1782_v32  ;;  %v1176_v32 = vunpack.c.l.b16 %v1060_v29 }
 0x242   : > { %1932 = vadd.xlane.f32.xlu0 %v5223_v42  ;;  %1708 = vmax.xlane.f32.xlu2 %v5221_v6  ;;  %v3899_v28 = vpack.c.bf16 %v787_v35, %v785_v36 }
 0x243   : > { %4275 = vpow2.f32 %v1838_v34 }
 0x244   : > { %4112 = vst [vmem:[#allocation2 + $0x40] sm:$0xff] %v3899_v28  }
 0x247   : > { %v789_v48 = vpop.f32.mrf.mxu0 }
 0x248   : > { %v790_v41 = vadd.f32 %v5111_v45, %v789_v48 }
 0x249   : > { %v5233_v8 = vpop.eup %4275 }
 0x24a   : > { %1934 = vadd.xlane.f32.xlu0 %v5233_v8  ;;  %1710 = vmax.xlane.f32.xlu2 %v5231_v44 }
 0x24b   : > { %v3838_v57 = vld [vmem:[#allocation2 + $0x40] sm:$0xff] }
 0x24f   : > { %v791_v38 = vpop.f32.mrf.mxu0  ;;  %848 = vmatmul.bf16.gmra.mxu0 %v5207_v15  ;;  %v1061_v15 = vpack.c.bf16 %v1013_v14, %v1013_v14  ;;  %v1015_v14 = vld [vmem:[%s4943_s22 + $0x158] sm:$0xff] }
 0x250   : > { %v792_v51 = vadd.f32 %v5111_v45, %v791_v38 }
 0x251   : > { %v1177_v34 = vunpack.c.l.b16 %v1061_v15 }
 0x252   : > { %1712 = vmax.xlane.f32.xlu0 %v5238_v50  ;;  %v3904_v46 = vpack.c.bf16 %v792_v51, %v790_v41  ;;  %v1369_v41 = vpop.f32.mrf.mxu1 }
 0x253   : > { %v1204_v48 = vpack.c.b16 %v1177_v34, %v1176_v32 }
 0x254   : > { %4113 = vst [vmem:[#allocation2 + $0x78] sm:$0xff] %v3904_v46  }
 0x255   : > { %1388 = vmatmul.bf16.gmra.mxu1 %v1204_v48 }
 0x257   : > { %v794_v59 = vpop.f32.mrf.mxu0 }
 0x258   : > { %v795_v7 = vadd.f32 %v5111_v45, %v794_v59 }
 0x25a   : > { %1714 = vmax.xlane.f32.xlu0 %v5245_v55 }
 0x25b   : > { %v3839_v33 = vld [vmem:[#allocation2 + $0x78] sm:$0xff] }
 0x25c   : > { %2926 = vmatpush.bf16.msra.mxu3 %v3839_v33 }
 0x25f   : > { %v796_v1 = vpop.f32.mrf.mxu0  ;;  %853 = vmatmul.bf16.gmra.mxu0 %v1204_v48 }
 0x260   : > { %2927 = vmatpush.bf16.msra.mxu3 %v3838_v57  ;;  %v797_v17 = vadd.f32 %v5111_v45, %v796_v1 }
 0x262   : > { %v3909_v18 = vpack.c.bf16 %v797_v17, %v795_v7 }
 0x264   : > { %2928 = vmatpush.bf16.msra.mxu3 %v3837_v37  ;;  %4114 = vst [vmem:[#allocation2 + $0x88] sm:$0xff] %v3909_v18  }
 0x267   : > { %v799_v10 = vpop.f32.mrf.mxu0 }
 0x268   : > { %2929 = vmatpush.bf16.msra.mxu3 %v3836_v62  ;;  %v800_v43 = vadd.f32 %v5111_v45, %v799_v10  ;;  %v1370_v62 = vadd.f32 %v5000_v9, %v1369_v41  ;;  %v1371_v10 = vpop.f32.mrf.mxu1 }
 0x26a   : > { %v1441_v19 = vmax.f32 %v1370_v62, 0.0 }
 0x26c   : > { %2930 = vmatpush.bf16.msra.mxu3 %v3835_v63 }
 0x26f   : > { %v801_v31 = vpop.f32.mrf.mxu0 }
 0x270   : > { %2931 = vmatpush.bf16.msra.mxu3 %v3834_v2  ;;  %v802_v60 = vadd.f32 %v5111_v45, %v801_v31  ;;  %v5266_v2 = vpop.f32.mrf.mxu2 }
 0x272   : > { %v3914_v51 = vpack.c.bf16 %v802_v60, %v800_v43  ;;  %v1062_v43 = vpack.c.bf16 %v1014_v54, %v1014_v54 }
 0x274   : > { %2932 = vmatpush.bf16.msra.mxu3 %v3833_v25  ;;  %4115 = vst [vmem:[#allocation2 + $0x90] sm:$0xff] %v3914_v51   ;;  %v1178_v48 = vunpack.c.l.b16 %v1062_v43 }
 0x277   : > { %v804_v59 = vpop.f32.mrf.mxu0 }
 0x278   : > { %2933 = vmatpush.bf16.msra.mxu3 %v3832_v12  ;;  %v805_v32 = vadd.f32 %v5111_v45, %v804_v59 }
 0x27d   : > { %v1919_v40 = vpop.xlane.xlu2 %1918 }
 0x27e   : > { %4277 = vrcp.f32 %v1919_v40  ;;  %v2023_v33 = vand.u32 2147483647, %v1919_v40  ;;  %v2025_v57 = vand.u32 2147483648, %v1919_v40  ;;  %vm2019_vm1 = vweird.f32 %v1919_v40 }
 0x27f   : > { %v806_v34 = vpop.f32.mrf.mxu0 }
 0x280   : > { %vm5272_vm3 = vcmp.eq.f32.partialorder %v2023_v33, 8.507059e+37  ;;  %v2026_v18 = vor.u32 1.1754944e-38, %v2025_v57  ;;  %v5308_v33 = vpop.f32.mrf.mxu2  ;;  %v1374_v57 = vpop.f32.mrf.mxu1 }
 0x284   : > { %v4278_v36 = vpop.eup %4277 }
 0x285   : > { %v2015_v0 = vmul.f32 %v4278_v36, %v1919_v40  ;;  %v1697_v35 = vpop.xlane.xlu2 %1696  ;;  %v5258_v28 = vpop.xlane.xlu0 %1920  ;;  %vm2020_vm0 = vweird.f32 %v4278_v36  ;;  %v1372_v40 = vadd.f32 %v5000_v9, %v1371_v10  ;;  %v1063_v9 = vpack.c.bf16 %v1015_v14, %v1015_v14 }
 0x286   : > { %v1783_v49 = vsub.f32 %v5147_v56, %v1697_v35  ;;  %4279 = vrcp.f32 %v5258_v28  ;;  %vm5268_vm2 = vmor %vm2019_vm1, %vm2020_vm0  ;;  %v2037_v22 = vand.u32 2147483647, %v5258_v28  ;;  %vm2033_vm5 = vweird.f32 %v5258_v28 }
 0x287   : > { %v2016_v38 = vsub.f32 1.0, %v2015_v0  ;;  %v1442_v29 = vmax.f32 %v1372_v40, 0.0  ;;  %v807_v35 = vadd.f32 %v5111_v45, %v806_v34 }
 0x288   : > { %v1840_v46 = vmul.f32 1.442695, %v1783_v49  ;;  %v1179_v49 = vunpack.c.l.b16 %v1063_v9  ;;  %vm2038_vm7 = vcmp.eq.f32.partialorder %v2037_v22, 8.507059e+37  ;;  %v5330_v22 = vld [vmem:[%s6244_s2] ss:$0 sm:$0xff]  ;;  %v1376_v43 = vpop.f32.mrf.mxu1 }
 0x289   : > { %v2017_v53 = vmul.f32 %v4278_v36, %v2016_v38 }
 0x28a   : > { %4281 = vpow2.f32 %v1840_v46  ;;  %v1205_v4 = vpack.c.b16 %v1179_v49, %v1178_v48  ;;  %v1377_v49 = vadd.f32 %v5330_v22, %v1376_v43 }
 0x28b   : > { %v2018_v37 = vadd.f32 %v4278_v36, %v2017_v53 }
 0x28c   : > { %v4280_v63 = vpop.eup %4279  ;;  %1393 = vmatmul.bf16.gmra.mxu1 %v1205_v4  ;;  %858 = vmatmul.bf16.gmra.mxu0 %v1205_v4 }
 0x28d   : > { %v2029_v56 = vmul.f32 %v4280_v63, %v5258_v28  ;;  %v1699_v7 = vpop.xlane.xlu2 %1698  ;;  %v5264_v1 = vpop.xlane.xlu0 %1922  ;;  %v2022_v12 = vsel %vm5268_vm2, %v4278_v36, %v2018_v37  ;;  %vm2034_vm4 = vweird.f32 %v4280_v63  ;;  %v1473_v36 = vpack.c.bf16 %v1442_v29, %v1441_v19 }
 0x28e   : > { %v1784_v25 = vsub.f32 %v5161_v13, %v1699_v7  ;;  %4283 = vrcp.f32 %v5264_v1  ;;  %v2039_v13 = vand.u32 2147483648, %v5258_v28  ;;  %v2027_v15 = vsel %vm5272_vm3, %v2026_v18, %v2022_v12  ;;  %vm5294_vm6 = vmor %vm2033_vm5, %vm2034_vm4 }
 0x28f   : > { %v2030_v11 = vsub.f32 1.0, %v2029_v56  ;;  %v2686_v53 = vmul.f32 %v5138_v47, %v2027_v15  ;;  %1637 = vmatmul.bf16.gmra.mxu2 %v1473_v36  ;;  %v3919_v56 = vpack.c.bf16 %v807_v35, %v805_v32  ;;  %v2053_v19 = vand.u32 2147483648, %v5264_v1  ;;  %v5358_v35 = vpop.f32.mrf.mxu2 }
 0x290   : > { %v5281_v20 = vpop.eup %4281  ;;  %v1842_v23 = vmul.f32 1.442695, %v1784_v25  ;;  %v2040_v41 = vor.u32 1.1754944e-38, %v2039_v13  ;;  %v2051_v25 = vand.u32 2147483647, %v5264_v1  ;;  %vm2047_vm9 = vweird.f32 %v5264_v1 }
 0x291   : > { %v2031_v27 = vmul.f32 %v4280_v63, %v2030_v11  ;;  %1936 = vadd.xlane.f32.xlu1 %v5281_v20  ;;  %v2734_v18 = vpack.c.bf16 %v2686_v53, %v2686_v53  ;;  %4116 = vst [vmem:[#allocation2 + $0x18] sm:$0xff] %v3919_v56   ;;  %v2054_v36 = vor.u32 1.1754944e-38, %v2053_v19 }
 0x292   : > { %4285 = vpow2.f32 %v1842_v23  ;;  %v1375_v23 = vadd.f32 %v5330_v22, %v1374_v57  ;;  %vm5344_vm11 = vcmp.eq.f32.partialorder %v2051_v25, 8.507059e+37 }
 0x293   : > { %v2032_v31 = vadd.f32 %v4280_v63, %v2031_v27  ;;  %v2846_v13 = vunpack.c.l.b16 %v2734_v18 }
 0x294   : > { %v5292_v60 = vpop.eup %4283  ;;  %v1443_v48 = vmax.f32 %v1375_v23, 0.0 }
 0x295   : > { %v2043_v38 = vmul.f32 %v5292_v60, %v5264_v1  ;;  %v5301_v51 = vpop.xlane.xlu1 %1924  ;;  %v1701_v28 = vpop.xlane.xlu0 %1700  ;;  %v2036_v46 = vsel %vm5294_vm6, %v4280_v63, %v2032_v31  ;;  %vm2048_vm8 = vweird.f32 %v5292_v60  ;;  %v5351_v1 = vadd.f32 %v5047_v39, %v5266_v2  ;;  %v1017_v2 = vld [vmem:[%s4943_s22 + $0x168] sm:$0xff] }
 0x296   : > { %4287 = vrcp.f32 %v5301_v51  ;;  %v1785_v59 = vsub.f32 %v5173_v30, %v1701_v28  ;;  %v2041_v62 = vsel %vm2038_vm7, %v2040_v41, %v2036_v46  ;;  %vm5340_vm10 = vmor %vm2047_vm9, %vm2048_vm8  ;;  %v2067_v0 = vand.u32 2147483648, %v5301_v51  ;;  %v1016_v41 = vld [vmem:[%s4943_s22 + $0x160] sm:$0xff] }
 0x297   : > { %v2044_v37 = vsub.f32 1.0, %v2043_v38  ;;  %v2687_v17 = vmul.f32 %v5149_v61, %v2041_v62  ;;  %v809_v61 = vpop.f32.mrf.mxu0  ;;  %v1064_v57 = vpack.c.bf16 %v1016_v41, %v1016_v41  ;;  %vm2061_vm13 = vweird.f32 %v5301_v51 }
 0x298   : > { %v5311_v7 = vpop.eup %4285  ;;  %v1844_v47 = vmul.f32 1.442695, %v1785_v59  ;;  %v810_v62 = vadd.f32 %v5111_v45, %v809_v61 }
 0x299   : > { %v2045_v63 = vmul.f32 %v5292_v60, %v2044_v37  ;;  %1938 = vadd.xlane.f32.xlu1 %v5311_v7  ;;  %v2735_v10 = vpack.c.bf16 %v2687_v17, %v2687_v17  ;;  %v3989_v11 = vpack.c.bf16 %v2687_v17, %v2686_v53  ;;  %v1444_v53 = vmax.f32 %v1377_v49, 0.0 }
 0x29a   : > { %4289 = vpow2.f32 %v1844_v47  ;;  %v1065_v37 = vpack.c.bf16 %v1017_v2, %v1017_v2  ;;  %v1180_v25 = vunpack.c.l.b16 %v1064_v57 }
 0x29b   : > { %v2046_v30 = vadd.f32 %v5292_v60, %v2045_v63  ;;  %v2847_v40 = vunpack.c.l.b16 %v2735_v10  ;;  %3990 = vst [vmem:[%s5324_s12] sm:$0xff] %v3989_v11   ;;  %v2068_v63 = vor.u32 1.1754944e-38, %v2067_v0  ;;  %v1474_v18 = vpack.c.bf16 %v1444_v53, %v1443_v48 }
 0x29c   : > { %v5319_v12 = vpop.eup %4287  ;;  %v1181_v19 = vunpack.c.l.b16 %v1065_v37 }
 0x29d   : > { %v2057_v54 = vmul.f32 %v5319_v12, %v5301_v51  ;;  %v5336_v14 = vpop.xlane.xlu1 %1926  ;;  %v1703_v27 = vpop.xlane.xlu0 %1702  ;;  %v2862_v32 = vpack.c.b16 %v2847_v40, %v2846_v13  ;;  %v2050_v34 = vsel %vm5340_vm10, %v5292_v60, %v2046_v30  ;;  %vm2062_vm12 = vweird.f32 %v5319_v12 }
 0x29e   : > { %4291 = vrcp.f32 %v5336_v14  ;;  %v1786_v31 = vsub.f32 %v5187_v58, %v1703_v27  ;;  %v2065_v58 = vand.u32 2147483647, %v5301_v51  ;;  %v2055_v60 = vsel %vm5344_vm11, %v2054_v36, %v2050_v34  ;;  %vm5379_vm14 = vmor %vm2061_vm13, %vm2062_vm12 }
 0x29f   : > { %v2058_v9 = vsub.f32 1.0, %v2057_v54  ;;  %2934 = vmatmul.bf16.vlgmr.msra.gmra.mxu3 %v2862_v32  ;;  %v811_v56 = vpop.f32.mrf.mxu0  ;;  %v2688_v61 = vmul.f32 %v5163_v16, %v2055_v60  ;;  %1642 = vmatmul.bf16.gmra.mxu2 %v1474_v18  ;;  %v5396_v54 = vadd.f32 %v5047_v39, %v5308_v33  ;;  %v1206_v43 = vpack.c.b16 %v1181_v19, %v1180_v25  ;;  %v5404_v39 = vpop.f32.mrf.mxu2  ;;  %v5430_v60 = vld [vmem:[%s6246_s4] ss:$0 sm:$0xff]  ;;  %v1018_v25 = vld [vmem:[%s4943_s22 + $0x170] sm:$0xff] }
 0x2a0   : > { %v5363_v38 = vpop.eup %4289  ;;  %v1846_v46 = vmul.f32 1.442695, %v1786_v31  ;;  %v812_v47 = vadd.f32 %v5111_v45, %v811_v56  ;;  %vm2066_vm15 = vcmp.eq.f32.partialorder %v2065_v58, 8.507059e+37  ;;  %v1379_v23 = vpop.f32.mrf.mxu1  ;;  %v2079_v32 = vand.u32 2147483647, %v5336_v14 }
 0x2a1   : > { %v2059_v28 = vmul.f32 %v5319_v12, %v2058_v9  ;;  %1716 = vmax.xlane.f32.xlu1 %v5351_v1  ;;  %1940 = vadd.xlane.f32.xlu2 %v5363_v38  ;;  %v2081_v34 = vand.u32 2147483648, %v5336_v14  ;;  %vm2075_vm1 = vweird.f32 %v5336_v14  ;;  %v1380_v49 = vadd.f32 %v5330_v22, %v1379_v23 }
 0x2a2   : > { %4293 = vpow2.f32 %v1846_v46  ;;  %v3924_v29 = vpack.c.bf16 %v812_v47, %v810_v62  ;;  %1398 = vmatmul.bf16.gmra.mxu1 %v1206_v43  ;;  %863 = vmatmul.bf16.gmra.mxu0 %v1206_v43  ;;  %v5434_v53 = vadd.f32 %v5430_v60, %v5358_v35  ;;  %vm2080_vm3 = vcmp.eq.f32.partialorder %v2079_v32, 8.507059e+37  ;;  %v1019_v35 = vld [vmem:[%s4943_s22 + $0x178] sm:$0xff] }
 0x2a3   : > { %v2060_v59 = vadd.f32 %v5319_v12, %v2059_v28  ;;  %v1445_v47 = vmax.f32 %v1380_v49, 0.0  ;;  %v1067_v19 = vpack.c.bf16 %v1019_v35, %v1019_v35 }
 0x2a4   : > { %v5375_v17 = vpop.eup %4291  ;;  %4117 = vst [vmem:[#allocation2 + $0x98] sm:$0xff] %v3924_v29  }
 0x2a5   : > { %v2071_v51 = vmul.f32 %v5375_v17, %v5336_v14  ;;  %v1705_v10 = vpop.xlane.xlu1 %1704  ;;  %v5386_v11 = vpop.xlane.xlu2 %1928  ;;  %v2064_v30 = vsel %vm5379_vm14, %v5319_v12, %v2060_v59  ;;  %vm2076_vm0 = vweird.f32 %v5375_v17  ;;  %v2082_v59 = vor.u32 1.1754944e-38, %v2081_v34 }
 0x2a6   : > { %v1787_v40 = vsub.f32 %v5199_v3, %v1705_v10  ;;  %4295 = vrcp.f32 %v5386_v11  ;;  %v2069_v13 = vsel %vm2066_vm15, %v2068_v63, %v2064_v30  ;;  %v2736_v3 = vpack.c.bf16 %v2688_v61, %v2688_v61  ;;  %vm5417_vm2 = vmor %vm2075_vm1, %vm2076_vm0 }
 0x2a7   : > { %v2072_v27 = vsub.f32 1.0, %v2071_v51  ;;  %v2689_v12 = vmul.f32 %v5175_v21, %v2069_v13  ;;  %v814_v36 = vpop.f32.mrf.mxu0  ;;  %v2095_v4 = vand.u32 2147483648, %v5386_v11  ;;  %v1066_v10 = vpack.c.bf16 %v1018_v25, %v1018_v25 }
 0x2a8   : > { %v1848_v15 = vmul.f32 1.442695, %v1787_v40  ;;  %v5399_v16 = vpop.eup %4293  ;;  %v2848_v46 = vunpack.c.l.b16 %v2736_v3  ;;  %v1381_v37 = vpop.f32.mrf.mxu1  ;;  %v2093_v30 = vand.u32 2147483647, %v5386_v11  ;;  %vm2089_vm5 = vweird.f32 %v5386_v11 }
 0x2a9   : > { %v2073_v9 = vmul.f32 %v5375_v17, %v2072_v27  ;;  %1718 = vmax.xlane.f32.xlu1 %v5396_v54  ;;  %1942 = vadd.xlane.f32.xlu2 %v5399_v16  ;;  %v2737_v33 = vpack.c.bf16 %v2689_v12, %v2689_v12  ;;  %v3994_v31 = vpack.c.bf16 %v2689_v12, %v2688_v61  ;;  %v1615_v12 = vpop.f32.mrf.mxu2  ;;  %v1182_v32 = vunpack.c.l.b16 %v1066_v10 }
 0x2aa   : > { %4297 = vpow2.f32 %v1848_v15  ;;  %v1382_v18 = vadd.f32 %v5330_v22, %v1381_v37  ;;  %v815_v23 = vadd.f32 %v5111_v45, %v814_v36  ;;  %v2096_v15 = vor.u32 1.1754944e-38, %v2095_v4 }
 0x2ab   : > { %v2074_v21 = vadd.f32 %v5375_v17, %v2073_v9  ;;  %v2849_v48 = vunpack.c.l.b16 %v2737_v33  ;;  %4130 = vst [vmem:[%s5324_s12 + $0x8] sm:$0xff] %v3994_v31   ;;  %v1183_v34 = vunpack.c.l.b16 %v1067_v19  ;;  %vm2094_vm7 = vcmp.eq.f32.partialorder %v2093_v30, 8.507059e+37 }
 0x2ac   : > { %v5410_v0 = vpop.eup %4295  ;;  %v1446_v61 = vmax.f32 %v1382_v18, 0.0 }
 0x2ad   : > { %v2085_v2 = vmul.f32 %v5410_v0, %v5386_v11  ;;  %v1707_v28 = vpop.xlane.xlu1 %1706  ;;  %v5423_v58 = vpop.xlane.xlu2 %1930  ;;  %v2078_v57 = vsel %vm5417_vm2, %v5375_v17, %v2074_v21  ;;  %v2863_v62 = vpack.c.b16 %v2849_v48, %v2848_v46  ;;  %vm2090_vm4 = vweird.f32 %v5410_v0 }
 0x2ae   : > { %v1788_v14 = vsub.f32 %v5213_v24, %v1707_v28  ;;  %4299 = vrcp.f32 %v5423_v58  ;;  %v2083_v17 = vsel %vm2080_vm3, %v2082_v59, %v2078_v57  ;;  %vm5457_vm6 = vmor %vm2089_vm5, %vm2090_vm4  ;;  %v1475_v3 = vpack.c.bf16 %v1446_v61, %v1445_v47 }
 0x2af   : > { %v2086_v24 = vsub.f32 1.0, %v2085_v2  ;;  %2939 = vmatmul.bf16.gmra.mxu3 %v2863_v62  ;;  %v816_v27 = vpop.f32.mrf.mxu0  ;;  %v2690_v43 = vmul.f32 %v5189_v52, %v2083_v17  ;;  %v5476_v2 = vadd.f32 %v5430_v60, %v5404_v39  ;;  %v2109_v57 = vand.u32 2147483648, %v5423_v58 }
 0x2b0   : > { %v5439_v56 = vpop.eup %4297  ;;  %v1850_v63 = vmul.f32 1.442695, %v1788_v14  ;;  %v817_v9 = vadd.f32 %v5111_v45, %v816_v27  ;;  %1647 = vmatmul.bf16.gmra.mxu2 %v1475_v3  ;;  %v1384_v45 = vpop.f32.mrf.mxu1  ;;  %v1207_v14 = vpack.c.b16 %v1183_v34, %v1182_v32  ;;  %vm2103_vm9 = vweird.f32 %v5423_v58 }
 0x2b1   : > { %v2087_v51 = vmul.f32 %v5410_v0, %v2086_v24  ;;  %1944 = vadd.xlane.f32.xlu0 %v5439_v56  ;;  %1720 = vmax.xlane.f32.xlu2 %v5434_v53  ;;  %v1385_v47 = vadd.f32 %v5330_v22, %v1384_v45  ;;  %v2110_v17 = vor.u32 1.1754944e-38, %v2109_v57  ;;  %v1618_v10 = vpop.f32.mrf.mxu2  ;;  %v5503_v61 = vadd.f32 %v5430_v60, %v1615_v12  ;;  %v5515_v12 = vld [vmem:[%s6248_s6] ss:$0 sm:$0xff] }
 0x2b2   : > { %4301 = vpow2.f32 %v1850_v63  ;;  %v3929_v49 = vpack.c.bf16 %v817_v9, %v815_v23  ;;  %1403 = vmatmul.bf16.gmra.mxu1 %v1207_v14  ;;  %868 = vmatmul.bf16.gmra.mxu0 %v1207_v14 }
 0x2b3   : > { %v2088_v40 = vadd.f32 %v5410_v0, %v2087_v51  ;;  %v1447_v9 = vmax.f32 %v1385_v47, 0.0 }
 0x2b4   : > { %v5453_v13 = vpop.eup %4299  ;;  %4118 = vst [vmem:[#allocation2 + $0x38] sm:$0xff] %v3929_v49  }
 0x2b5   : > { %v2099_v11 = vmul.f32 %v5453_v13, %v5423_v58  ;;  %v1709_v33 = vpop.xlane.xlu2 %1708  ;;  %v5465_v31 = vpop.xlane.xlu0 %1932  ;;  %v2092_v21 = vsel %vm5457_vm6, %v5410_v0, %v2088_v40  ;;  %vm2104_vm8 = vweird.f32 %v5453_v13 }
 0x2b6   : > { %v1789_v36 = vsub.f32 %v5221_v6, %v1709_v33  ;;  %4303 = vrcp.f32 %v5465_v31  ;;  %v2097_v48 = vsel %vm2094_vm7, %v2096_v15, %v2092_v21  ;;  %v2738_v6 = vpack.c.bf16 %v2690_v43, %v2690_v43  ;;  %vm5489_vm10 = vmor %vm2103_vm9, %vm2104_vm8 }
 0x2b7   : > { %v2100_v52 = vsub.f32 1.0, %v2099_v11  ;;  %v2691_v0 = vmul.f32 %v5201_v5, %v2097_v48  ;;  %v2107_v5 = vand.u32 2147483647, %v5423_v58  ;;  %v819_v24 = vpop.f32.mrf.mxu0  ;;  %v2123_v23 = vand.u32 2147483648, %v5465_v31 }
 0x2b8   : > { %v5472_v41 = vpop.eup %4301  ;;  %v1852_v28 = vmul.f32 1.442695, %v1789_v36  ;;  %v2850_v58 = vunpack.c.l.b16 %v2738_v6  ;;  %v1386_v19 = vpop.f32.mrf.mxu1  ;;  %v820_v11 = vadd.f32 %v5515_v12, %v819_v24  ;;  %vm2117_vm13 = vweird.f32 %v5465_v31 }
 0x2b9   : > { %v2101_v46 = vmul.f32 %v5453_v13, %v2100_v52  ;;  %1946 = vadd.xlane.f32.xlu0 %v5472_v41  ;;  %1722 = vmax.xlane.f32.xlu2 %v5476_v2  ;;  %v2739_v39 = vpack.c.bf16 %v2691_v0, %v2691_v0  ;;  %v3999_v37 = vpack.c.bf16 %v2691_v0, %v2690_v43  ;;  %vm2108_vm11 = vcmp.eq.f32.partialorder %v2107_v5, 8.507059e+37  ;;  %v1620_v57 = vpop.f32.mrf.mxu2 }
 0x2ba   : > { %4305 = vpow2.f32 %v1852_v28  ;;  %v2124_v36 = vor.u32 1.1754944e-38, %v2123_v23  ;;  %v5523_v6 = vadd.f32 %v5430_v60, %v1618_v10  ;;  %v5535_v47 = vadd.f32 %v5430_v60, %v1620_v57 }
 0x2bb   : > { %v2102_v59 = vadd.f32 %v5453_v13, %v2101_v46  ;;  %v2851_v63 = vunpack.c.l.b16 %v2739_v39  ;;  %4131 = vst [vmem:[%s5324_s12 + $0x10] sm:$0xff] %v3999_v37  }
 0x2bc   : > { %v4304_v62 = vpop.eup %4303 }
 0x2bd   : > { %v2113_v18 = vmul.f32 %v4304_v62, %v5465_v31  ;;  %v1711_v25 = vpop.xlane.xlu2 %1710  ;;  %v5496_v35 = vpop.xlane.xlu0 %1934  ;;  %v2106_v51 = vsel %vm5489_vm10, %v5453_v13, %v2102_v59  ;;  %v2864_v27 = vpack.c.b16 %v2851_v63, %v2850_v58  ;;  %v1387_v13 = vadd.f32 %v5330_v22, %v1386_v19 }
 0x2be   : > { %v1790_v30 = vsub.f32 %v5231_v44, %v1711_v25  ;;  %v2111_v43 = vsel %vm2108_vm11, %v2110_v17, %v2106_v51  ;;  %vm2118_vm12 = vweird.f32 %v4304_v62  ;;  %v2121_v44 = vand.u32 2147483647, %v5465_v31 }
 0x2bf   : > { %v2114_v40 = vsub.f32 1.0, %v2113_v18  ;;  %2944 = vmatmul.bf16.gmra.mxu3 %v2864_v27  ;;  %v1448_v33 = vmax.f32 %v1387_v13, 0.0  ;;  %v2692_v32 = vmul.f32 %v5215_v26, %v2111_v43  ;;  %v821_v34 = vpop.f32.mrf.mxu0  ;;  %vm2119_vm14 = vmor %vm2117_vm13, %vm2118_vm12  ;;  %vm2131_vm1 = vweird.f32 %v5496_v35 }
 0x2c0   : > { %v5506_v29 = vpop.eup %4305  ;;  %v1854_v15 = vmul.f32 1.442695, %v1790_v30  ;;  %v822_v45 = vadd.f32 %v5515_v12, %v821_v34  ;;  %vm2122_vm15 = vcmp.eq.f32.partialorder %v2121_v44, 8.507059e+37 }
 0x2c1   : > { %v2115_v3 = vmul.f32 %v4304_v62, %v2114_v40  ;;  %1724 = vmax.xlane.f32.xlu0 %v5503_v61  ;;  %1948 = vadd.xlane.f32.xlu1 %v5506_v29  ;;  %v1476_v52 = vpack.c.bf16 %v1448_v33, %v1447_v9  ;;  %v2740_v31 = vpack.c.bf16 %v2692_v32, %v2692_v32  ;;  %v1623_v25 = vpop.f32.mrf.mxu2 }
 0x2c2   : > { %4307 = vpow2.f32 %v1854_v15  ;;  %v3934_v46 = vpack.c.bf16 %v822_v45, %v820_v11  ;;  %v5544_v30 = vadd.f32 %v5430_v60, %v1623_v25  ;;  %v3841_v25 = vld [vmem:[#allocation2 + $0x90] sm:$0xff] }
 0x2c3   : > { %v2116_v21 = vadd.f32 %v4304_v62, %v2115_v3  ;;  %1652 = vmatmul.bf16.gmra.mxu2 %v1476_v52 }
 0x2c4   : > { %4119 = vst [vmem:[#allocation2 + $0x50] sm:$0xff] %v3934_v46  }
 0x2c5   : > { %v1713_v48 = vpop.xlane.xlu0 %1712  ;;  %v2120_v49 = vsel %vm2119_vm14, %v4304_v62, %v2116_v21 }
 0x2c6   : > { %v1791_v28 = vsub.f32 %v5238_v50, %v1713_v48  ;;  %v2125_v0 = vsel %vm2122_vm15, %v2124_v36, %v2120_v49  ;;  %v2852_v50 = vunpack.c.l.b16 %v2740_v31 }
 0x2c7   : > { %v2693_v26 = vmul.f32 %v5223_v42, %v2125_v0  ;;  %v824_v24 = vpop.f32.mrf.mxu0 }
 0x2c8   : > { %v5526_v14 = vpop.eup %4307  ;;  %v1856_v39 = vmul.f32 1.442695, %v1791_v28  ;;  %v825_v58 = vadd.f32 %v5515_v12, %v824_v24  ;;  %v3844_v28 = vld [vmem:[#allocation2 + $0x38] sm:$0xff] }
 0x2c9   : > { %1726 = vmax.xlane.f32.xlu0 %v5523_v6  ;;  %v2741_v37 = vpack.c.bf16 %v2693_v26, %v2693_v26  ;;  %v4004_v59 = vpack.c.bf16 %v2693_v26, %v2692_v32  ;;  %1950 = vadd.xlane.f32.xlu1 %v5526_v14  ;;  %v1625_v40 = vpop.f32.mrf.mxu2  ;;  %v3843_v26 = vld [vmem:[#allocation2 + $0x98] sm:$0xff] }
 0x2ca   : > { %4309 = vpow2.f32 %v1856_v39  ;;  %v5549_v23 = vadd.f32 %v5430_v60, %v1625_v40 }
 0x2cb   : > { %v2853_v5 = vunpack.c.l.b16 %v2741_v37  ;;  %4132 = vst [vmem:[%s5324_s12 + $0x18] sm:$0xff] %v4004_v59   ;;  %v3845_v52 = vld [vmem:[#allocation2 + $0x50] sm:$0xff] }
 0x2cd   : > { %v1715_v62 = vpop.xlane.xlu0 %1714  ;;  %v2865_v4 = vpack.c.b16 %v2853_v5, %v2852_v50  ;;  %v3842_v50 = vld [vmem:[#allocation2 + $0x18] sm:$0xff] }
 0x2ce   : > { %v1792_v42 = vsub.f32 %v5245_v55, %v1715_v62  ;;  %v2137_v62 = vand.u32 2147483648, %v5496_v35 }
 0x2cf   : > { %2949 = vmatmul.bf16.gmra.mxu3 %v2865_v4  ;;  %v826_v51 = vpop.f32.mrf.mxu0  ;;  %v2135_v4 = vand.u32 2147483647, %v5496_v35 }
 0x2d0   : > { %v5532_v63 = vpop.eup %4309  ;;  %v1858_v18 = vmul.f32 1.442695, %v1792_v42  ;;  %v827_v17 = vadd.f32 %v5515_v12, %v826_v51 }
 0x2d1   : > { %1952 = vadd.xlane.f32.xlu2 %v5532_v63  ;;  %1728 = vmax.xlane.f32.xlu1 %v5535_v47  ;;  %v1628_v9 = vpop.f32.mrf.mxu2  ;;  %vm2136_vm3 = vcmp.eq.f32.partialorder %v2135_v4, 8.507059e+37 }
 0x2d2   : > { %4311 = vpow2.f32 %v1858_v18  ;;  %v3939_v10 = vpack.c.bf16 %v827_v17, %v825_v58  ;;  %v5555_v3 = vadd.f32 %v5430_v60, %v1628_v9  ;;  %v1389_v59 = vpop.f32.mrf.mxu1 }
 0x2d3   : > { %4313 = vrcp.f32 %v5496_v35  ;;  %v1390_v51 = vadd.f32 %v5330_v22, %v1389_v59 }
 0x2d4   : > { %4120 = vst [vmem:[#allocation2 + $0x70] sm:$0xff] %v3939_v10  }
 0x2d7   : > { %v829_v19 = vpop.f32.mrf.mxu0 }
 0x2d8   : > { %v5541_v55 = vpop.eup %4311  ;;  %v830_v27 = vadd.f32 %v5515_v12, %v829_v19 }
 0x2d9   : > { %1954 = vadd.xlane.f32.xlu2 %v5541_v55  ;;  %1730 = vmax.xlane.f32.xlu1 %v5544_v30  ;;  %v4314_v45 = vpop.eup %4313 }
 0x2da   : > { %v2127_v49 = vmul.f32 %v4314_v45, %v5496_v35  ;;  %vm2132_vm0 = vweird.f32 %v4314_v45  ;;  %v1391_v40 = vpop.f32.mrf.mxu1  ;;  %v3840_v35 = vld [vmem:[#allocation2 + $0x88] sm:$0xff] }
 0x2db   : > { %v3846_v34 = vld [vmem:[#allocation2 + $0x70] sm:$0xff]  ;;  %vm5567_vm2 = vmor %vm2131_vm1, %vm2132_vm0  ;;  %v1392_v9 = vadd.f32 %v5330_v22, %v1391_v40  ;;  %v5591_v40 = vpop.f32.mrf.mxu2 }
 0x2dc   : > { %v2128_v0 = vsub.f32 1.0, %v2127_v49 }
 0x2de   : > { %v2129_v57 = vmul.f32 %v4314_v45, %v2128_v0 }
 0x2df   : > { %v831_v15 = vpop.f32.mrf.mxu0 }
 0x2e0   : > { %v832_v43 = vadd.f32 %v5515_v12, %v831_v15  ;;  %v2130_v24 = vadd.f32 %v4314_v45, %v2129_v57 }
 0x2e1   : > { %1732 = vmax.xlane.f32.xlu2 %v5549_v23 }
 0x2e2   : > { %v3944_v13 = vpack.c.bf16 %v832_v43, %v830_v27  ;;  %v2134_v19 = vsel %vm5567_vm2, %v4314_v45, %v2130_v24  ;;  %v2138_v27 = vor.u32 1.1754944e-38, %v2137_v62  ;;  %v1449_v43 = vmax.f32 %v1390_v51, 0.0 }
 0x2e4   : > { %4121 = vst [vmem:[#allocation2 + $0xa0] sm:$0xff] %v3944_v13  }
 0x2e7   : > { %v834_v44 = vpop.f32.mrf.mxu0 }
 0x2e8   : > { %v835_v11 = vadd.f32 %v5515_v12, %v834_v44  ;;  %v2139_v44 = vsel %vm2136_vm3, %v2138_v27, %v2134_v19 }
 0x2e9   : > { %1734 = vmax.xlane.f32.xlu2 %v5555_v3 }
 0x2eb   : > { %v3847_v33 = vld [vmem:[#allocation2 + $0xa0] sm:$0xff] }
 0x2ec   : > { %3071 = vmatpush.bf16.msrb.mxu3 %v3847_v33 }
 0x2ef   : > { %v836_v21 = vpop.f32.mrf.mxu0 }
 0x2f0   : > { %v837_v32 = vadd.f32 %v5515_v12, %v836_v21  ;;  %3072 = vmatpush.bf16.msrb.mxu3 %v3846_v34  ;;  %v1450_v21 = vmax.f32 %v1392_v9, 0.0 }
 0x2f2   : > { %v3949_v36 = vpack.c.bf16 %v837_v32, %v835_v11  ;;  %v1477_v34 = vpack.c.bf16 %v1450_v21, %v1449_v43 }
 0x2f4   : > { %4122 = vst [vmem:[#allocation2 + $0xa8] sm:$0xff] %v3949_v36   ;;  %3073 = vmatpush.bf16.msrb.mxu3 %v3845_v52  ;;  %v2694_v52 = vmul.f32 %v5233_v8, %v2139_v44  ;;  %1657 = vmatmul.bf16.gmra.mxu2 %v1477_v34 }
 0x2f7   : > { %v839_v48 = vpop.f32.mrf.mxu0 }
 0x2f8   : > { %3074 = vmatpush.bf16.msrb.mxu3 %v3844_v28  ;;  %v840_v46 = vadd.f32 %v5515_v12, %v839_v48 }
 0x2fc   : > { %3075 = vmatpush.bf16.msrb.mxu3 %v3843_v26 }
 0x2ff   : > { %v841_v31 = vpop.f32.mrf.mxu0 }
 0x300   : > { %v842_v37 = vadd.f32 %v5515_v12, %v841_v31  ;;  %3076 = vmatpush.bf16.msrb.mxu3 %v3842_v50  ;;  %v2742_v50 = vpack.c.bf16 %v2694_v52, %v2694_v52 }
 0x302   : > { %v3954_v5 = vpack.c.bf16 %v842_v37, %v840_v46 }
 0x304   : > { %v1937_v39 = vpop.xlane.xlu1 %1936  ;;  %4123 = vst [vmem:[#allocation2 + $0x68] sm:$0xff] %v3954_v5   ;;  %3077 = vmatpush.bf16.msrb.mxu3 %v3841_v25  ;;  %v2854_v25 = vunpack.c.l.b16 %v2742_v50 }
 0x305   : > { %4315 = vrcp.f32 %v1937_v39  ;;  %v2151_v13 = vand.u32 2147483648, %v1937_v39  ;;  %v2149_v33 = vand.u32 2147483647, %v1937_v39  ;;  %vm2145_vm5 = vweird.f32 %v1937_v39 }
 0x307   : > { %v844_v58 = vpop.f32.mrf.mxu0  ;;  %v2152_v45 = vor.u32 1.1754944e-38, %v2151_v13  ;;  %vm2150_vm7 = vcmp.eq.f32.partialorder %v2149_v33, 8.507059e+37 }
 0x308   : > { %3078 = vmatpush.bf16.msrb.mxu3 %v3840_v35  ;;  %v845_v48 = vadd.f32 %v5515_v12, %v844_v58 }
 0x309   : > { %v1394_v24 = vpop.f32.mrf.mxu1 }
 0x30a   : > { %v1395_v21 = vadd.f32 %v5330_v22, %v1394_v24 }
 0x30b   : > { %v4316_v42 = vpop.eup %4315 }
 0x30c   : > { %v2141_v17 = vmul.f32 %v4316_v42, %v1937_v39  ;;  %v5572_v10 = vpop.xlane.xlu1 %1938  ;;  %vm2146_vm4 = vweird.f32 %v4316_v42 }
 0x30d   : > { %4317 = vrcp.f32 %v5572_v10  ;;  %vm2147_vm6 = vmor %vm2145_vm5, %vm2146_vm4  ;;  %vm2159_vm9 = vweird.f32 %v5572_v10 }
 0x30e   : > { %v2142_v15 = vsub.f32 1.0, %v2141_v17 }
 0x30f   : > { %v846_v49 = vpop.f32.mrf.mxu0 }
 0x310   : > { %v2143_v11 = vmul.f32 %v4316_v42, %v2142_v15  ;;  %v847_v26 = vadd.f32 %v5515_v12, %v846_v49 }
 0x312   : > { %v2144_v32 = vadd.f32 %v4316_v42, %v2143_v11  ;;  %v3959_v5 = vpack.c.bf16 %v847_v26, %v845_v48 }
 0x313   : > { %v4318_v36 = vpop.eup %4317 }
 0x314   : > { %v2155_v28 = vmul.f32 %v4318_v36, %v5572_v10  ;;  %v1717_v0 = vpop.xlane.xlu1 %1716  ;;  %v2148_v46 = vsel %vm2147_vm6, %v4316_v42, %v2144_v32  ;;  %v5583_v57 = vpop.xlane.xlu2 %1940  ;;  %4124 = vst [vmem:[#allocation2 + $0x30] sm:$0xff] %v3959_v5   ;;  %vm2160_vm8 = vweird.f32 %v4318_v36 }
 0x315   : > { %v1793_v31 = vsub.f32 %v5351_v1, %v1717_v0  ;;  %v2153_v39 = vsel %vm2150_vm7, %v2152_v45, %v2148_v46  ;;  %4319 = vrcp.f32 %v5583_v57  ;;  %v2165_v1 = vand.u32 2147483648, %v5572_v10  ;;  %vm5593_vm10 = vmor %vm2159_vm9, %vm2160_vm8  ;;  %v1396_v32 = vpop.f32.mrf.mxu1 }
 0x316   : > { %v2156_v37 = vsub.f32 1.0, %v2155_v28  ;;  %v2695_v59 = vmul.f32 %v5281_v20, %v2153_v39  ;;  %v2163_v20 = vand.u32 2147483647, %v5572_v10  ;;  %v1451_v28 = vmax.f32 %v1395_v21, 0.0 }
 0x317   : > { %v1860_v8 = vmul.f32 1.442695, %v1793_v31  ;;  %v849_v51 = vpop.f32.mrf.mxu0  ;;  %v2166_v44 = vor.u32 1.1754944e-38, %v2165_v1  ;;  %vm2173_vm13 = vweird.f32 %v5583_v57 }
 0x318   : > { %v2157_v62 = vmul.f32 %v4318_v36, %v2156_v37  ;;  %v2743_v4 = vpack.c.bf16 %v2695_v59, %v2695_v59  ;;  %v4009_v42 = vpack.c.bf16 %v2695_v59, %v2694_v52  ;;  %vm2164_vm11 = vcmp.eq.f32.partialorder %v2163_v20, 8.507059e+37 }
 0x319   : > { %4321 = vpow2.f32 %v1860_v8  ;;  %v1397_v52 = vadd.f32 %v5330_v22, %v1396_v32  ;;  %v850_v49 = vadd.f32 %v5515_v12, %v849_v51  ;;  %v5646_v32 = vadd.f32 %v5430_v60, %v5591_v40 }
 0x31a   : > { %v2158_v18 = vadd.f32 %v4318_v36, %v2157_v62  ;;  %v2855_v58 = vunpack.c.l.b16 %v2743_v4  ;;  %4133 = vst [vmem:[%s5324_s12 + $0x20] sm:$0xff] %v4009_v42  }
 0x31b   : > { %v4320_v17 = vpop.eup %4319  ;;  %v1452_v46 = vmax.f32 %v1397_v52, 0.0 }
 0x31c   : > { %v1719_v19 = vpop.xlane.xlu1 %1718  ;;  %v2169_v35 = vmul.f32 %v4320_v17, %v5583_v57  ;;  %v5599_v43 = vpop.xlane.xlu2 %1942  ;;  %v2866_v9 = vpack.c.b16 %v2855_v58, %v2854_v25  ;;  %v2162_v13 = vsel %vm5593_vm10, %v4318_v36, %v2158_v18  ;;  %vm2174_vm12 = vweird.f32 %v4320_v17 }
 0x31d   : > { %v1794_v15 = vsub.f32 %v5396_v54, %v1719_v19  ;;  %4323 = vrcp.f32 %v5599_v43  ;;  %v2179_v54 = vand.u32 2147483648, %v5583_v57  ;;  %v2167_v45 = vsel %vm2164_vm11, %v2166_v44, %v2162_v13  ;;  %vm2175_vm14 = vmor %vm2173_vm13, %vm2174_vm12 }
 0x31e   : > { %v2170_v11 = vsub.f32 1.0, %v2169_v35  ;;  %2954 = vmatmul.bf16.gmra.mxu3 %v2866_v9  ;;  %v2177_v36 = vand.u32 2147483647, %v5583_v57  ;;  %v2696_v37 = vmul.f32 %v5311_v7, %v2167_v45  ;;  %v5627_v57 = vpop.f32.mrf.mxu2  ;;  %v1478_v1 = vpack.c.bf16 %v1452_v46, %v1451_v28 }
 0x31f   : > { %v5604_v10 = vpop.eup %4321  ;;  %v1862_v33 = vmul.f32 1.442695, %v1794_v15  ;;  %v851_v0 = vpop.f32.mrf.mxu0  ;;  %v2180_v59 = vor.u32 1.1754944e-38, %v2179_v54  ;;  %v2193_v27 = vand.u32 2147483648, %v5599_v43  ;;  %v2191_v9 = vand.u32 2147483647, %v5599_v43 }
 0x320   : > { %1956 = vadd.xlane.f32.xlu0 %v5604_v10  ;;  %v2171_v34 = vmul.f32 %v4320_v17, %v2170_v11  ;;  %v852_v8 = vadd.f32 %v5515_v12, %v851_v0  ;;  %vm2178_vm15 = vcmp.eq.f32.partialorder %v2177_v36, 8.507059e+37  ;;  %v1399_v25 = vpop.f32.mrf.mxu1  ;;  %v2744_v20 = vpack.c.bf16 %v2696_v37, %v2696_v37  ;;  %1662 = vmatmul.bf16.gmra.mxu2 %v1478_v1 }
 0x321   : > { %4325 = vpow2.f32 %v1862_v33  ;;  %vm2187_vm1 = vweird.f32 %v5599_v43  ;;  %v1400_v45 = vadd.f32 %v5330_v22, %v1399_v25  ;;  %vm2192_vm3 = vcmp.eq.f32.partialorder %v2191_v9, 8.507059e+37 }
 0x322   : > { %v2172_v48 = vadd.f32 %v4320_v17, %v2171_v34  ;;  %v2935_v31 = vpop.f32.mrf.mxu3  ;;  %v3964_v18 = vpack.c.bf16 %v852_v8, %v850_v49  ;;  %v2856_v33 = vunpack.c.l.b16 %v2744_v20  ;;  %v2194_v34 = vor.u32 1.1754944e-38, %v2193_v27 }
 0x323   : > { %v5612_v26 = vpop.eup %4323  ;;  %3265 = vst [vmem:[%s5623_s5] sm:$0xff] %v2935_v31  ;;  %v5684_v27 = vadd.f32 %v5430_v60, %v5627_v57 }
 0x324   : > { %v5615_v39 = vpop.xlane.xlu0 %1944  ;;  %v2183_v50 = vmul.f32 %v5612_v26, %v5599_v43  ;;  %v1721_v5 = vpop.xlane.xlu2 %1720  ;;  %v2176_v24 = vsel %vm2175_vm14, %v4320_v17, %v2172_v48  ;;  %4125 = vst [vmem:[#allocation2 + $0x58] sm:$0xff] %v3964_v18   ;;  %vm2188_vm0 = vweird.f32 %v5612_v26 }
 0x325   : > { %4327 = vrcp.f32 %v5615_v39  ;;  %v1795_v7 = vsub.f32 %v5434_v53, %v1721_v5  ;;  %v2181_v42 = vsel %vm2178_vm15, %v2180_v59, %v2176_v24  ;;  %vm5650_vm2 = vmor %vm2187_vm1, %vm2188_vm0  ;;  %v2205_v49 = vand.u32 2147483647, %v5615_v39 }
 0x326   : > { %v2184_v4 = vsub.f32 1.0, %v2183_v50  ;;  %v2697_v51 = vmul.f32 %v5363_v38, %v2181_v42  ;;  %v2207_v28 = vand.u32 2147483648, %v5615_v39  ;;  %v5663_v0 = vpop.f32.mrf.mxu2  ;;  %vm2201_vm5 = vweird.f32 %v5615_v39 }
 0x327   : > { %v5630_v62 = vpop.eup %4325  ;;  %v1864_v58 = vmul.f32 1.442695, %v1795_v7  ;;  %v854_v38 = vpop.f32.mrf.mxu0  ;;  %vm2206_vm7 = vcmp.eq.f32.partialorder %v2205_v49, 8.507059e+37 }
 0x328   : > { %1958 = vadd.xlane.f32.xlu0 %v5630_v62  ;;  %v2185_v19 = vmul.f32 %v5612_v26, %v2184_v4  ;;  %v2745_v53 = vpack.c.bf16 %v2697_v51, %v2697_v51  ;;  %v4014_v17 = vpack.c.bf16 %v2697_v51, %v2696_v37  ;;  %v1401_v46 = vpop.f32.mrf.mxu1  ;;  %v2208_v7 = vor.u32 1.1754944e-38, %v2207_v28 }
 0x329   : > { %4329 = vpow2.f32 %v1864_v58  ;;  %v1402_v59 = vadd.f32 %v5330_v22, %v1401_v46  ;;  %v855_v4 = vadd.f32 %v5515_v12, %v854_v38 }
 0x32a   : > { %v2186_v15 = vadd.f32 %v5612_v26, %v2185_v19  ;;  %v2937_v44 = vpop.f32.mrf.mxu3  ;;  %v2857_v21 = vunpack.c.l.b16 %v2745_v53  ;;  %4134 = vst [vmem:[%s5324_s12 + $0x28] sm:$0xff] %v4014_v17  }
 0x32b   : > { %v4328_v35 = vpop.eup %4327  ;;  %3266 = vst [vmem:[%s5623_s5 + $0x8] sm:$0xff] %v2937_v44  ;;  %v1454_v18 = vmax.f32 %v1402_v59, 0.0 }
 0x32c   : > { %v2197_v13 = vmul.f32 %v4328_v35, %v5615_v39  ;;  %v5641_v11 = vpop.xlane.xlu0 %1946  ;;  %v1723_v43 = vpop.xlane.xlu2 %1722  ;;  %v2867_v48 = vpack.c.b16 %v2857_v21, %v2856_v33  ;;  %v2190_v40 = vsel %vm5650_vm2, %v5612_v26, %v2186_v15  ;;  %vm2202_vm4 = vweird.f32 %v4328_v35 }
 0x32d   : > { %4331 = vrcp.f32 %v5641_v11  ;;  %v1796_v36 = vsub.f32 %v5476_v2, %v1723_v43  ;;  %v2195_v2 = vsel %vm2192_vm3, %v2194_v34, %v2190_v40  ;;  %v1453_v26 = vmax.f32 %v1400_v45, 0.0  ;;  %vm2203_vm6 = vmor %vm2201_vm5, %vm2202_vm4 }
 0x32e   : > { %v2198_v52 = vsub.f32 1.0, %v2197_v13  ;;  %2959 = vmatmul.bf16.gmra.mxu3 %v2867_v48  ;;  %v2698_v24 = vmul.f32 %v5399_v16, %v2195_v2  ;;  %v5692_v44 = vpop.f32.mrf.mxu2  ;;  %v2221_v21 = vand.u32 2147483648, %v5641_v11  ;;  %vm2215_vm9 = vweird.f32 %v5641_v11 }
 0x32f   : > { %v5665_v31 = vpop.eup %4329  ;;  %v1866_v8 = vmul.f32 1.442695, %v1796_v36  ;;  %v856_v42 = vpop.f32.mrf.mxu0  ;;  %v1479_v16 = vpack.c.bf16 %v1454_v18, %v1453_v26 }
 0x330   : > { %v2199_v37 = vmul.f32 %v4328_v35, %v2198_v52  ;;  %1736 = vmax.xlane.f32.xlu0 %v5646_v32  ;;  %1960 = vadd.xlane.f32.xlu1 %v5665_v31  ;;  %v857_v19 = vadd.f32 %v5515_v12, %v856_v42  ;;  %v1404_v13 = vpop.f32.mrf.mxu1  ;;  %v2219_v52 = vand.u32 2147483647, %v5641_v11  ;;  %v2222_v26 = vor.u32 1.1754944e-38, %v2221_v21 }
 0x331   : > { %4333 = vpow2.f32 %v1866_v8  ;;  %1667 = vmatmul.bf16.gmra.mxu2 %v1479_v16  ;;  %v5712_v8 = vadd.f32 %v5430_v60, %v5663_v0 }
 0x332   : > { %v2200_v50 = vadd.f32 %v4328_v35, %v2199_v37  ;;  %v2940_v22 = vpop.f32.mrf.mxu3  ;;  %v3969_v9 = vpack.c.bf16 %v857_v19, %v855_v4  ;;  %vm2220_vm11 = vcmp.eq.f32.partialorder %v2219_v52, 8.507059e+37 }
 0x333   : > { %v5671_v5 = vpop.eup %4331  ;;  %3267 = vst [vmem:[%s5623_s5 + $0x10] sm:$0xff] %v2940_v22 }
 0x334   : > { %v2211_v1 = vmul.f32 %v5671_v5, %v5641_v11  ;;  %v1725_v25 = vpop.xlane.xlu0 %1724  ;;  %v2204_v58 = vsel %vm2203_vm6, %v4328_v35, %v2200_v50  ;;  %v5678_v39 = vpop.xlane.xlu1 %1948  ;;  %v2746_v35 = vpack.c.bf16 %v2698_v24, %v2698_v24  ;;  %4126 = vst [vmem:[#allocation2 + $0x80] sm:$0xff] %v3969_v9   ;;  %vm2216_vm8 = vweird.f32 %v5671_v5 }
 0x335   : > { %v1797_v51 = vsub.f32 %v5503_v61, %v1725_v25  ;;  %v2209_v20 = vsel %vm2206_vm7, %v2208_v7, %v2204_v58  ;;  %4335 = vrcp.f32 %v5678_v39  ;;  %vm5701_vm10 = vmor %vm2215_vm9, %vm2216_vm8  ;;  %v2235_v0 = vand.u32 2147483648, %v5678_v39 }
 0x336   : > { %v2212_v53 = vsub.f32 1.0, %v2211_v1  ;;  %v2699_v15 = vmul.f32 %v5439_v56, %v2209_v20  ;;  %v2858_v54 = vunpack.c.l.b16 %v2746_v35  ;;  %v2233_v18 = vand.u32 2147483647, %v5678_v39  ;;  %v1640_v22 = vpop.f32.mrf.mxu2 }
 0x337   : > { %v1868_v17 = vmul.f32 1.442695, %v1797_v51  ;;  %v5688_v38 = vpop.eup %4333  ;;  %v859_v43 = vpop.f32.mrf.mxu0  ;;  %vm2229_vm13 = vweird.f32 %v5678_v39  ;;  %v2236_v35 = vor.u32 1.1754944e-38, %v2235_v0 }
 0x338   : > { %v2213_v61 = vmul.f32 %v5671_v5, %v2212_v53  ;;  %1738 = vmax.xlane.f32.xlu0 %v5684_v27  ;;  %1962 = vadd.xlane.f32.xlu1 %v5688_v38  ;;  %v2747_v57 = vpack.c.bf16 %v2699_v15, %v2699_v15  ;;  %v4019_v33 = vpack.c.bf16 %v2699_v15, %v2698_v24  ;;  %v1406_v24 = vpop.f32.mrf.mxu1  ;;  %vm2234_vm15 = vcmp.eq.f32.partialorder %v2233_v18, 8.507059e+37 }
 0x339   : > { %4337 = vpow2.f32 %v1868_v17  ;;  %v860_v25 = vadd.f32 %v5515_v12, %v859_v43 }
 0x33a   : > { %v2214_v56 = vadd.f32 %v5671_v5, %v2213_v61  ;;  %v2859_v34 = vunpack.c.l.b16 %v2747_v57  ;;  %4135 = vst [vmem:[%s5324_s12 + $0x30] sm:$0xff] %v4019_v33   ;;  %v2942_v36 = vpop.f32.mrf.mxu3 }
 0x33b   : > { %v4336_v45 = vpop.eup %4335  ;;  %3268 = vst [vmem:[%s5623_s5 + $0x18] sm:$0xff] %v2942_v36 }
 0x33c   : > { %v1727_v48 = vpop.xlane.xlu0 %1726  ;;  %v2225_v49 = vmul.f32 %v4336_v45, %v5678_v39  ;;  %v5707_v28 = vpop.xlane.xlu1 %1950  ;;  %v2868_v37 = vpack.c.b16 %v2859_v34, %v2858_v54  ;;  %v2218_v11 = vsel %vm5701_vm10, %v5671_v5, %v2214_v56  ;;  %vm2230_vm12 = vweird.f32 %v4336_v45 }
 0x33d   : > { %v1798_v46 = vsub.f32 %v5523_v6, %v1727_v48  ;;  %4339 = vrcp.f32 %v5707_v28  ;;  %v4454_v6 = vld [vmem:[%s6244_s2] ss:$0 sm:$0xff]  ;;  %v2223_v5 = vsel %vm2220_vm11, %v2222_v26, %v2218_v11  ;;  %vm2231_vm14 = vmor %vm2229_vm13, %vm2230_vm12  ;;  %v2247_v48 = vand.u32 2147483647, %v5707_v28 }
 0x33e   : > { %v2226_v59 = vsub.f32 1.0, %v2225_v49  ;;  %v1405_v7 = vadd.f32 %v4454_v6, %v1404_v13  ;;  %2964 = vmatmul.bf16.gmra.mxu3 %v2868_v37  ;;  %v1407_v42 = vadd.f32 %v4454_v6, %v1406_v24  ;;  %v2700_v17 = vmul.f32 %v5472_v41, %v2223_v5 }
 0x33f   : > { %v5718_v2 = vpop.eup %4337  ;;  %v1870_v50 = vmul.f32 1.442695, %v1798_v46  ;;  %v861_v51 = vpop.f32.mrf.mxu0  ;;  %v5738_v13 = vadd.f32 %v5430_v60, %v5692_v44  ;;  %v2249_v44 = vand.u32 2147483648, %v5707_v28  ;;  %vm2243_vm1 = vweird.f32 %v5707_v28 }
 0x340   : > { %1964 = vadd.xlane.f32.xlu2 %v5718_v2  ;;  %v2227_v4 = vmul.f32 %v4336_v45, %v2226_v59  ;;  %1740 = vmax.xlane.f32.xlu1 %v5712_v8  ;;  %v1455_v58 = vmax.f32 %v1405_v7, 0.0  ;;  %v1456_v20 = vmax.f32 %v1407_v42, 0.0  ;;  %v862_v15 = vadd.f32 %v5515_v12, %v861_v51  ;;  %v1643_v7 = vpop.f32.mrf.mxu2 }
 0x341   : > { %4341 = vpow2.f32 %v1870_v50  ;;  %v2748_v52 = vpack.c.bf16 %v2700_v17, %v2700_v17  ;;  %vm2248_vm3 = vcmp.eq.f32.partialorder %v2247_v48, 8.507059e+37  ;;  %v2250_v50 = vor.u32 1.1754944e-38, %v2249_v44 }
 0x342   : > { %v2228_v1 = vadd.f32 %v4336_v45, %v2227_v4  ;;  %v2945_v16 = vpop.f32.mrf.mxu3  ;;  %v3974_v21 = vpack.c.bf16 %v862_v15, %v860_v25  ;;  %v1480_v54 = vpack.c.bf16 %v1456_v20, %v1455_v58  ;;  %v5754_v6 = vadd.f32 %v5430_v60, %v1640_v22 }
 0x343   : > { %v4340_v19 = vpop.eup %4339  ;;  %3269 = vst [vmem:[%s5623_s5 + $0x20] sm:$0xff] %v2945_v16  ;;  %v2860_v26 = vunpack.c.l.b16 %v2748_v52 }
 0x344   : > { %v5729_v53 = vpop.xlane.xlu2 %1952  ;;  %v2239_v9 = vmul.f32 %v4340_v19, %v5707_v28  ;;  %v1729_v61 = vpop.xlane.xlu1 %1728  ;;  %v2232_v57 = vsel %vm2231_vm14, %v4336_v45, %v2228_v1  ;;  %4127 = vst [vmem:[#allocation2 + $0xb8] sm:$0xff] %v3974_v21   ;;  %1672 = vmatmul.bf16.gmra.mxu2 %v1480_v54  ;;  %vm2244_vm0 = vweird.f32 %v4340_v19 }
 0x345   : > { %4343 = vrcp.f32 %v5729_v53  ;;  %v1799_v39 = vsub.f32 %v5535_v47, %v1729_v61  ;;  %v2237_v56 = vsel %vm2234_vm15, %v2236_v35, %v2232_v57  ;;  %vm2245_vm2 = vmor %vm2243_vm1, %vm2244_vm0  ;;  %v2263_v42 = vand.u32 2147483648, %v5729_v53 }
 0x346   : > { %v2240_v41 = vsub.f32 1.0, %v2239_v9  ;;  %v2701_v43 = vmul.f32 %v5506_v29, %v2237_v56  ;;  %v2261_v58 = vand.u32 2147483647, %v5729_v53  ;;  %vm2257_vm5 = vweird.f32 %v5729_v53 }
 0x347   : > { %v5741_v33 = vpop.eup %4341  ;;  %v1872_v34 = vmul.f32 1.442695, %v1799_v39  ;;  %v864_v46 = vpop.f32.mrf.mxu0  ;;  %v2264_v22 = vor.u32 1.1754944e-38, %v2263_v42  ;;  %v3852_v42 = vld [vmem:[#allocation2 + $0x80] sm:$0xff] }
 0x348   : > { %1966 = vadd.xlane.f32.xlu2 %v5741_v33  ;;  %v2241_v36 = vmul.f32 %v4340_v19, %v2240_v41  ;;  %1742 = vmax.xlane.f32.xlu1 %v5738_v13  ;;  %v2749_v47 = vpack.c.bf16 %v2701_v43, %v2701_v43  ;;  %v4024_v45 = vpack.c.bf16 %v2701_v43, %v2700_v17  ;;  %vm2262_vm7 = vcmp.eq.f32.partialorder %v2261_v58, 8.507059e+37  ;;  %v1645_v41 = vpop.f32.mrf.mxu2  ;;  %v3850_v58 = vld [vmem:[#allocation2 + $0x30] sm:$0xff] }
 0x349   : > { %4345 = vpow2.f32 %v1872_v34  ;;  %v865_v20 = vadd.f32 %v5515_v12, %v864_v46 }
 0x34a   : > { %v2242_v49 = vadd.f32 %v4340_v19, %v2241_v36  ;;  %v2947_v37 = vpop.f32.mrf.mxu3  ;;  %v2861_v59 = vunpack.c.l.b16 %v2749_v47  ;;  %4136 = vst [vmem:[%s5324_s12 + $0x38] sm:$0xff] %v4024_v45  }
 0x34b   : > { %v4344_v40 = vpop.eup %4343  ;;  %3270 = vst [vmem:[%s5623_s5 + $0x28] sm:$0xff] %v2947_v37 }
 0x34c   : > { %v2253_v29 = vmul.f32 %v4344_v40, %v5729_v53  ;;  %v5750_v11 = vpop.xlane.xlu2 %1954  ;;  %v1731_v0 = vpop.xlane.xlu1 %1730  ;;  %v2869_v4 = vpack.c.b16 %v2861_v59, %v2860_v26  ;;  %v2246_v5 = vsel %vm2245_vm2, %v4340_v19, %v2242_v49  ;;  %vm2258_vm4 = vweird.f32 %v4344_v40  ;;  %v5773_v53 = vld [vmem:[%s6246_s4] ss:$0 sm:$0xff] }
 0x34d   : > { %v1800_v28 = vsub.f32 %v5544_v30, %v1731_v0  ;;  %v2251_v18 = vsel %vm2248_vm3, %v2250_v50, %v2246_v5  ;;  %vm2259_vm6 = vmor %vm2257_vm5, %vm2258_vm4  ;;  %vm2271_vm9 = vweird.f32 %v5750_v11 }
 0x34e   : > { %v2254_v24 = vsub.f32 1.0, %v2253_v29  ;;  %2969 = vmatmul.bf16.gmra.mxu3 %v2869_v4  ;;  %v2702_v30 = vmul.f32 %v5526_v14, %v2251_v18  ;;  %v5776_v14 = vadd.f32 %v5773_v53, %v1643_v7  ;;  %v3853_v4 = vld [vmem:[#allocation2 + $0xb8] sm:$0xff] }
 0x34f   : > { %v5759_v1 = vpop.eup %4345  ;;  %v1874_v51 = vmul.f32 1.442695, %v1800_v28  ;;  %v866_v19 = vpop.f32.mrf.mxu0  ;;  %v3851_v18 = vld [vmem:[#allocation2 + $0x58] sm:$0xff] }
 0x350   : > { %v2255_v25 = vmul.f32 %v4344_v40, %v2254_v24  ;;  %1744 = vmax.xlane.f32.xlu2 %v5754_v6  ;;  %1968 = vadd.xlane.f32.xlu0 %v5759_v1  ;;  %v867_v61 = vadd.f32 %v5515_v12, %v866_v19  ;;  %v2750_v57 = vpack.c.bf16 %v2702_v30, %v2702_v30  ;;  %v1648_v46 = vpop.f32.mrf.mxu2 }
 0x351   : > { %4347 = vpow2.f32 %v1874_v51  ;;  %v5798_v50 = vadd.f32 %v5773_v53, %v1648_v46  ;;  %v3849_v51 = vld [vmem:[#allocation2 + $0x68] sm:$0xff] }
 0x352   : > { %v2256_v60 = vadd.f32 %v4344_v40, %v2255_v25  ;;  %v2950_v16 = vpop.f32.mrf.mxu3  ;;  %v3979_v21 = vpack.c.bf16 %v867_v61, %v865_v20  ;;  %v2991_v43 = vunpack.c.l.b16 %v2750_v57 }
 0x353   : > { %3271 = vst [vmem:[%s5623_s5 + $0x30] sm:$0xff] %v2950_v16 }
 0x354   : > { %v1733_v17 = vpop.xlane.xlu2 %1732  ;;  %v2260_v15 = vsel %vm2259_vm6, %v4344_v40, %v2256_v60  ;;  %4128 = vst [vmem:[#allocation2 + $0x20] sm:$0xff] %v3979_v21   ;;  %v5789_v40 = vadd.f32 %v5773_v53, %v1645_v41 }
 0x355   : > { %v1801_v35 = vsub.f32 %v5549_v23, %v1733_v17  ;;  %v2265_v9 = vsel %vm2262_vm7, %v2264_v22, %v2260_v15  ;;  %v3848_v22 = vld [vmem:[#allocation2 + $0xa8] sm:$0xff]  ;;  %v2277_v17 = vand.u32 2147483648, %v5750_v11 }
 0x356   : > { %v2703_v39 = vmul.f32 %v5532_v63, %v2265_v9 }
 0x357   : > { %v1876_v56 = vmul.f32 1.442695, %v1801_v35  ;;  %v5779_v23 = vpop.eup %4347  ;;  %v869_v36 = vpop.f32.mrf.mxu0  ;;  %v2275_v35 = vand.u32 2147483647, %v5750_v11  ;;  %v2278_v57 = vor.u32 1.1754944e-38, %v2277_v17 }
 0x358   : > { %1746 = vmax.xlane.f32.xlu2 %v5776_v14  ;;  %v2751_v54 = vpack.c.bf16 %v2703_v39, %v2703_v39  ;;  %v4029_v34 = vpack.c.bf16 %v2703_v39, %v2702_v30  ;;  %1970 = vadd.xlane.f32.xlu0 %v5779_v23  ;;  %v870_v29 = vadd.f32 %v5515_v12, %v869_v36  ;;  %v1650_v7 = vpop.f32.mrf.mxu2 }
 0x359   : > { %4349 = vpow2.f32 %v1876_v56  ;;  %v5803_v0 = vadd.f32 %v5773_v53, %v1650_v7  ;;  %vm2276_vm11 = vcmp.eq.f32.partialorder %v2275_v35, 8.507059e+37 }
 0x35a   : > { %v2992_v52 = vunpack.c.l.b16 %v2751_v54  ;;  %4137 = vst [vmem:[%s5324_s12 + $0x40] sm:$0xff] %v4029_v34   ;;  %v2952_v63 = vpop.f32.mrf.mxu3 }
 0x35b   : > { %3272 = vst [vmem:[%s5623_s5 + $0x38] sm:$0xff] %v2952_v63 }
 0x35c   : > { %v1735_v48 = vpop.xlane.xlu2 %1734  ;;  %v3007_v44 = vpack.c.b16 %v2992_v52, %v2991_v43 }
 0x35d   : > { %v1802_v47 = vsub.f32 %v5555_v3, %v1735_v48 }
 0x35e   : > { %3079 = vmatmul.bf16.vlgmr.msrb.gmra.mxu3 %v3007_v44 }
 0x35f   : > { %v5786_v45 = vpop.eup %4349  ;;  %v1878_v49 = vmul.f32 1.442695, %v1802_v47  ;;  %v871_v37 = vpop.f32.mrf.mxu0 }
 0x360   : > { %1972 = vadd.xlane.f32.xlu1 %v5786_v45  ;;  %1748 = vmax.xlane.f32.xlu0 %v5789_v40  ;;  %v872_v26 = vadd.f32 %v5515_v12, %v871_v37  ;;  %v3854_v12 = vld [vmem:[#allocation2 + $0x20] sm:$0xff]  ;;  %v1653_v28 = vpop.f32.mrf.mxu2 }
 0x361   : > { %4351 = vpow2.f32 %v1878_v49  ;;  %v5807_v5 = vadd.f32 %v5773_v53, %v1653_v28 }
 0x362   : > { %v3984_v59 = vpack.c.bf16 %v872_v26, %v870_v29  ;;  %4353 = vrcp.f32 %v5750_v11 }
 0x364   : > { %4129 = vst [vmem:[#allocation2 + $0x8] sm:$0xff] %v3984_v59  }
 0x367   : > { %v5795_v3 = vpop.eup %4351 }
 0x368   : > { %1974 = vadd.xlane.f32.xlu1 %v5795_v3  ;;  %1750 = vmax.xlane.f32.xlu0 %v5798_v50  ;;  %v4354_v25 = vpop.eup %4353 }
 0x369   : > { %v2267_v60 = vmul.f32 %v4354_v25, %v5750_v11  ;;  %vm2272_vm8 = vweird.f32 %v4354_v25 }
 0x36a   : > { %vm2273_vm10 = vmor %vm2271_vm9, %vm2272_vm8 }
 0x36b   : > { %v3855_v24 = vld [vmem:[#allocation2 + $0x8] sm:$0xff]  ;;  %v2268_v30 = vsub.f32 1.0, %v2267_v60  ;;  %v1655_v60 = vpop.f32.mrf.mxu2 }
 0x36c   : > { %3216 = vmatpush.bf16.msra.mxu3 %v3855_v24 }
 0x36d   : > { %v2269_v19 = vmul.f32 %v4354_v25, %v2268_v30 }
 0x36f   : > { %v2270_v16 = vadd.f32 %v4354_v25, %v2269_v19 }
 0x370   : > { %1752 = vmax.xlane.f32.xlu1 %v5803_v0  ;;  %3217 = vmatpush.bf16.msra.mxu3 %v3854_v12 }
 0x371   : > { %v2274_v39 = vsel %vm2273_vm10, %v4354_v25, %v2270_v16 }
 0x372   : > { %v2279_v34 = vsel %vm2276_vm11, %v2278_v57, %v2274_v39 }
 0x373   : > { %v2704_v63 = vmul.f32 %v5541_v55, %v2279_v34 }
 0x374   : > { %3218 = vmatpush.bf16.msra.mxu3 %v3853_v4 }
 0x375   : > { %v2752_v7 = vpack.c.bf16 %v2704_v63, %v2704_v63 }
 0x378   : > { %1754 = vmax.xlane.f32.xlu1 %v5807_v5  ;;  %3219 = vmatpush.bf16.msra.mxu3 %v3852_v42 }
 0x37c   : > { %3220 = vmatpush.bf16.msra.mxu3 %v3851_v18  ;;  %v2993_v18 = vunpack.c.l.b16 %v2752_v7 }
 0x380   : > { %3221 = vmatpush.bf16.msra.mxu3 %v3850_v58 }
 0x384   : > { %3222 = vmatpush.bf16.msra.mxu3 %v3849_v51 }
 0x388   : > { %3223 = vmatpush.bf16.msra.mxu3 %v3848_v22 }
 0x393   : > { %v1957_v20 = vpop.xlane.xlu0 %1956 }
 0x394   : > { %4355 = vrcp.f32 %v1957_v20  ;;  %v2291_v56 = vand.u32 2147483648, %v1957_v20  ;;  %v2289_v54 = vand.u32 2147483647, %v1957_v20  ;;  %vm2285_vm13 = vweird.f32 %v1957_v20 }
 0x396   : > { %v2292_v36 = vor.u32 1.1754944e-38, %v2291_v56  ;;  %vm2290_vm15 = vcmp.eq.f32.partialorder %v2289_v54, 8.507059e+37 }
 0x39a   : > { %v4356_v15 = vpop.eup %4355 }
 0x39b   : > { %v2281_v9 = vmul.f32 %v4356_v15, %v1957_v20  ;;  %v1959_v61 = vpop.xlane.xlu0 %1958  ;;  %vm2286_vm12 = vweird.f32 %v4356_v15 }
 0x39c   : > { %4357 = vrcp.f32 %v1959_v61  ;;  %vm2287_vm14 = vmor %vm2285_vm13, %vm2286_vm12  ;;  %v2305_v4 = vand.u32 2147483648, %v1959_v61  ;;  %vm2299_vm1 = vweird.f32 %v1959_v61  ;;  %v2303_v58 = vand.u32 2147483647, %v1959_v61 }
 0x39d   : > { %v2282_v41 = vsub.f32 1.0, %v2281_v9 }
 0x39e   : > { %vm2304_vm3 = vcmp.eq.f32.partialorder %v2303_v58, 8.507059e+37 }
 0x39f   : > { %v2283_v21 = vmul.f32 %v4356_v15, %v2282_v41 }
 0x3a1   : > { %v2284_v43 = vadd.f32 %v4356_v15, %v2283_v21  ;;  %v2955_v11 = vpop.f32.mrf.mxu3 }
 0x3a2   : > { %v4358_v52 = vpop.eup %4357  ;;  %3273 = vst [vmem:[%s5623_s5 + $0x40] sm:$0xff] %v2955_v11  ;;  %v5840_v11 = vpop.f32.mrf.mxu2 }
 0x3a3   : > { %v2295_v48 = vmul.f32 %v4358_v52, %v1959_v61  ;;  %v1737_v44 = vpop.xlane.xlu0 %1736  ;;  %v2288_v47 = vsel %vm2287_vm14, %v4356_v15, %v2284_v43  ;;  %v1961_v49 = vpop.xlane.xlu1 %1960  ;;  %vm2300_vm0 = vweird.f32 %v4358_v52  ;;  %v2306_v15 = vor.u32 1.1754944e-38, %v2305_v4 }
 0x3a4   : > { %v1803_v46 = vsub.f32 %v5646_v32, %v1737_v44  ;;  %v2293_v29 = vsel %vm2290_vm15, %v2292_v36, %v2288_v47  ;;  %4359 = vrcp.f32 %v1961_v49  ;;  %vm5821_vm2 = vmor %vm2299_vm1, %vm2300_vm0  ;;  %v2319_v39 = vand.u32 2147483648, %v1961_v49 }
 0x3a5   : > { %v2296_v37 = vsub.f32 1.0, %v2295_v48  ;;  %v2705_v59 = vmul.f32 %v5604_v10, %v2293_v29  ;;  %v2317_v57 = vand.u32 2147483647, %v1961_v49  ;;  %vm2313_vm5 = vweird.f32 %v1961_v49 }
 0x3a6   : > { %v1880_v26 = vmul.f32 1.442695, %v1803_v46  ;;  %v2320_v43 = vor.u32 1.1754944e-38, %v2319_v39 }
 0x3a7   : > { %v2297_v24 = vmul.f32 %v4358_v52, %v2296_v37  ;;  %v2753_v55 = vpack.c.bf16 %v2705_v59, %v2705_v59  ;;  %v4034_v12 = vpack.c.bf16 %v2705_v59, %v2704_v63  ;;  %vm2318_vm7 = vcmp.eq.f32.partialorder %v2317_v57, 8.507059e+37 }
 0x3a8   : > { %4361 = vpow2.f32 %v1880_v26 }
 0x3a9   : > { %v2298_v28 = vadd.f32 %v4358_v52, %v2297_v24  ;;  %v2957_v42 = vpop.f32.mrf.mxu3  ;;  %v2994_v25 = vunpack.c.l.b16 %v2753_v55  ;;  %4138 = vst [vmem:[%s5324_s12 + $0x48] sm:$0xff] %v4034_v12  }
 0x3aa   : > { %v4360_v32 = vpop.eup %4359  ;;  %3274 = vst [vmem:[%s5623_s5 + $0x48] sm:$0xff] %v2957_v42 }
 0x3ab   : > { %v1739_v51 = vpop.xlane.xlu0 %1738  ;;  %v2309_v30 = vmul.f32 %v4360_v32, %v1961_v49  ;;  %v5825_v22 = vpop.xlane.xlu1 %1962  ;;  %v3008_v19 = vpack.c.b16 %v2994_v25, %v2993_v18  ;;  %v2302_v16 = vsel %vm5821_vm2, %v4358_v52, %v2298_v28  ;;  %vm2314_vm4 = vweird.f32 %v4360_v32 }
 0x3ac   : > { %v1804_v20 = vsub.f32 %v5684_v27, %v1739_v51  ;;  %4363 = vrcp.f32 %v5825_v22  ;;  %v2307_v27 = vsel %vm2304_vm3, %v2306_v15, %v2302_v16  ;;  %vm2315_vm6 = vmor %vm2313_vm5, %vm2314_vm4  ;;  %v2333_v26 = vand.u32 2147483648, %v5825_v22 }
 0x3ad   : > { %v2310_v35 = vsub.f32 1.0, %v2309_v30  ;;  %3084 = vmatmul.bf16.gmra.mxu3 %v3008_v19  ;;  %v2706_v34 = vmul.f32 %v5630_v62, %v2307_v27  ;;  %v2331_v55 = vand.u32 2147483647, %v5825_v22  ;;  %vm2327_vm9 = vweird.f32 %v5825_v22  ;;  %v1660_v19 = vpop.f32.mrf.mxu2 }
 0x3ae   : > { %v5831_v17 = vpop.eup %4361  ;;  %v1882_v9 = vmul.f32 1.442695, %v1804_v20  ;;  %v5855_v18 = vadd.f32 %v5773_v53, %v1655_v60 }
 0x3af   : > { %1976 = vadd.xlane.f32.xlu2 %v5831_v17  ;;  %v2311_v61 = vmul.f32 %v4360_v32, %v2310_v35  ;;  %v2754_v29 = vpack.c.bf16 %v2706_v34, %v2706_v34  ;;  %vm2332_vm11 = vcmp.eq.f32.partialorder %v2331_v55, 8.507059e+37 }
 0x3b0   : > { %4365 = vpow2.f32 %v1882_v9 }
 0x3b1   : > { %v2312_v41 = vadd.f32 %v4360_v32, %v2311_v61  ;;  %v2960_v21 = vpop.f32.mrf.mxu3  ;;  %v2995_v4 = vunpack.c.l.b16 %v2754_v29 }
 0x3b2   : > { %v4364_v56 = vpop.eup %4363  ;;  %3275 = vst [vmem:[%s5623_s5 + $0x50] sm:$0xff] %v2960_v21 }
 0x3b3   : > { %v5834_v54 = vpop.xlane.xlu2 %1964  ;;  %v2323_v52 = vmul.f32 %v4364_v56, %v5825_v22  ;;  %v1741_v36 = vpop.xlane.xlu1 %1740  ;;  %v2316_v48 = vsel %vm2315_vm6, %v4360_v32, %v2312_v41  ;;  %vm2328_vm8 = vweird.f32 %v4364_v56  ;;  %v2334_v32 = vor.u32 1.1754944e-38, %v2333_v26 }
 0x3b4   : > { %4367 = vrcp.f32 %v5834_v54  ;;  %v1805_v63 = vsub.f32 %v5712_v8, %v1741_v36  ;;  %v2321_v49 = vsel %vm2318_vm7, %v2320_v43, %v2316_v48  ;;  %vm5858_vm10 = vmor %vm2327_vm9, %vm2328_vm8  ;;  %v2345_v60 = vand.u32 2147483647, %v5834_v54 }
 0x3b5   : > { %v2324_v47 = vsub.f32 1.0, %v2323_v52  ;;  %v2707_v62 = vmul.f32 %v5665_v31, %v2321_v49  ;;  %v2347_v20 = vand.u32 2147483648, %v5834_v54  ;;  %vm2341_vm13 = vweird.f32 %v5834_v54 }
 0x3b6   : > { %v5843_v44 = vpop.eup %4365  ;;  %v1884_v46 = vmul.f32 1.442695, %v1805_v63  ;;  %vm2346_vm15 = vcmp.eq.f32.partialorder %v2345_v60, 8.507059e+37 }
 0x3b7   : > { %1978 = vadd.xlane.f32.xlu2 %v5843_v44  ;;  %v2325_v37 = vmul.f32 %v4364_v56, %v2324_v47  ;;  %v2755_v59 = vpack.c.bf16 %v2707_v62, %v2707_v62  ;;  %v4039_v8 = vpack.c.bf16 %v2707_v62, %v2706_v34  ;;  %v2348_v39 = vor.u32 1.1754944e-38, %v2347_v20 }
 0x3b8   : > { %4369 = vpow2.f32 %v1884_v46 }
 0x3b9   : > { %v2326_v24 = vadd.f32 %v4364_v56, %v2325_v37  ;;  %v2962_v28 = vpop.f32.mrf.mxu3  ;;  %v2996_v42 = vunpack.c.l.b16 %v2755_v59  ;;  %4139 = vst [vmem:[%s5324_s12 + $0x50] sm:$0xff] %v4039_v8  }
 0x3ba   : > { %v4368_v7 = vpop.eup %4367  ;;  %3276 = vst [vmem:[%s5623_s5 + $0x58] sm:$0xff] %v2962_v28 }
 0x3bb   : > { %v2337_v12 = vmul.f32 %v4368_v7, %v5834_v54  ;;  %v5851_v31 = vpop.xlane.xlu2 %1966  ;;  %v1743_v58 = vpop.xlane.xlu1 %1742  ;;  %v3009_v30 = vpack.c.b16 %v2996_v42, %v2995_v4  ;;  %v2330_v22 = vsel %vm5858_vm10, %v4364_v56, %v2326_v24  ;;  %vm2342_vm12 = vweird.f32 %v4368_v7 }
 0x3bc   : > { %4371 = vrcp.f32 %v5851_v31  ;;  %v1806_v10 = vsub.f32 %v5738_v13, %v1743_v58  ;;  %v2335_v13 = vsel %vm2332_vm11, %v2334_v32, %v2330_v22  ;;  %vm2343_vm14 = vmor %vm2341_vm13, %vm2342_vm12  ;;  %v5882_v54 = vadd.f32 %v5773_v53, %v5840_v11 }
 0x3bd   : > { %v2338_v51 = vsub.f32 1.0, %v2337_v12  ;;  %3089 = vmatmul.bf16.gmra.mxu3 %v3009_v30  ;;  %v2708_v27 = vmul.f32 %v5688_v38, %v2335_v13  ;;  %v2361_v29 = vand.u32 2147483648, %v5851_v31  ;;  %vm2355_vm1 = vweird.f32 %v5851_v31 }
 0x3be   : > { %v5869_v16 = vpop.eup %4369  ;;  %v1886_v35 = vmul.f32 1.442695, %v1806_v10  ;;  %v2359_v59 = vand.u32 2147483647, %v5851_v31  ;;  %v5906_v32 = vadd.f32 %v5773_v53, %v1660_v19 }
 0x3bf   : > { %v2339_v15 = vmul.f32 %v4368_v7, %v2338_v51  ;;  %1756 = vmax.xlane.f32.xlu2 %v5855_v18  ;;  %1980 = vadd.xlane.f32.xlu0 %v5869_v16  ;;  %v2756_v48 = vpack.c.bf16 %v2708_v27, %v2708_v27 }
 0x3c0   : > { %4373 = vpow2.f32 %v1886_v35  ;;  %vm2360_vm3 = vcmp.eq.f32.partialorder %v2359_v59, 8.507059e+37 }
 0x3c1   : > { %v2340_v9 = vadd.f32 %v4368_v7, %v2339_v15  ;;  %v2965_v41 = vpop.f32.mrf.mxu3  ;;  %v2997_v37 = vunpack.c.l.b16 %v2756_v48 }
 0x3c2   : > { %v4372_v61 = vpop.eup %4371  ;;  %3277 = vst [vmem:[%s5623_s5 + $0x60] sm:$0xff] %v2965_v41 }
 0x3c3   : > { %v2351_v57 = vmul.f32 %v4372_v61, %v5851_v31  ;;  %v1745_v56 = vpop.xlane.xlu2 %1744  ;;  %v2344_v21 = vsel %vm2343_vm14, %v4368_v7, %v2340_v9  ;;  %v5878_v43 = vpop.xlane.xlu0 %1968  ;;  %vm2356_vm0 = vweird.f32 %v4372_v61  ;;  %v2362_v31 = vor.u32 1.1754944e-38, %v2361_v29 }
 0x3c4   : > { %v1807_v34 = vsub.f32 %v5754_v6, %v1745_v56  ;;  %v2349_v52 = vsel %vm2346_vm15, %v2348_v39, %v2344_v21  ;;  %4375 = vrcp.f32 %v5878_v43  ;;  %v1663_v6 = vpop.f32.mrf.mxu2  ;;  %vm5894_vm2 = vmor %vm2355_vm1, %vm2356_vm0  ;;  %v2373_v22 = vand.u32 2147483647, %v5878_v43 }
 0x3c5   : > { %v2352_v36 = vsub.f32 1.0, %v2351_v57  ;;  %v2709_v63 = vmul.f32 %v5718_v2, %v2349_v52  ;;  %vm2369_vm5 = vweird.f32 %v5878_v43  ;;  %v5922_v56 = vadd.f32 %v5773_v53, %v1663_v6 }
 0x3c6   : > { %v1888_v38 = vmul.f32 1.442695, %v1807_v34  ;;  %v5886_v47 = vpop.eup %4373  ;;  %vm2374_vm7 = vcmp.eq.f32.partialorder %v2373_v22, 8.507059e+37 }
 0x3c7   : > { %v2353_v49 = vmul.f32 %v4372_v61, %v2352_v36  ;;  %1758 = vmax.xlane.f32.xlu2 %v5882_v54  ;;  %1982 = vadd.xlane.f32.xlu0 %v5886_v47  ;;  %v2757_v11 = vpack.c.bf16 %v2709_v63, %v2709_v63  ;;  %v4044_v46 = vpack.c.bf16 %v2709_v63, %v2708_v27 }
 0x3c8   : > { %4377 = vpow2.f32 %v1888_v38 }
 0x3c9   : > { %v2354_v62 = vadd.f32 %v4372_v61, %v2353_v49  ;;  %v2998_v26 = vunpack.c.l.b16 %v2757_v11  ;;  %4140 = vst [vmem:[%s5324_s12 + $0x58] sm:$0xff] %v4044_v46   ;;  %v2967_v8 = vpop.f32.mrf.mxu3 }
 0x3ca   : > { %v4376_v2 = vpop.eup %4375  ;;  %3278 = vst [vmem:[%s5623_s5 + $0x68] sm:$0xff] %v2967_v8 }
 0x3cb   : > { %v1747_v7 = vpop.xlane.xlu2 %1746  ;;  %v2365_v55 = vmul.f32 %v4376_v2, %v5878_v43  ;;  %v1971_v28 = vpop.xlane.xlu0 %1970  ;;  %v3010_v4 = vpack.c.b16 %v2998_v26, %v2997_v37  ;;  %v2358_v42 = vsel %vm5894_vm2, %v4372_v61, %v2354_v62  ;;  %vm2370_vm4 = vweird.f32 %v4376_v2 }
 0x3cc   : > { %v1808_v12 = vsub.f32 %v5776_v14, %v1747_v7  ;;  %4379 = vrcp.f32 %v1971_v28  ;;  %v2375_v14 = vand.u32 2147483648, %v5878_v43  ;;  %v2363_v30 = vsel %vm2360_vm3, %v2362_v31, %v2358_v42  ;;  %v1665_v20 = vpop.f32.mrf.mxu2  ;;  %vm2371_vm6 = vmor %vm2369_vm5, %vm2370_vm4 }
 0x3cd   : > { %v2366_v58 = vsub.f32 1.0, %v2365_v55  ;;  %3094 = vmatmul.bf16.gmra.mxu3 %v3010_v4  ;;  %v2710_v13 = vmul.f32 %v5741_v33, %v2363_v30  ;;  %v2387_v38 = vand.u32 2147483647, %v1971_v28  ;;  %v2389_v63 = vand.u32 2147483648, %v1971_v28 }
 0x3ce   : > { %v5903_v25 = vpop.eup %4377  ;;  %v1890_v51 = vmul.f32 1.442695, %v1808_v12  ;;  %v2376_v9 = vor.u32 1.1754944e-38, %v2375_v14  ;;  %vm2383_vm9 = vweird.f32 %v1971_v28  ;;  %v5932_v26 = vadd.f32 %v5773_v53, %v1665_v20 }
 0x3cf   : > { %1984 = vadd.xlane.f32.xlu1 %v5903_v25  ;;  %v2367_v10 = vmul.f32 %v4376_v2, %v2366_v58  ;;  %1760 = vmax.xlane.f32.xlu0 %v5906_v32  ;;  %v2758_v52 = vpack.c.bf16 %v2710_v13, %v2710_v13  ;;  %vm2388_vm11 = vcmp.eq.f32.partialorder %v2387_v38, 8.507059e+37  ;;  %v2390_v37 = vor.u32 1.1754944e-38, %v2389_v63 }
 0x3d0   : > { %4381 = vpow2.f32 %v1890_v51 }
 0x3d1   : > { %v2368_v60 = vadd.f32 %v4376_v2, %v2367_v10  ;;  %v2970_v15 = vpop.f32.mrf.mxu3 }
 0x3d2   : > { %v4380_v19 = vpop.eup %4379  ;;  %3279 = vst [vmem:[%s5623_s5 + $0x70] sm:$0xff] %v2970_v15 }
 0x3d3   : > { %v5913_v35 = vpop.xlane.xlu1 %1972  ;;  %v2379_v61 = vmul.f32 %v4380_v19, %v1971_v28  ;;  %v1749_v39 = vpop.xlane.xlu0 %1748  ;;  %v2372_v57 = vsel %vm2371_vm6, %v4376_v2, %v2368_v60  ;;  %vm2384_vm8 = vweird.f32 %v4380_v19 }
 0x3d4   : > { %4383 = vrcp.f32 %v5913_v35  ;;  %v1809_v27 = vsub.f32 %v5789_v40, %v1749_v39  ;;  %v2377_v34 = vsel %vm2374_vm7, %v2376_v9, %v2372_v57  ;;  %vm2385_vm10 = vmor %vm2383_vm9, %vm2384_vm8  ;;  %v1668_v2 = vpop.f32.mrf.mxu2  ;;  %v2403_v12 = vand.u32 2147483648, %v5913_v35 }
 0x3d5   : > { %v2380_v21 = vsub.f32 1.0, %v2379_v61  ;;  %v2711_v33 = vmul.f32 %v5759_v1, %v2377_v34  ;;  %v2999_v1 = vunpack.c.l.b16 %v2758_v52  ;;  %v2401_v31 = vand.u32 2147483647, %v5913_v35 }
 0x3d6   : > { %v5919_v41 = vpop.eup %4381  ;;  %v1892_v43 = vmul.f32 1.442695, %v1809_v27  ;;  %vm2397_vm13 = vweird.f32 %v5913_v35  ;;  %v2404_v10 = vor.u32 1.1754944e-38, %v2403_v12 }
 0x3d7   : > { %1986 = vadd.xlane.f32.xlu1 %v5919_v41  ;;  %v2381_v36 = vmul.f32 %v4380_v19, %v2380_v21  ;;  %1762 = vmax.xlane.f32.xlu0 %v5922_v56  ;;  %v2759_v40 = vpack.c.bf16 %v2711_v33, %v2711_v33  ;;  %v4049_v48 = vpack.c.bf16 %v2711_v33, %v2710_v13  ;;  %vm2402_vm15 = vcmp.eq.f32.partialorder %v2401_v31, 8.507059e+37 }
 0x3d8   : > { %4385 = vpow2.f32 %v1892_v43 }
 0x3d9   : > { %v2382_v6 = vadd.f32 %v4380_v19, %v2381_v36  ;;  %v2972_v46 = vpop.f32.mrf.mxu3  ;;  %v3000_v29 = vunpack.c.l.b16 %v2759_v40  ;;  %4141 = vst [vmem:[%s5324_s12 + $0x60] sm:$0xff] %v4049_v48  }
 0x3da   : > { %v4384_v49 = vpop.eup %4383  ;;  %3280 = vst [vmem:[%s5623_s5 + $0x78] sm:$0xff] %v2972_v46 }
 0x3db   : > { %v2393_v11 = vmul.f32 %v4384_v49, %v5913_v35  ;;  %v5928_v62 = vpop.xlane.xlu1 %1974  ;;  %v1751_v59 = vpop.xlane.xlu0 %1750  ;;  %v3011_v24 = vpack.c.b16 %v3000_v29, %v2999_v1  ;;  %v2386_v55 = vsel %vm2385_vm10, %v4380_v19, %v2382_v6  ;;  %vm2398_vm12 = vweird.f32 %v4384_v49 }
 0x3dc   : > { %v1810_v7 = vsub.f32 %v5798_v50, %v1751_v59  ;;  %v2391_v28 = vsel %vm2388_vm11, %v2390_v37, %v2386_v55  ;;  %vm2399_vm14 = vmor %vm2397_vm13, %vm2398_vm12  ;;  %v5947_v19 = vadd.f32 %v5773_v53, %v1668_v2  ;;  %v1670_v13 = vpop.f32.mrf.mxu2  ;;  %v2417_v29 = vand.u32 2147483648, %v5928_v62 }
 0x3dd   : > { %v2394_v8 = vsub.f32 1.0, %v2393_v11  ;;  %3099 = vmatmul.bf16.gmra.mxu3 %v3011_v24  ;;  %v2712_v50 = vmul.f32 %v5779_v23, %v2391_v28  ;;  %v5960_v33 = vadd.f32 %v5773_v53, %v1670_v13  ;;  %vm2411_vm1 = vweird.f32 %v5928_v62 }
 0x3de   : > { %v5937_v4 = vpop.eup %4385  ;;  %v1894_v58 = vmul.f32 1.442695, %v1810_v7  ;;  %v2418_v7 = vor.u32 1.1754944e-38, %v2417_v29 }
 0x3df   : > { %v2395_v42 = vmul.f32 %v4384_v49, %v2394_v8  ;;  %1764 = vmax.xlane.f32.xlu1 %v5932_v26  ;;  %1988 = vadd.xlane.f32.xlu2 %v5937_v4  ;;  %v2760_v35 = vpack.c.bf16 %v2712_v50, %v2712_v50 }
 0x3e0   : > { %4387 = vpow2.f32 %v1894_v58 }
 0x3e1   : > { %v2396_v51 = vadd.f32 %v4384_v49, %v2395_v42  ;;  %v3080_v14 = vpop.f32.mrf.mxu3 }
 0x3e2   : > { %3281 = vst [vmem:[%s5623_s5 + $0x80] sm:$0xff] %v3080_v14 }
 0x3e3   : > { %v1753_v30 = vpop.xlane.xlu1 %1752  ;;  %v2400_v22 = vsel %vm2399_vm14, %v4384_v49, %v2396_v51 }
 0x3e4   : > { %v1811_v60 = vsub.f32 %v5803_v0, %v1753_v30  ;;  %v2405_v20 = vsel %vm2402_vm15, %v2404_v10, %v2400_v22  ;;  %v3001_v0 = vunpack.c.l.b16 %v2760_v35  ;;  %v1673_v36 = vpop.f32.mrf.mxu2 }
 0x3e5   : > { %v2713_v15 = vmul.f32 %v5786_v45, %v2405_v20  ;;  %v5967_v63 = vadd.f32 %v5773_v53, %v1673_v36 }
 0x3e6   : > { %v1896_v23 = vmul.f32 1.442695, %v1811_v60  ;;  %v5950_v9 = vpop.eup %4387 }
 0x3e7   : > { %1766 = vmax.xlane.f32.xlu1 %v5947_v19  ;;  %v2761_v61 = vpack.c.bf16 %v2713_v15, %v2713_v15  ;;  %v4054_v39 = vpack.c.bf16 %v2713_v15, %v2712_v50  ;;  %1990 = vadd.xlane.f32.xlu2 %v5950_v9 }
 0x3e8   : > { %4389 = vpow2.f32 %v1896_v23 }
 0x3e9   : > { %v3002_v27 = vunpack.c.l.b16 %v2761_v61  ;;  %4142 = vst [vmem:[%s5324_s12 + $0x68] sm:$0xff] %v4054_v39   ;;  %v3082_v57 = vpop.f32.mrf.mxu3 }
 0x3ea   : > { %3282 = vst [vmem:[%s5623_s5 + $0x88] sm:$0xff] %v3082_v57 }
 0x3eb   : > { %v1755_v21 = vpop.xlane.xlu1 %1754  ;;  %v3012_v34 = vpack.c.b16 %v3002_v27, %v3001_v0 }
 0x3ec   : > { %v1812_v45 = vsub.f32 %v5807_v5, %v1755_v21  ;;  %v1675_v5 = vpop.f32.mrf.mxu2 }
 0x3ed   : > { %3104 = vmatmul.bf16.gmra.mxu3 %v3012_v34  ;;  %v5972_v40 = vadd.f32 %v5773_v53, %v1675_v5  ;;  %v2415_v53 = vand.u32 2147483647, %v5928_v62 }
 0x3ee   : > { %v5957_v43 = vpop.eup %4389  ;;  %v1898_v52 = vmul.f32 1.442695, %v1812_v45 }
 0x3ef   : > { %1992 = vadd.xlane.f32.xlu0 %v5957_v43  ;;  %1768 = vmax.xlane.f32.xlu2 %v5960_v33  ;;  %vm2416_vm3 = vcmp.eq.f32.partialorder %v2415_v53, 8.507059e+37 }
 0x3f0   : > { %4391 = vpow2.f32 %v1898_v52 }
 0x3f1   : > { %4393 = vrcp.f32 %v5928_v62 }
 0x3f6   : > { %v5964_v38 = vpop.eup %4391 }
 0x3f7   : > { %1994 = vadd.xlane.f32.xlu0 %v5964_v38  ;;  %1770 = vmax.xlane.f32.xlu2 %v5967_v63  ;;  %v4394_v48 = vpop.eup %4393 }
 0x3f8   : > { %v2407_v49 = vmul.f32 %v4394_v48, %v5928_v62  ;;  %vm2412_vm0 = vweird.f32 %v4394_v48 }
 0x3f9   : > { %vm2413_vm2 = vmor %vm2411_vm1, %vm2412_vm0 }
 0x3fa   : > { %v2408_v6 = vsub.f32 1.0, %v2407_v49 }
 0x3fc   : > { %v2409_v46 = vmul.f32 %v4394_v48, %v2408_v6 }
 0x3fe   : > { %v2410_v1 = vadd.f32 %v4394_v48, %v2409_v46 }
 0x3ff   : > { %1772 = vmax.xlane.f32.xlu0 %v5972_v40 }
 0x400   : > { %v2414_v8 = vsel %vm2413_vm2, %v4394_v48, %v2410_v1 }
 0x401   : > { %v2419_v42 = vsel %vm2416_vm3, %v2418_v7, %v2414_v8 }
 0x402   : > { %v2714_v50 = vmul.f32 %v5795_v3, %v2419_v42 }
 0x404   : > { %v2762_v23 = vpack.c.bf16 %v2714_v50, %v2714_v50 }
 0x406   : > { %v3003_v57 = vunpack.c.l.b16 %v2762_v23 }
 0x422   : > { %v1977_v11 = vpop.xlane.xlu2 %1976 }
 0x423   : > { %4395 = vrcp.f32 %v1977_v11  ;;  %v2431_v55 = vand.u32 2147483648, %v1977_v11  ;;  %v2429_v28 = vand.u32 2147483647, %v1977_v11  ;;  %vm2425_vm5 = vweird.f32 %v1977_v11 }
 0x425   : > { %v2432_v51 = vor.u32 1.1754944e-38, %v2431_v55  ;;  %vm2430_vm7 = vcmp.eq.f32.partialorder %v2429_v28, 8.507059e+37 }
 0x429   : > { %v4396_v37 = vpop.eup %4395 }
 0x42a   : > { %v2421_v2 = vmul.f32 %v4396_v37, %v1977_v11  ;;  %v1979_v59 = vpop.xlane.xlu2 %1978  ;;  %vm2426_vm4 = vweird.f32 %v4396_v37 }
 0x42b   : > { %4397 = vrcp.f32 %v1979_v59  ;;  %vm2427_vm6 = vmor %vm2425_vm5, %vm2426_vm4  ;;  %vm2439_vm9 = vweird.f32 %v1979_v59  ;;  %v2445_v34 = vand.u32 2147483648, %v1979_v59  ;;  %v2443_v52 = vand.u32 2147483647, %v1979_v59 }
 0x42c   : > { %v2422_v24 = vsub.f32 1.0, %v2421_v2 }
 0x42d   : > { %v2446_v29 = vor.u32 1.1754944e-38, %v2445_v34  ;;  %vm2444_vm11 = vcmp.eq.f32.partialorder %v2443_v52, 8.507059e+37 }
 0x42e   : > { %v2423_v12 = vmul.f32 %v4396_v37, %v2422_v24 }
 0x430   : > { %v2424_v31 = vadd.f32 %v4396_v37, %v2423_v12  ;;  %v3085_v62 = vpop.f32.mrf.mxu3 }
 0x431   : > { %v4398_v58 = vpop.eup %4397  ;;  %3283 = vst [vmem:[%s5623_s5 + $0x90] sm:$0xff] %v3085_v62 }
 0x432   : > { %v2435_v10 = vmul.f32 %v4398_v58, %v1979_v59  ;;  %v1757_v14 = vpop.xlane.xlu2 %1756  ;;  %v2428_v30 = vsel %vm2427_vm6, %v4396_v37, %v2424_v31  ;;  %v1981_v60 = vpop.xlane.xlu0 %1980  ;;  %vm2440_vm8 = vweird.f32 %v4398_v58 }
 0x433   : > { %v1813_v22 = vsub.f32 %v5855_v18, %v1757_v14  ;;  %v2433_v20 = vsel %vm2430_vm7, %v2432_v51, %v2428_v30  ;;  %4399 = vrcp.f32 %v1981_v60  ;;  %vm5990_vm10 = vmor %vm2439_vm9, %vm2440_vm8  ;;  %v2459_v37 = vand.u32 2147483648, %v1981_v60 }
 0x434   : > { %v2436_v15 = vsub.f32 1.0, %v2435_v10  ;;  %v2715_v13 = vmul.f32 %v5831_v17, %v2433_v20  ;;  %v2457_v53 = vand.u32 2147483647, %v1981_v60  ;;  %vm2453_vm13 = vweird.f32 %v1981_v60 }
 0x435   : > { %v1900_v35 = vmul.f32 1.442695, %v1813_v22  ;;  %v2460_v55 = vor.u32 1.1754944e-38, %v2459_v37 }
 0x436   : > { %v2437_v61 = vmul.f32 %v4398_v58, %v2436_v15  ;;  %v2763_v3 = vpack.c.bf16 %v2715_v13, %v2715_v13  ;;  %v4059_v39 = vpack.c.bf16 %v2715_v13, %v2714_v50  ;;  %vm2458_vm15 = vcmp.eq.f32.partialorder %v2457_v53, 8.507059e+37 }
 0x437   : > { %4401 = vpow2.f32 %v1900_v35 }
 0x438   : > { %v2438_v0 = vadd.f32 %v4398_v58, %v2437_v61  ;;  %v3087_v27 = vpop.f32.mrf.mxu3  ;;  %v3004_v21 = vunpack.c.l.b16 %v2763_v3  ;;  %4143 = vst [vmem:[%s5324_s12 + $0x70] sm:$0xff] %v4059_v39  }
 0x439   : > { %v4400_v18 = vpop.eup %4399  ;;  %3284 = vst [vmem:[%s5623_s5 + $0x98] sm:$0xff] %v3087_v27 }
 0x43a   : > { %v1759_v45 = vpop.xlane.xlu2 %1758  ;;  %v2449_v36 = vmul.f32 %v4400_v18, %v1981_v60  ;;  %v5987_v5 = vpop.xlane.xlu0 %1982  ;;  %v3013_v48 = vpack.c.b16 %v3004_v21, %v3003_v57  ;;  %v2442_v1 = vsel %vm5990_vm10, %v4398_v58, %v2438_v0  ;;  %vm2454_vm12 = vweird.f32 %v4400_v18 }
 0x43b   : > { %v1814_v17 = vsub.f32 %v5882_v54, %v1759_v45  ;;  %4403 = vrcp.f32 %v5987_v5  ;;  %v2447_v2 = vsel %vm2444_vm11, %v2446_v29, %v2442_v1  ;;  %vm2455_vm14 = vmor %vm2453_vm13, %vm2454_vm12  ;;  %vm2467_vm1 = vweird.f32 %v5987_v5 }
 0x43c   : > { %v2450_v11 = vsub.f32 1.0, %v2449_v36  ;;  %3109 = vmatmul.bf16.gmra.mxu3 %v3013_v48  ;;  %v2716_v42 = vmul.f32 %v5843_v44, %v2447_v2  ;;  %v2473_v44 = vand.u32 2147483648, %v5987_v5  ;;  %v2471_v35 = vand.u32 2147483647, %v5987_v5 }
 0x43d   : > { %v5995_v6 = vpop.eup %4401  ;;  %v1902_v46 = vmul.f32 1.442695, %v1814_v17 }
 0x43e   : > { %1996 = vadd.xlane.f32.xlu1 %v5995_v6  ;;  %v2451_v54 = vmul.f32 %v4400_v18, %v2450_v11  ;;  %v2764_v22 = vpack.c.bf16 %v2716_v42, %v2716_v42  ;;  %v2474_v57 = vor.u32 1.1754944e-38, %v2473_v44  ;;  %vm2472_vm3 = vcmp.eq.f32.partialorder %v2471_v35, 8.507059e+37 }
 0x43f   : > { %4405 = vpow2.f32 %v1902_v46 }
 0x440   : > { %v2452_v59 = vadd.f32 %v4400_v18, %v2451_v54  ;;  %v3090_v7 = vpop.f32.mrf.mxu3  ;;  %v3005_v27 = vunpack.c.l.b16 %v2764_v22 }
 0x441   : > { %v4404_v8 = vpop.eup %4403  ;;  %3285 = vst [vmem:[%s5623_s5 + $0xa0] sm:$0xff] %v3090_v7 }
 0x442   : > { %v1985_v24 = vpop.xlane.xlu1 %1984  ;;  %v2463_v12 = vmul.f32 %v4404_v8, %v5987_v5  ;;  %v1761_v28 = vpop.xlane.xlu0 %1760  ;;  %v2456_v58 = vsel %vm2455_vm14, %v4400_v18, %v2452_v59  ;;  %vm2468_vm0 = vweird.f32 %v4404_v8 }
 0x443   : > { %4407 = vrcp.f32 %v1985_v24  ;;  %v1815_v31 = vsub.f32 %v5906_v32, %v1761_v28  ;;  %v2461_v50 = vsel %vm2458_vm15, %v2460_v55, %v2456_v58  ;;  %vm6011_vm2 = vmor %vm2467_vm1, %vm2468_vm0  ;;  %v2485_v34 = vand.u32 2147483647, %v1985_v24 }
 0x444   : > { %v2464_v62 = vsub.f32 1.0, %v2463_v12  ;;  %v2717_v14 = vmul.f32 %v5869_v16, %v2461_v50  ;;  %v2487_v45 = vand.u32 2147483648, %v1985_v24  ;;  %vm2481_vm5 = vweird.f32 %v1985_v24 }
 0x445   : > { %v6004_v51 = vpop.eup %4405  ;;  %v1904_v10 = vmul.f32 1.442695, %v1815_v31  ;;  %vm2486_vm7 = vcmp.eq.f32.partialorder %v2485_v34, 8.507059e+37 }
 0x446   : > { %1998 = vadd.xlane.f32.xlu1 %v6004_v51  ;;  %v2465_v30 = vmul.f32 %v4404_v8, %v2464_v62  ;;  %v2765_v60 = vpack.c.bf16 %v2717_v14, %v2717_v14  ;;  %v4064_v32 = vpack.c.bf16 %v2717_v14, %v2716_v42  ;;  %v2488_v46 = vor.u32 1.1754944e-38, %v2487_v45 }
 0x447   : > { %4409 = vpow2.f32 %v1904_v10 }
 0x448   : > { %v2466_v15 = vadd.f32 %v4404_v8, %v2465_v30  ;;  %v3092_v23 = vpop.f32.mrf.mxu3  ;;  %v3006_v3 = vunpack.c.l.b16 %v2765_v60  ;;  %4144 = vst [vmem:[%s5324_s12 + $0x78] sm:$0xff] %v4064_v32  }
 0x449   : > { %v4408_v20 = vpop.eup %4407  ;;  %3286 = vst [vmem:[%s5623_s5 + $0xa8] sm:$0xff] %v3092_v23 }
 0x44a   : > { %v2477_v16 = vmul.f32 %v4408_v20, %v1985_v24  ;;  %v6015_v61 = vpop.xlane.xlu1 %1986  ;;  %v2470_v39 = vsel %vm6011_vm2, %v4404_v8, %v2466_v15  ;;  %v1763_v0 = vpop.xlane.xlu0 %1762  ;;  %v3014_v52 = vpack.c.b16 %v3006_v3, %v3005_v27  ;;  %vm2482_vm4 = vweird.f32 %v4408_v20 }
 0x44b   : > { %4411 = vrcp.f32 %v6015_v61  ;;  %v1816_v18 = vsub.f32 %v5922_v56, %v1763_v0  ;;  %v2475_v17 = vsel %vm2472_vm3, %v2474_v57, %v2470_v39  ;;  %vm2483_vm6 = vmor %vm2481_vm5, %vm2482_vm4  ;;  %v2501_v58 = vand.u32 2147483648, %v6015_v61 }
 0x44c   : > { %v2478_v21 = vsub.f32 1.0, %v2477_v16  ;;  %3114 = vmatmul.bf16.gmra.mxu3 %v3014_v52  ;;  %v2718_v56 = vmul.f32 %v5886_v47, %v2475_v17  ;;  %vm2495_vm9 = vweird.f32 %v6015_v61  ;;  %v2499_v50 = vand.u32 2147483647, %v6015_v61 }
 0x44d   : > { %v6023_v36 = vpop.eup %4409  ;;  %v1906_v48 = vmul.f32 1.442695, %v1816_v18  ;;  %v2502_v35 = vor.u32 1.1754944e-38, %v2501_v58 }
 0x44e   : > { %v2479_v5 = vmul.f32 %v4408_v20, %v2478_v21  ;;  %2000 = vadd.xlane.f32.xlu2 %v6023_v36  ;;  %v2766_v24 = vpack.c.bf16 %v2718_v56, %v2718_v56  ;;  %vm2500_vm11 = vcmp.eq.f32.partialorder %v2499_v50, 8.507059e+37 }
 0x44f   : > { %4413 = vpow2.f32 %v1906_v48 }
 0x450   : > { %v2480_v49 = vadd.f32 %v4408_v20, %v2479_v5  ;;  %v3095_v54 = vpop.f32.mrf.mxu3 }
 0x451   : > { %v4412_v11 = vpop.eup %4411  ;;  %3287 = vst [vmem:[%s5623_s5 + $0xb0] sm:$0xff] %v3095_v54 }
 0x452   : > { %v2484_v1 = vsel %vm2483_vm6, %v4408_v20, %v2480_v49  ;;  %v2491_v29 = vmul.f32 %v4412_v11, %v6015_v61  ;;  %v1765_v37 = vpop.xlane.xlu1 %1764  ;;  %v1989_v59 = vpop.xlane.xlu2 %1988  ;;  %vm2496_vm8 = vweird.f32 %v4412_v11 }
 0x453   : > { %v2489_v53 = vsel %vm2486_vm7, %v2488_v46, %v2484_v1  ;;  %v1817_v2 = vsub.f32 %v5932_v26, %v1765_v37  ;;  %4415 = vrcp.f32 %v1989_v59  ;;  %vm6038_vm10 = vmor %vm2495_vm9, %vm2496_vm8  ;;  %v2515_v61 = vand.u32 2147483648, %v1989_v59 }
 0x454   : > { %v2719_v8 = vmul.f32 %v5903_v25, %v2489_v53  ;;  %v2492_v7 = vsub.f32 1.0, %v2491_v29  ;;  %v3136_v25 = vunpack.c.l.b16 %v2766_v24  ;;  %v2513_v3 = vand.u32 2147483647, %v1989_v59 }
 0x455   : > { %v1908_v47 = vmul.f32 1.442695, %v1817_v2  ;;  %v6031_v55 = vpop.eup %4413  ;;  %vm2509_vm13 = vweird.f32 %v1989_v59  ;;  %v2516_v18 = vor.u32 1.1754944e-38, %v2515_v61 }
 0x456   : > { %v2767_v12 = vpack.c.bf16 %v2719_v8, %v2719_v8  ;;  %v4069_v28 = vpack.c.bf16 %v2719_v8, %v2718_v56  ;;  %v2493_v42 = vmul.f32 %v4412_v11, %v2492_v7  ;;  %2002 = vadd.xlane.f32.xlu0 %v6031_v55  ;;  %vm2514_vm15 = vcmp.eq.f32.partialorder %v2513_v3, 8.507059e+37 }
 0x457   : > { %4417 = vpow2.f32 %v1908_v47 }
 0x458   : > { %4145 = vst [vmem:[%s5324_s12 + $0x80] sm:$0xff] %v4069_v28   ;;  %v2494_v31 = vadd.f32 %v4412_v11, %v2493_v42  ;;  %v3137_v26 = vunpack.c.l.b16 %v2767_v12  ;;  %v3097_v10 = vpop.f32.mrf.mxu3 }
 0x459   : > { %v4416_v62 = vpop.eup %4415  ;;  %3288 = vst [vmem:[%s5623_s5 + $0xb8] sm:$0xff] %v3097_v10 }
 0x45a   : > { %v1767_v14 = vpop.xlane.xlu1 %1766  ;;  %v2505_v22 = vmul.f32 %v4416_v62, %v1989_v59  ;;  %v6044_v60 = vpop.xlane.xlu2 %1990  ;;  %v3152_v32 = vpack.c.b16 %v3137_v26, %v3136_v25  ;;  %v2498_v20 = vsel %vm6038_vm10, %v4412_v11, %v2494_v31  ;;  %vm2510_vm12 = vweird.f32 %v4416_v62 }
 0x45b   : > { %v1818_v44 = vsub.f32 %v5947_v19, %v1767_v14  ;;  %4419 = vrcp.f32 %v6044_v60  ;;  %v2503_v19 = vsel %vm2500_vm11, %v2502_v35, %v2498_v20  ;;  %vm2511_vm14 = vmor %vm2509_vm13, %vm2510_vm12  ;;  %v2529_v1 = vand.u32 2147483648, %v6044_v60 }
 0x45c   : > { %v2506_v13 = vsub.f32 1.0, %v2505_v22  ;;  %3224 = vmatmul.bf16.vlgmr.msra.gmra.mxu3 %v3152_v32  ;;  %v2720_v21 = vmul.f32 %v5919_v41, %v2503_v19  ;;  %v2527_v53 = vand.u32 2147483647, %v6044_v60  ;;  %vm2523_vm1 = vweird.f32 %v6044_v60 }
 0x45d   : > { %v6049_v15 = vpop.eup %4417  ;;  %v1910_v16 = vmul.f32 1.442695, %v1818_v44  ;;  %v2530_v47 = vor.u32 1.1754944e-38, %v2529_v1 }
 0x45e   : > { %2004 = vadd.xlane.f32.xlu1 %v6049_v15  ;;  %v2507_v23 = vmul.f32 %v4416_v62, %v2506_v13  ;;  %v2768_v56 = vpack.c.bf16 %v2720_v21, %v2720_v21  ;;  %vm2528_vm3 = vcmp.eq.f32.partialorder %v2527_v53, 8.507059e+37 }
 0x45f   : > { %4421 = vpow2.f32 %v1910_v16 }
 0x460   : > { %v2508_v39 = vadd.f32 %v4416_v62, %v2507_v23  ;;  %v3100_v27 = vpop.f32.mrf.mxu3 }
 0x461   : > { %v4420_v0 = vpop.eup %4419  ;;  %3289 = vst [vmem:[%s5623_s5 + $0xc0] sm:$0xff] %v3100_v27 }
 0x462   : > { %v1993_v57 = vpop.xlane.xlu0 %1992  ;;  %v2519_v34 = vmul.f32 %v4420_v0, %v6044_v60  ;;  %v1769_v45 = vpop.xlane.xlu2 %1768  ;;  %v2512_v17 = vsel %vm2511_vm14, %v4416_v62, %v2508_v39  ;;  %vm2524_vm0 = vweird.f32 %v4420_v0 }
 0x463   : > { %4423 = vrcp.f32 %v1993_v57  ;;  %v1819_v52 = vsub.f32 %v5960_v33, %v1769_v45  ;;  %v2517_v49 = vsel %vm2514_vm15, %v2516_v18, %v2512_v17  ;;  %vm6066_vm2 = vmor %vm2523_vm1, %vm2524_vm0  ;;  %v2541_v58 = vand.u32 2147483647, %v1993_v57 }
 0x464   : > { %v2520_v48 = vsub.f32 1.0, %v2519_v34  ;;  %v2721_v41 = vmul.f32 %v5937_v4, %v2517_v49  ;;  %v3138_v4 = vunpack.c.l.b16 %v2768_v56  ;;  %v2543_v25 = vand.u32 2147483648, %v1993_v57 }
 0x465   : > { %v6056_v5 = vpop.eup %4421  ;;  %v1912_v11 = vmul.f32 1.442695, %v1819_v52  ;;  %vm2537_vm5 = vweird.f32 %v1993_v57  ;;  %vm2542_vm7 = vcmp.eq.f32.partialorder %v2541_v58, 8.507059e+37 }
 0x466   : > { %2006 = vadd.xlane.f32.xlu2 %v6056_v5  ;;  %v2521_v46 = vmul.f32 %v4420_v0, %v2520_v48  ;;  %v2769_v29 = vpack.c.bf16 %v2721_v41, %v2721_v41  ;;  %v4074_v33 = vpack.c.bf16 %v2721_v41, %v2720_v21 }
 0x467   : > { %4425 = vpow2.f32 %v1912_v11 }
 0x468   : > { %v2522_v37 = vadd.f32 %v4420_v0, %v2521_v46  ;;  %v3102_v59 = vpop.f32.mrf.mxu3  ;;  %v3139_v7 = vunpack.c.l.b16 %v2769_v29  ;;  %4146 = vst [vmem:[%s5324_s12 + $0x88] sm:$0xff] %v4074_v33  }
 0x469   : > { %v4424_v54 = vpop.eup %4423  ;;  %3290 = vst [vmem:[%s5623_s5 + $0xc8] sm:$0xff] %v3102_v59 }
 0x46a   : > { %v2533_v2 = vmul.f32 %v4424_v54, %v1993_v57  ;;  %v6063_v8 = vpop.xlane.xlu0 %1994  ;;  %v1771_v12 = vpop.xlane.xlu2 %1770  ;;  %v3153_v31 = vpack.c.b16 %v3139_v7, %v3138_v4  ;;  %v2526_v26 = vsel %vm6066_vm2, %v4420_v0, %v2522_v37  ;;  %vm2538_vm4 = vweird.f32 %v4424_v54 }
 0x46b   : > { %v1820_v42 = vsub.f32 %v5967_v63, %v1771_v12  ;;  %v2531_v14 = vsel %vm2528_vm3, %v2530_v47, %v2526_v26  ;;  %vm2539_vm6 = vmor %vm2537_vm5, %vm2538_vm4  ;;  %v2544_v63 = vor.u32 1.1754944e-38, %v2543_v25  ;;  %v2557_v52 = vand.u32 2147483648, %v6063_v8 }
 0x46c   : > { %v2534_v28 = vsub.f32 1.0, %v2533_v2  ;;  %3229 = vmatmul.bf16.gmra.mxu3 %v3153_v31  ;;  %v2722_v22 = vmul.f32 %v5950_v9, %v2531_v14  ;;  %vm2551_vm9 = vweird.f32 %v6063_v8  ;;  %v2555_v48 = vand.u32 2147483647, %v6063_v8 }
 0x46d   : > { %v6074_v62 = vpop.eup %4425  ;;  %v1914_v10 = vmul.f32 1.442695, %v1820_v42  ;;  %v2558_v56 = vor.u32 1.1754944e-38, %v2557_v52 }
 0x46e   : > { %v2535_v50 = vmul.f32 %v4424_v54, %v2534_v28  ;;  %2008 = vadd.xlane.f32.xlu0 %v6074_v62  ;;  %v2770_v23 = vpack.c.bf16 %v2722_v22, %v2722_v22  ;;  %vm2556_vm11 = vcmp.eq.f32.partialorder %v2555_v48, 8.507059e+37 }
 0x46f   : > { %4427 = vpow2.f32 %v1914_v10 }
 0x470   : > { %v2536_v30 = vadd.f32 %v4424_v54, %v2535_v50  ;;  %v3105_v44 = vpop.f32.mrf.mxu3  ;;  %v3140_v39 = vunpack.c.l.b16 %v2770_v23 }
 0x471   : > { %3291 = vst [vmem:[%s5623_s5 + $0xd0] sm:$0xff] %v3105_v44 }
 0x472   : > { %v1773_v60 = vpop.xlane.xlu0 %1772  ;;  %v2540_v32 = vsel %vm2539_vm6, %v4424_v54, %v2536_v30 }
 0x473   : > { %v1821_v20 = vsub.f32 %v5972_v40, %v1773_v60  ;;  %v2545_v35 = vsel %vm2542_vm7, %v2544_v63, %v2540_v32 }
 0x474   : > { %v2723_v13 = vmul.f32 %v5957_v43, %v2545_v35 }
 0x475   : > { %v1916_v16 = vmul.f32 1.442695, %v1821_v20  ;;  %v6081_v61 = vpop.eup %4427 }
 0x476   : > { %v2771_v19 = vpack.c.bf16 %v2723_v13, %v2723_v13  ;;  %v4079_v3 = vpack.c.bf16 %v2723_v13, %v2722_v22  ;;  %2010 = vadd.xlane.f32.xlu1 %v6081_v61 }
 0x477   : > { %4429 = vpow2.f32 %v1916_v16 }
 0x478   : > { %v3141_v9 = vunpack.c.l.b16 %v2771_v19  ;;  %4147 = vst [vmem:[%s5324_s12 + $0x90] sm:$0xff] %v4079_v3   ;;  %v3107_v0 = vpop.f32.mrf.mxu3  ;;  %4431 = vrcp.f32 %v6063_v8 }
 0x479   : > { %3292 = vst [vmem:[%s5623_s5 + $0xd8] sm:$0xff] %v3107_v0 }
 0x47a   : > { %v3154_v27 = vpack.c.b16 %v3141_v9, %v3140_v39 }
 0x47c   : > { %3234 = vmatmul.bf16.gmra.mxu3 %v3154_v27 }
 0x47d   : > { %v6086_v57 = vpop.eup %4429 }
 0x47e   : > { %2012 = vadd.xlane.f32.xlu2 %v6086_v57  ;;  %v4432_v43 = vpop.eup %4431 }
 0x47f   : > { %v2547_v40 = vmul.f32 %v4432_v43, %v6063_v8  ;;  %vm2552_vm8 = vweird.f32 %v4432_v43 }
 0x480   : > { %vm2553_vm10 = vmor %vm2551_vm9, %vm2552_vm8 }
 0x481   : > { %v2548_v21 = vsub.f32 1.0, %v2547_v40 }
 0x483   : > { %v2549_v34 = vmul.f32 %v4432_v43, %v2548_v21 }
 0x485   : > { %v2550_v45 = vadd.f32 %v4432_v43, %v2549_v34 }
 0x487   : > { %v2554_v41 = vsel %vm2553_vm10, %v4432_v43, %v2550_v45 }
 0x488   : > { %v2559_v54 = vsel %vm2556_vm11, %v2558_v56, %v2554_v41 }
 0x489   : > { %v2724_v8 = vmul.f32 %v5964_v38, %v2559_v54 }
 0x48b   : > { %v2772_v42 = vpack.c.bf16 %v2724_v8, %v2724_v8 }
 0x48d   : > { %v3142_v10 = vunpack.c.l.b16 %v2772_v42 }
 0x4b1   : > { %v1997_v18 = vpop.xlane.xlu1 %1996 }
 0x4b2   : > { %4433 = vrcp.f32 %v1997_v18  ;;  %v2571_v1 = vand.u32 2147483648, %v1997_v18  ;;  %v2569_v33 = vand.u32 2147483647, %v1997_v18  ;;  %vm2565_vm13 = vweird.f32 %v1997_v18 }
 0x4b4   : > { %v2572_v2 = vor.u32 1.1754944e-38, %v2571_v1  ;;  %vm2570_vm15 = vcmp.eq.f32.partialorder %v2569_v33, 8.507059e+37 }
 0x4b8   : > { %v4434_v17 = vpop.eup %4433 }
 0x4b9   : > { %v2561_v49 = vmul.f32 %v4434_v17, %v1997_v18  ;;  %v1999_v11 = vpop.xlane.xlu1 %1998  ;;  %vm2566_vm12 = vweird.f32 %v4434_v17 }
 0x4ba   : > { %4435 = vrcp.f32 %v1999_v11  ;;  %vm2567_vm14 = vmor %vm2565_vm13, %vm2566_vm12  ;;  %v2585_v50 = vand.u32 2147483648, %v1999_v11  ;;  %vm2579_vm1 = vweird.f32 %v1999_v11  ;;  %v2583_v63 = vand.u32 2147483647, %v1999_v11 }
 0x4bb   : > { %v2562_v46 = vsub.f32 1.0, %v2561_v49 }
 0x4bc   : > { %v2586_v32 = vor.u32 1.1754944e-38, %v2585_v50  ;;  %vm2584_vm3 = vcmp.eq.f32.partialorder %v2583_v63, 8.507059e+37 }
 0x4bd   : > { %v2563_v29 = vmul.f32 %v4434_v17, %v2562_v46 }
 0x4bf   : > { %v2564_v37 = vadd.f32 %v4434_v17, %v2563_v29  ;;  %v3110_v59 = vpop.f32.mrf.mxu3 }
 0x4c0   : > { %v4436_v53 = vpop.eup %4435  ;;  %3293 = vst [vmem:[%s5623_s5 + $0xe0] sm:$0xff] %v3110_v59 }
 0x4c1   : > { %v2575_v4 = vmul.f32 %v4436_v53, %v1999_v11  ;;  %v2568_v7 = vsel %vm2567_vm14, %v4434_v17, %v2564_v37  ;;  %v2001_v24 = vpop.xlane.xlu2 %2000  ;;  %vm2580_vm0 = vweird.f32 %v4436_v53 }
 0x4c2   : > { %v2573_v47 = vsel %vm2570_vm15, %v2572_v2, %v2568_v7  ;;  %4437 = vrcp.f32 %v2001_v24  ;;  %vm2581_vm2 = vmor %vm2579_vm1, %vm2580_vm0  ;;  %v2599_v13 = vand.u32 2147483648, %v2001_v24  ;;  %v2597_v23 = vand.u32 2147483647, %v2001_v24 }
 0x4c3   : > { %v2576_v12 = vsub.f32 1.0, %v2575_v4  ;;  %v2725_v28 = vmul.f32 %v5995_v6, %v2573_v47  ;;  %vm2593_vm5 = vweird.f32 %v2001_v24 }
 0x4c4   : > { %v2600_v0 = vor.u32 1.1754944e-38, %v2599_v13  ;;  %vm2598_vm7 = vcmp.eq.f32.partialorder %v2597_v23, 8.507059e+37 }
 0x4c5   : > { %v2577_v31 = vmul.f32 %v4436_v53, %v2576_v12  ;;  %v2773_v26 = vpack.c.bf16 %v2725_v28, %v2725_v28  ;;  %v4084_v58 = vpack.c.bf16 %v2725_v28, %v2724_v8 }
 0x4c7   : > { %v2578_v25 = vadd.f32 %v4436_v53, %v2577_v31  ;;  %v3112_v38 = vpop.f32.mrf.mxu3  ;;  %v3143_v14 = vunpack.c.l.b16 %v2773_v26  ;;  %4148 = vst [vmem:[%s5324_s12 + $0x98] sm:$0xff] %v4084_v58  }
 0x4c8   : > { %v4438_v30 = vpop.eup %4437  ;;  %3294 = vst [vmem:[%s5623_s5 + $0xe8] sm:$0xff] %v3112_v38 }
 0x4c9   : > { %v2589_v22 = vmul.f32 %v4438_v30, %v2001_v24  ;;  %v2003_v44 = vpop.xlane.xlu0 %2002  ;;  %v3155_v60 = vpack.c.b16 %v3143_v14, %v3142_v10  ;;  %v2582_v6 = vsel %vm2581_vm2, %v4436_v53, %v2578_v25  ;;  %vm2594_vm4 = vweird.f32 %v4438_v30 }
 0x4ca   : > { %4439 = vrcp.f32 %v2003_v44  ;;  %v2587_v16 = vsel %vm2584_vm3, %v2586_v32, %v2582_v6  ;;  %vm2595_vm6 = vmor %vm2593_vm5, %vm2594_vm4  ;;  %v2613_v17 = vand.u32 2147483648, %v2003_v44  ;;  %v2611_v41 = vand.u32 2147483647, %v2003_v44 }
 0x4cb   : > { %v2590_v20 = vsub.f32 1.0, %v2589_v22  ;;  %3239 = vmatmul.bf16.gmra.mxu3 %v3155_v60  ;;  %v2726_v39 = vmul.f32 %v6004_v51, %v2587_v16  ;;  %vm2607_vm9 = vweird.f32 %v2003_v44 }
 0x4cc   : > { %vm2612_vm11 = vcmp.eq.f32.partialorder %v2611_v41, 8.507059e+37 }
 0x4cd   : > { %v2591_v35 = vmul.f32 %v4438_v30, %v2590_v20  ;;  %v2774_v45 = vpack.c.bf16 %v2726_v39, %v2726_v39 }
 0x4cf   : > { %v2592_v19 = vadd.f32 %v4438_v30, %v2591_v35  ;;  %v3115_v43 = vpop.f32.mrf.mxu3  ;;  %v3144_v1 = vunpack.c.l.b16 %v2774_v45 }
 0x4d0   : > { %v4440_v3 = vpop.eup %4439  ;;  %3295 = vst [vmem:[%s5623_s5 + $0xf0] sm:$0xff] %v3115_v43 }
 0x4d1   : > { %v2005_v9 = vpop.xlane.xlu1 %2004  ;;  %v2603_v27 = vmul.f32 %v4440_v3, %v2003_v44  ;;  %v2596_v40 = vsel %vm2595_vm6, %v4438_v30, %v2592_v19  ;;  %vm2608_vm8 = vweird.f32 %v4440_v3 }
 0x4d2   : > { %4441 = vrcp.f32 %v2005_v9  ;;  %v2601_v18 = vsel %vm2598_vm7, %v2600_v0, %v2596_v40  ;;  %vm2609_vm10 = vmor %vm2607_vm9, %vm2608_vm8  ;;  %v2627_v2 = vand.u32 2147483648, %v2005_v9  ;;  %v2625_v8 = vand.u32 2147483647, %v2005_v9 }
 0x4d3   : > { %v2604_v21 = vsub.f32 1.0, %v2603_v27  ;;  %v2727_v34 = vmul.f32 %v6023_v36, %v2601_v18  ;;  %v2614_v36 = vor.u32 1.1754944e-38, %v2613_v17  ;;  %vm2621_vm13 = vweird.f32 %v2005_v9 }
 0x4d4   : > { %v2628_v47 = vor.u32 1.1754944e-38, %v2627_v2  ;;  %vm2626_vm15 = vcmp.eq.f32.partialorder %v2625_v8, 8.507059e+37 }
 0x4d5   : > { %v2605_v52 = vmul.f32 %v4440_v3, %v2604_v21  ;;  %v2775_v48 = vpack.c.bf16 %v2727_v34, %v2727_v34  ;;  %v4089_v51 = vpack.c.bf16 %v2727_v34, %v2726_v39 }
 0x4d7   : > { %v2606_v11 = vadd.f32 %v4440_v3, %v2605_v52  ;;  %v3145_v29 = vunpack.c.l.b16 %v2775_v48  ;;  %4149 = vst [vmem:[%s5324_s12 + $0xa0] sm:$0xff] %v4089_v51   ;;  %v3117_v33 = vpop.f32.mrf.mxu3 }
 0x4d8   : > { %v4442_v49 = vpop.eup %4441  ;;  %3296 = vst [vmem:[%s5623_s5 + $0xf8] sm:$0xff] %v3117_v33 }
 0x4d9   : > { %v2617_v56 = vmul.f32 %v4442_v49, %v2005_v9  ;;  %v2007_v46 = vpop.xlane.xlu2 %2006  ;;  %v3156_v37 = vpack.c.b16 %v3145_v29, %v3144_v1  ;;  %v2610_v53 = vsel %vm2609_vm10, %v4440_v3, %v2606_v11  ;;  %vm2622_vm12 = vweird.f32 %v4442_v49 }
 0x4da   : > { %4443 = vrcp.f32 %v2007_v46  ;;  %v2615_v4 = vsel %vm2612_vm11, %v2614_v36, %v2610_v53  ;;  %vm2623_vm14 = vmor %vm2621_vm13, %vm2622_vm12  ;;  %vm2635_vm1 = vweird.f32 %v2007_v46  ;;  %v2639_v22 = vand.u32 2147483647, %v2007_v46 }
 0x4db   : > { %v2618_v54 = vsub.f32 1.0, %v2617_v56  ;;  %3244 = vmatmul.bf16.gmra.mxu3 %v3156_v37  ;;  %v2728_v12 = vmul.f32 %v6031_v55, %v2615_v4  ;;  %v2641_v55 = vand.u32 2147483648, %v2007_v46 }
 0x4dc   : > { %vm2640_vm3 = vcmp.eq.f32.partialorder %v2639_v22, 8.507059e+37 }
 0x4dd   : > { %v2619_v59 = vmul.f32 %v4442_v49, %v2618_v54  ;;  %v2776_v38 = vpack.c.bf16 %v2728_v12, %v2728_v12  ;;  %v2642_v16 = vor.u32 1.1754944e-38, %v2641_v55 }
 0x4df   : > { %v2620_v7 = vadd.f32 %v4442_v49, %v2619_v59  ;;  %v3225_v31 = vpop.f32.mrf.mxu3  ;;  %v3146_v44 = vunpack.c.l.b16 %v2776_v38 }
 0x4e0   : > { %v4444_v24 = vpop.eup %4443  ;;  %3297 = vst [vmem:[%s5623_s5 + $0x100] sm:$0xff] %v3225_v31 }
 0x4e1   : > { %v2631_v28 = vmul.f32 %v4444_v24, %v2007_v46  ;;  %v2624_v42 = vsel %vm2623_vm14, %v4442_v49, %v2620_v7  ;;  %v2009_v26 = vpop.xlane.xlu0 %2008  ;;  %vm2636_vm0 = vweird.f32 %v4444_v24 }
 0x4e2   : > { %v2629_v58 = vsel %vm2626_vm15, %v2628_v47, %v2624_v42  ;;  %4445 = vrcp.f32 %v2009_v26  ;;  %vm2637_vm2 = vmor %vm2635_vm1, %vm2636_vm0  ;;  %v2655_v19 = vand.u32 2147483648, %v2009_v26  ;;  %v2653_v39 = vand.u32 2147483647, %v2009_v26 }
 0x4e3   : > { %v2632_v25 = vsub.f32 1.0, %v2631_v28  ;;  %v2729_v50 = vmul.f32 %v6049_v15, %v2629_v58  ;;  %vm2649_vm5 = vweird.f32 %v2009_v26 }
 0x4e4   : > { %v2656_v40 = vor.u32 1.1754944e-38, %v2655_v19  ;;  %vm2654_vm7 = vcmp.eq.f32.partialorder %v2653_v39, 8.507059e+37 }
 0x4e5   : > { %v2633_v10 = vmul.f32 %v4444_v24, %v2632_v25  ;;  %v2777_v14 = vpack.c.bf16 %v2729_v50, %v2729_v50  ;;  %v4094_v30 = vpack.c.bf16 %v2729_v50, %v2728_v12 }
 0x4e7   : > { %v2634_v63 = vadd.f32 %v4444_v24, %v2633_v10  ;;  %v3147_v60 = vunpack.c.l.b16 %v2777_v14  ;;  %4150 = vst [vmem:[%s5324_s12 + $0xa8] sm:$0xff] %v4094_v30   ;;  %v3227_v20 = vpop.f32.mrf.mxu3 }
 0x4e8   : > { %v4446_v6 = vpop.eup %4445  ;;  %3298 = vst [vmem:[%s5623_s5 + $0x108] sm:$0xff] %v3227_v20 }
 0x4e9   : > { %v2645_v32 = vmul.f32 %v4446_v6, %v2009_v26  ;;  %v2011_v35 = vpop.xlane.xlu1 %2010  ;;  %v3157_v13 = vpack.c.b16 %v3147_v60, %v3146_v44  ;;  %v2638_v15 = vsel %vm2637_vm2, %v4444_v24, %v2634_v63  ;;  %vm2650_vm4 = vweird.f32 %v4446_v6 }
 0x4ea   : > { %4447 = vrcp.f32 %v2011_v35  ;;  %v2643_v3 = vsel %vm2640_vm3, %v2642_v16, %v2638_v15  ;;  %vm2651_vm6 = vmor %vm2649_vm5, %vm2650_vm4  ;;  %v2669_v49 = vand.u32 2147483648, %v2011_v35  ;;  %v2667_v56 = vand.u32 2147483647, %v2011_v35 }
 0x4eb   : > { %v2646_v23 = vsub.f32 1.0, %v2645_v32  ;;  %3249 = vmatmul.bf16.gmra.mxu3 %v3157_v13  ;;  %v2730_v27 = vmul.f32 %v6056_v5, %v2643_v3  ;;  %vm2663_vm9 = vweird.f32 %v2011_v35 }
 0x4ec   : > { %v2670_v37 = vor.u32 1.1754944e-38, %v2669_v49  ;;  %vm2668_vm11 = vcmp.eq.f32.partialorder %v2667_v56, 8.507059e+37 }
 0x4ed   : > { %v2647_v9 = vmul.f32 %v4446_v6, %v2646_v23  ;;  %v2778_v51 = vpack.c.bf16 %v2730_v27, %v2730_v27 }
 0x4ef   : > { %v2648_v0 = vadd.f32 %v4446_v6, %v2647_v9  ;;  %v3230_v45 = vpop.f32.mrf.mxu3  ;;  %v3148_v29 = vunpack.c.l.b16 %v2778_v51 }
 0x4f0   : > { %v4448_v43 = vpop.eup %4447  ;;  %3299 = vst [vmem:[%s5623_s5 + $0x110] sm:$0xff] %v3230_v45 }
 0x4f1   : > { %v2013_v21 = vpop.xlane.xlu2 %2012  ;;  %v2652_v18 = vsel %vm2651_vm6, %v4446_v6, %v2648_v0  ;;  %v2659_v34 = vmul.f32 %v4448_v43, %v2011_v35  ;;  %vm2664_vm8 = vweird.f32 %v4448_v43 }
 0x4f2   : > { %4449 = vrcp.f32 %v2013_v21  ;;  %v2657_v52 = vsel %vm2654_vm7, %v2656_v40, %v2652_v18  ;;  %vm2665_vm10 = vmor %vm2663_vm9, %vm2664_vm8  ;;  %v2683_v8 = vand.u32 2147483648, %v2013_v21  ;;  %v2681_v7 = vand.u32 2147483647, %v2013_v21 }
 0x4f3   : > { %v2660_v17 = vsub.f32 1.0, %v2659_v34  ;;  %v2731_v48 = vmul.f32 %v6074_v62, %v2657_v52  ;;  %vm2677_vm13 = vweird.f32 %v2013_v21 }
 0x4f4   : > { %v2684_v12 = vor.u32 1.1754944e-38, %v2683_v8  ;;  %vm2682_vm15 = vcmp.eq.f32.partialorder %v2681_v7, 8.507059e+37 }
 0x4f5   : > { %v2661_v11 = vmul.f32 %v4448_v43, %v2660_v17  ;;  %v2779_v5 = vpack.c.bf16 %v2731_v48, %v2731_v48  ;;  %v4099_v41 = vpack.c.bf16 %v2731_v48, %v2730_v27 }
 0x4f7   : > { %v2662_v1 = vadd.f32 %v4448_v43, %v2661_v11  ;;  %v3149_v33 = vunpack.c.l.b16 %v2779_v5  ;;  %4151 = vst [vmem:[%s5324_s12 + $0xb0] sm:$0xff] %v4099_v41   ;;  %v3232_v53 = vpop.f32.mrf.mxu3 }
 0x4f8   : > { %v4450_v46 = vpop.eup %4449  ;;  %3300 = vst [vmem:[%s5623_s5 + $0x118] sm:$0xff] %v3232_v53 }
 0x4f9   : > { %v2673_v36 = vmul.f32 %v4450_v46, %v2013_v21  ;;  %v2666_v54 = vsel %vm2665_vm10, %v4448_v43, %v2662_v1  ;;  %v3158_v62 = vpack.c.b16 %v3149_v33, %v3148_v29  ;;  %vm2678_vm12 = vweird.f32 %v4450_v46 }
 0x4fa   : > { %v2671_v59 = vsel %vm2668_vm11, %v2670_v37, %v2666_v54  ;;  %vm2679_vm14 = vmor %vm2677_vm13, %vm2678_vm12 }
 0x4fb   : > { %v2674_v2 = vsub.f32 1.0, %v2673_v36  ;;  %3254 = vmatmul.bf16.gmra.mxu3 %v3158_v62  ;;  %v2732_v47 = vmul.f32 %v6081_v61, %v2671_v59 }
 0x4fd   : > { %v2675_v4 = vmul.f32 %v4450_v46, %v2674_v2  ;;  %v2780_v58 = vpack.c.bf16 %v2732_v47, %v2732_v47 }
 0x4ff   : > { %v2676_v24 = vadd.f32 %v4450_v46, %v2675_v4  ;;  %v3235_v31 = vpop.f32.mrf.mxu3  ;;  %v3150_v38 = vunpack.c.l.b16 %v2780_v58 }
 0x500   : > { %3301 = vst [vmem:[%s5623_s5 + $0x120] sm:$0xff] %v3235_v31 }
 0x501   : > { %v2680_v28 = vsel %vm2679_vm14, %v4450_v46, %v2676_v24 }
 0x502   : > { %v2685_v42 = vsel %vm2682_vm15, %v2684_v12, %v2680_v28 }
 0x503   : > { %v2733_v26 = vmul.f32 %v6086_v57, %v2685_v42 }
 0x505   : > { %v2781_v25 = vpack.c.bf16 %v2733_v26, %v2733_v26  ;;  %v4104_v50 = vpack.c.bf16 %v2733_v26, %v2732_v47 }
 0x507   : > { %v3151_v61 = vunpack.c.l.b16 %v2781_v25  ;;  %4152 = vst [vmem:[%s5324_s12 + $0xb8] sm:$0xff] %v4104_v50   ;;  %v3237_v14 = vpop.f32.mrf.mxu3 }
 0x508   : > { %3302 = vst [vmem:[%s5623_s5 + $0x128] sm:$0xff] %v3237_v14 }
 0x509   : > { %v3159_v10 = vpack.c.b16 %v3151_v61, %v3150_v38 }
 0x50b   : > { %3259 = vmatmul.bf16.gmra.mxu3 %v3159_v10 }
 0x54e   : > { %v3240_v30 = vpop.f32.mrf.mxu3 }
 0x54f   : > { %3303 = vst [vmem:[%s5623_s5 + $0x130] sm:$0xff] %v3240_v30 }
 0x556   : > { %v3242_v57 = vpop.f32.mrf.mxu3 }
 0x557   : > { %3304 = vst [vmem:[%s5623_s5 + $0x138] sm:$0xff] %v3242_v57 }
 0x55e   : > { %v3245_v63 = vpop.f32.mrf.mxu3 }
 0x55f   : > { %3305 = vst [vmem:[%s5623_s5 + $0x140] sm:$0xff] %v3245_v63 }
 0x566   : > { %v3247_v55 = vpop.f32.mrf.mxu3 }
 0x567   : > { %3306 = vst [vmem:[%s5623_s5 + $0x148] sm:$0xff] %v3247_v55 }
 0x56e   : > { %v3250_v22 = vpop.f32.mrf.mxu3 }
 0x56f   : > { %3307 = vst [vmem:[%s5623_s5 + $0x150] sm:$0xff] %v3250_v22 }
 0x576   : > { %v3252_v44 = vpop.f32.mrf.mxu3 }
 0x577   : > { %3308 = vst [vmem:[%s5623_s5 + $0x158] sm:$0xff] %v3252_v44 }
 0x57e   : > { %v3255_v60 = vpop.f32.mrf.mxu3 }
 0x57f   : > { %3309 = vst [vmem:[%s5623_s5 + $0x160] sm:$0xff] %v3255_v60 }
 0x586   : > { %v3257_v6 = vpop.f32.mrf.mxu3 }
 0x587   : > { %3310 = vst [vmem:[%s5623_s5 + $0x168] sm:$0xff] %v3257_v6 }
 0x58e   : > { %v3260_v32 = vpop.f32.mrf.mxu3 }
 0x58f   : > { %3311 = vst [vmem:[%s5623_s5 + $0x170] sm:$0xff] %v3260_v32 }
 0x593   : > { %3373 = sbr.rel (!%p4847_p9) target bundleno = 1463 (0x5b7), region = 72 }
 0x596   : > { %v3262_v20 = vpop.f32.mrf.mxu3 }
 0x597   : > { %3312 = vst [vmem:[%s5623_s5 + $0x178] sm:$0xff] %v3262_v20 }
 0x598   : > { %s6332_s17 = smov (!%p3377_p5, %s3376_s17), 3 }
 0x599   : > { %s3856_s15 = sshll.u32 %s6332_s17, 7 }
 0x59a   : > { %s3381_s26 = ssub.s32 384, %s3856_s15 }
 0x59b   : > { %s3382_s11 = sshll.u32 %s3381_s26, 4 }
 0x59c   : > { %3383 = vsyncadd %s3362_s18, %s3382_s11  ;;  %p6139_p8 = scmp.ne.s32.totalorder %s3856_s15, 0  ;;  %s4153_s14 = smul.u32 384, %s4721_s30 }
 0x59d   : > { %s3391_s24 = sshll.u32 %s5623_s5, 4  ;;  %s3860_s1 = sshll.u32 %s6332_s17, 11  ;;  %s6149_s24 = int_to_ptr.vmem [resolvable:$true] %s3391_s24 }
 0x59e   : > { %s3388_s21 = scalar_lea.hbm %s6249_s7, %s4153_s14  ;;  %s4585_s16 = sshra.s32 %s6149_s24, 4  ;;  %s4586_s16 = int_to_ptr.vmem [resolvable:$true] %s4585_s16 }
 0x59f   : > { %s3393_s22 = sshll.u32 %s3388_s21, 4  ;;  %s4587_s20 = sshrl.u32 %s3860_s1, 4  ;;  %s6151_s22 = int_to_ptr.hbm [resolvable:$true] %s3393_s22 }
 0x5a0   : > { %s4592_s15 = scalar_lea.vmem %s4586_s16, %s4587_s20  ;;  %s4739_s5 = smov [#allocation11]  }
 0x5a1   : > { %p4593_p0 = scmp.ne.s32.totalorder %s4586_s16, %s4592_s15  ;;  %s4596_s26 = scalar_lea.vmem %s4739_s5, 768 }
 0x5a2   : > { %p4598_p12 = scmp.lt.s32.totalorder %s4596_s26, %s4592_s15 }
 0x5a3   : > { %p4594_p3 = pnand %p4593_p0, %p6139_p8 }
 0x5a5   : > { %p4595_p4 = pneg %p4594_p3 }
 0x5a7   : > { %p4600_p13 = pnand %p4598_p12, %p4595_p4 }
 0x5a9   : > { %4603 = shalt.err (!%p4600_p13)
}
 0x5aa   : > { %s4604_s11 = sshra.s32 %s6151_s22, 4  ;;  %s4615_s21 = scalar_lea.hbm %s6249_s7, 512  ;;  %s4605_s11 = int_to_ptr.hbm [resolvable:$true] %s4604_s11 }
 0x5ab   : > { %s4611_s14 = scalar_lea.hbm %s4605_s11, %s4587_s20  ;;  %p4616_p7 = scmp.lt.s32.totalorder %s4605_s11, %s6249_s7 }
 0x5ac   : > { %p4612_p1 = scmp.ne.s32.totalorder %s4605_s11, %s4611_s14  ;;  %p4617_p10 = scmp.lt.s32.totalorder %s4615_s21, %s4611_s14 }
 0x5ae   : > { %p4613_p2 = pnand %p4612_p1, %p6139_p8  ;;  %p4618_p5 = por %p4617_p10, %p4616_p7 }
 0x5b0   : > { %p4614_p6 = pneg %p4613_p2 }
 0x5b2   : > { %p4619_p0 = pnand %p4618_p5, %p4614_p6 }
 0x5b4   : > { %4622 = shalt.err (!%p4619_p0)
}
 0x5b5   : > { %s4740_s15 = smov 128   ;;  %s4741_s20 = smov 8  }
 0x5b6   : > { %3399 = dma.vmem_to_hbm [thread:$0]  (%p6139_p8), %s6149_s24, %s3860_s1, %s6151_s22, %s3362_s18, %s4740_s15, %s4740_s15, %s4741_s20  }
 0x5b7 PF: > { %3402 = sbr.rel (!%p4847_p9) target bundleno = 1501 (0x5dd), region = 76  ;;  %s6314_s3 = scalar_lea.sflag (%p4847_p9), [#allocation13], %s4937_s27 }
 0x5b8   : > { %s3403_s25 = smul.u32 (%p4847_p9), 3, %s4721_s30 }
 0x5ba   : > { %s3405_s5 = ssub.s32 (%p4847_p9), 4, %s3403_s25 }
 0x5bb   : > { %p3406_p3 = scmp.lt.s32.totalorder (%p4847_p9), %s3405_s5, 3 }
 0x5bd   : > { %s6334_s5 = smov (!%p3406_p3, %s3405_s5), 3 }
 0x5be   : > { %s3861_s26 = sshll.u32 %s6334_s5, 6 }
 0x5bf   : > { %s3410_s11 = ssub.s32 192, %s3861_s26 }
 0x5c0   : > { %s3411_s14 = sshll.u32 %s3410_s11, 4 }
 0x5c1   : > { %3412 = vsyncadd %s6314_s3, %s3411_s14  ;;  %p6183_p8 = scmp.ne.s32.totalorder %s3861_s26, 0  ;;  %s4154_s18 = smul.u32 192, %s4721_s30 }
 0x5c2   : > { %s3420_s17 = sshll.u32 %s5324_s12, 4  ;;  %s3865_s23 = sshll.u32 %s6334_s5, 10  ;;  %s6193_s17 = int_to_ptr.vmem [resolvable:$true] %s3420_s17 }
 0x5c3   : > { %s3417_s22 = scalar_lea.hbm %s6250_s8, %s4154_s18  ;;  %s4624_s21 = sshra.s32 %s6193_s17, 4  ;;  %s4625_s21 = int_to_ptr.vmem [resolvable:$true] %s4624_s21 }
 0x5c4   : > { %s3422_s13 = sshll.u32 %s3417_s22, 4  ;;  %s4626_s16 = sshrl.u32 %s3865_s23, 4  ;;  %s6195_s13 = int_to_ptr.hbm [resolvable:$true] %s3422_s13 }
 0x5c5   : > { %s4631_s15 = scalar_lea.vmem %s4625_s21, %s4626_s16  ;;  %s4742_s30 = smov [#allocation12]  }
 0x5c6   : > { %p4632_p9 = scmp.ne.s32.totalorder %s4625_s21, %s4631_s15  ;;  %s4635_s12 = scalar_lea.vmem %s4742_s30, 384 }
 0x5c7   : > { %p4637_p13 = scmp.lt.s32.totalorder %s4635_s12, %s4631_s15 }
 0x5c8   : > { %p4633_p4 = pnand %p4632_p9, %p6183_p8 }
 0x5ca   : > { %p4634_p12 = pneg %p4633_p4 }
 0x5cc   : > { %p4639_p1 = pnand %p4637_p13, %p4634_p12 }
 0x5ce   : > { %4642 = shalt.err (!%p4639_p1)
}
 0x5cf   : > { %s4643_s20 = sshra.s32 %s6195_s13, 4  ;;  %s4654_s14 = scalar_lea.hbm %s6250_s8, 256  ;;  %s4644_s20 = int_to_ptr.hbm [resolvable:$true] %s4643_s20 }
 0x5d0   : > { %s4650_s25 = scalar_lea.hbm %s4644_s20, %s4626_s16  ;;  %p4655_p10 = scmp.lt.s32.totalorder %s4644_s20, %s6250_s8 }
 0x5d1   : > { %p4651_p2 = scmp.ne.s32.totalorder %s4644_s20, %s4650_s25  ;;  %p4656_p5 = scmp.lt.s32.totalorder %s4654_s14, %s4650_s25 }
 0x5d3   : > { %p4652_p6 = pnand %p4651_p2, %p6183_p8  ;;  %p4657_p0 = por %p4656_p5, %p4655_p10 }
 0x5d5   : > { %p4653_p7 = pneg %p4652_p6 }
 0x5d7   : > { %p4658_p3 = pnand %p4657_p0, %p4653_p7 }
 0x5d9   : > { %4661 = shalt.err (!%p4658_p3)
}
 0x5da   : > { %s4743_s24 = smov 64   ;;  %s4744_s1 = smov 4  }
 0x5db   : > { %s6316_s22 = scalar_lea.sflag [#allocation13], %s4937_s27 }
 0x5dc   : > { %3428 = dma.vmem_to_hbm [thread:$0]  (%p6183_p8), %s6193_s17, %s3865_s23, %s6195_s13, %s6316_s22, %s4743_s24, %s4743_s24, %s4744_s1  }
 0x5dd PF: > { %s6317_s21 = sld [smem:[#allocation19_spill]]  ;;  %p6319_p9 = scmp.ge.s32.totalorder %s4729_s10, 2 }
 0x5df   : > { %p4184_p4 = pnand %p6319_p9, %p4854_p11 }
 0x5e1   : > { %p4185_p12 = pneg %p4184_p4 }
 0x5e3   : > { %s3437_s15 = sand.u32 1, %s6317_s21  }
 0x5e4   : > { %s3438_s30 = scalar_lea.sflag [#allocation5], %s3437_s15 }
 0x5e5   : > { %4700 = dma.done.wait (%p4185_p12), %s3438_s30, 6144  }
 0x5e6   : > { %4702 = vsyncadd (%p4185_p12), %s3438_s30, 4294961152  ;;  %s3448_s12 = scalar_lea.sflag [#allocation13], %s3437_s15 }
 0x5e7   : > { %4704 = dma.done.wait (%p4185_p12), %s3448_s12, 3072  }
 0x5e8   : > { %4706 = vsyncadd (%p4185_p12), %s3448_s12, 4294964224  ;;  %s30_s10 = sadd.s32 1, %s4729_s10   ;;  %s6320_s5 = sld [smem:[#allocation21_spill]] }
 0x5e9   : > { %p27_p13 = scmp.ge.s32.totalorder %s30_s10, 4   ;;  %s6321_s19 = sld [smem:[#allocation20_spill]] }
 0x5ea   : > { %s6322_s27 = smov %s4713_s28  ;;  %s6323_s28 = smov %s4717_s29 }
 0x5eb   : > { %s6325_s30 = smov %s4725_s9  ;;  %29 = sbr.rel (!%p27_p13) target bundleno = 14 (0xe), region = 127 }
 0x5ee   : > { %s6324_s29 = smov %s6320_s5 }
 0x5ef   : > { %s6326_s9 = smov %s6321_s19 }
 0x5f0   :  { %3454 = vsyncpa [#allocation4], 1 }
 0x5f1   :  { %3456 = vsyncpa [#allocation4 + $0x1], 1 }
 0x5f2   :  { %3457 = vsyncpa [#allocation7], 1 }
 0x5f3   :  { %3458 = vsyncpa [#allocation10], 1 }
 0x5f4   :  { %3459 = vsyncpa [#allocation5], 1 }
 0x5f5   :  { %3461 = vsyncpa [#allocation5 + $0x1], 1 }
 0x5f6   :  { %3462 = vsyncpa [#allocation13], 1 }
 0x5f7   :  { %3464 = vsyncpa [#allocation13 + $0x1], 1 }

</bundles_post_ra>
